<compile_context>
chip_gen: v5e
topology: v5e:2x2
jax: 0.10.0
libtpu: 0.0.40
codegen_flags: <defaults>
</compile_context>

<pallas_src>
import math
from functools import partial

import jax
import jax.numpy as jnp
from jax.experimental import pallas as pl
from jax.experimental.pallas import tpu as pltpu

EPS = 1e-5  # torch.nn.LayerNorm default eps


# ------------------------- generation-aware budgets -------------------------

def _vmem_budget():
    cap = 128 * 1024 * 1024
    try:
        cap = int(pltpu.get_tpu_info().vmem_capacity_bytes)
    except Exception:
        pass
    if cap <= 64 * 1024 * 1024:          # v7x-class (64 MiB per TensorCore)
        return 44 * 1024 * 1024, 256
    return 96 * 1024 * 1024, 512         # v5e / v6e (128 MiB)


VMEM_LIMIT, MAX_TM = _vmem_budget()


# ------------------------------ helpers ------------------------------------

def _row_plan(M):
    """Pick a row tile and a (possibly padded) row count for 1-D row grids."""
    for c in (MAX_TM, 512, 256, 128):
        if c <= MAX_TM and M % c == 0:
            return c, M
    if M <= MAX_TM:
        return M, M                      # single full block (always legal)
    Mp = pl.cdiv(M, 128) * 128           # pad + mask via slicing in wrapper
    return 128, Mp


def _seq_tile(L, cap=128):
    """Largest tile <= cap that divides L; fall back to the full length."""
    for c in (cap, 64, 32, 16, 8):
        if L % c == 0:
            return c
    return L


def _layernorm(x, g, b):
    mu = jnp.mean(x, axis=-1, keepdims=True)
    var = jnp.mean((x - mu) ** 2, axis=-1, keepdims=True)
    return (x - mu) * jax.lax.rsqrt(var + EPS) * g + b


def _gelu_exact(y):
    # exact (erf-based) GELU, matching torch.nn.GELU() default
    return 0.5 * y * (1.0 + jax.lax.erf(y * (1.0 / math.sqrt(2.0))))


# ------------------------------ kernels ------------------------------------

def _ln_matmul_kernel(x_ref, g_ref, be_ref, w_ref, b_ref, o_ref, *, gelu):
    """LayerNorm (f32) fused with one wide bf16 matmul (+ optional exact GELU).
    LN is computed exactly once per row tile; the full-width weight stays
    resident in VMEM (constant block index)."""
    xn = _layernorm(x_ref[...], g_ref[...], be_ref[...])
    y = jnp.dot(xn.astype(w_ref.dtype), w_ref[...],
                preferred_element_type=jnp.float32) + b_ref[...]
    if gelu:
        y = _gelu_exact(y)
    o_ref[...] = y.astype(o_ref.dtype)


def _matmul_kernel(x_ref, w_ref, b_ref, o_ref):
    """Plain projection (memory K/V): bf16 matmul, f32 accumulation."""
    y = jnp.dot(x_ref[...].astype(w_ref.dtype), w_ref[...],
                preferred_element_type=jnp.float32) + b_ref[...]
    o_ref[...] = y.astype(o_ref.dtype)


def _matmul_res_kernel(h_ref, w_ref, b_ref, res_ref, o_ref):
    """FFN W2: full-K bf16 matmul + bias + residual (output aliases residual)."""
    y = jnp.dot(h_ref[...], w_ref[...], preferred_element_type=jnp.float32)
    o_ref[...] = y + b_ref[...] + res_ref[...]


def _attn_kernel(q_ref, k_ref, v_ref, res_ref, wo_ref, bo_ref, o_ref,
                 m_scr, l_scr, acc_scr, *, num_heads, d_k):
    """Online-softmax attention over Lk tiles for all heads of one (b, q-tile).
    Q is pre-scaled by 1/sqrt(d_k) (folded into Wq).  Per-head contexts are
    accumulated into their d_k column slice of a (tq, d) f32 scratch; Wo is a
    single d-wide MXU matmul at finalize, then bias + residual."""
    ki = pl.program_id(2)

    @pl.when(ki == 0)
    def _():
        m_scr[...] = jnp.full_like(m_scr, -jnp.inf)
        l_scr[...] = jnp.zeros_like(l_scr)
        acc_scr[...] = jnp.zeros_like(acc_scr)

    q = q_ref[0]                       # (tq, d) bf16
    k = k_ref[0]                       # (tk, d) bf16
    v = v_ref[0]                       # (tk, d) bf16

    for h in range(num_heads):         # static unrolled loop
        lo = h * d_k
        qh = q[:, lo:lo + d_k]
        kh = k[:, lo:lo + d_k]
        vh = v[:, lo:lo + d_k]
        # contract the d_k axes directly -- no in-kernel transpose of K
        s = jax.lax.dot_general(qh, kh, (((1,), (1,)), ((), ())),
                                preferred_element_type=jnp.float32)  # (tq, tk)
        m_prev = m_scr[:, h:h + 1]
        m_new = jnp.maximum(m_prev, jnp.max(s, axis=-1, keepdims=True))
        alpha = jnp.exp(m_prev - m_new)
        p = jnp.exp(s - m_new)
        l_scr[:, h:h + 1] = alpha * l_scr[:, h:h + 1] + jnp.sum(p, axis=-1,
                                                                keepdims=True)
        acc_scr[:, lo:lo + d_k] = alpha * acc_scr[:, lo:lo + d_k] + jnp.dot(
            p.astype(v.dtype), vh, preferred_element_type=jnp.float32)
        m_scr[:, h:h + 1] = m_new

    @pl.when(ki == pl.num_programs(2) - 1)
    def _():
        inv = pl.reciprocal(l_scr[...], approx=True)               # (tq, H)
        scale = jnp.concatenate(
            [jnp.broadcast_to(inv[:, h:h + 1], (inv.shape[0], d_k))
             for h in range(num_heads)], axis=-1)                  # (tq, d)
        ctx = (acc_scr[...] * scale).astype(q_ref.dtype)           # bf16
        out = jnp.dot(ctx, wo_ref[...], preferred_element_type=jnp.float32)
        o_ref[0] = out + bo_ref[...] + res_ref[0]


# ------------------------------ wrappers ------------------------------------

def fused_ln_matmul(x2d, gamma, beta, w, b, *, gelu=False,
                    out_dtype=jnp.bfloat16):
    M, d = x2d.shape
    N = w.shape[1]
    tm, Mp = _row_plan(M)
    if Mp != M:
        x2d = jnp.pad(x2d, ((0, Mp - M), (0, 0)))
    out = pl.pallas_call(
        partial(_ln_matmul_kernel, gelu=gelu),
        grid=(Mp // tm,),
        in_specs=[pl.BlockSpec((tm, d), lambda i: (i, 0)),
                  pl.BlockSpec((1, d), lambda i: (0, 0)),
                  pl.BlockSpec((1, d), lambda i: (0, 0)),
                  pl.BlockSpec((d, N), lambda i: (0, 0)),
                  pl.BlockSpec((1, N), lambda i: (0, 0))],
        out_specs=pl.BlockSpec((tm, N), lambda i: (i, 0)),
        out_shape=jax.ShapeDtypeStruct((Mp, N), out_dtype),
        compiler_params=pltpu.CompilerParams(
            dimension_semantics=("parallel",),
            vmem_limit_bytes=VMEM_LIMIT),
        cost_estimate=pl.CostEstimate(
            flops=2 * Mp * N * d,
            transcendentals=(Mp * N if gelu else 0),
            bytes_accessed=4 * Mp * d + 2 * d * N + 2 * Mp * N),
    )(x2d, gamma, beta, w, b)
    return out[:M] if Mp != M else out


def fused_matmul(x2d, w, b, *, out_dtype=jnp.bfloat16):
    M, d = x2d.shape
    N = w.shape[1]
    tm, Mp = _row_plan(M)
    if Mp != M:
        x2d = jnp.pad(x2d, ((0, Mp - M), (0, 0)))
    out = pl.pallas_call(
        _matmul_kernel,
        grid=(Mp // tm,),
        in_specs=[pl.BlockSpec((tm, d), lambda i: (i, 0)),
                  pl.BlockSpec((d, N), lambda i: (0, 0)),
                  pl.BlockSpec((1, N), lambda i: (0, 0))],
        out_specs=pl.BlockSpec((tm, N), lambda i: (i, 0)),
        out_shape=jax.ShapeDtypeStruct((Mp, N), out_dtype),
        compiler_params=pltpu.CompilerParams(
            dimension_semantics=("parallel",),
            vmem_limit_bytes=VMEM_LIMIT),
        cost_estimate=pl.CostEstimate(
            flops=2 * Mp * N * d, transcendentals=0,
            bytes_accessed=4 * Mp * d + 2 * d * N + 2 * Mp * N),
    )(x2d, w, b)
    return out[:M] if Mp != M else out


def fused_matmul_residual(h2d, w, b, res2d):
    M, K = h2d.shape
    N = w.shape[1]
    tm, Mp = _row_plan(M)
    if Mp != M:
        h2d = jnp.pad(h2d, ((0, Mp - M), (0, 0)))
        res2d = jnp.pad(res2d, ((0, Mp - M), (0, 0)))
    out = pl.pallas_call(
        _matmul_res_kernel,
        grid=(Mp // tm,),
        in_specs=[pl.BlockSpec((tm, K), lambda i: (i, 0)),
                  pl.BlockSpec((K, N), lambda i: (0, 0)),
                  pl.BlockSpec((1, N), lambda i: (0, 0)),
                  pl.BlockSpec((tm, N), lambda i: (i, 0))],
        out_specs=pl.BlockSpec((tm, N), lambda i: (i, 0)),
        out_shape=jax.ShapeDtypeStruct((Mp, N), jnp.float32),
        input_output_aliases={3: 0},       # residual buffer -> output
        compiler_params=pltpu.CompilerParams(
            dimension_semantics=("parallel",),
            vmem_limit_bytes=VMEM_LIMIT),
        cost_estimate=pl.CostEstimate(
            flops=2 * Mp * N * K, transcendentals=0,
            bytes_accessed=2 * Mp * K + 2 * K * N + 8 * Mp * N),
    )(h2d, w, b, res2d)
    return out[:M] if Mp != M else out


def fused_attention_outproj(q_arr, q_col, kv_arr, k_col, v_col, res, wo, bo,
                            *, num_heads, Lq, Lk):
    """softmax(QK^T)V + Wo + bias + residual for all heads.
    q_arr / kv_arr may be wide concatenated buffers; q_col/k_col/v_col select
    the d-wide column block inside them (lane-offset index_maps)."""
    B, _, d = res.shape
    d_k = d // num_heads
    tq = _seq_tile(Lq)
    tk = _seq_tile(Lk)
    nq, nk = Lq // tq, Lk // tk
    return pl.pallas_call(
        partial(_attn_kernel, num_heads=num_heads, d_k=d_k),
        grid=(B, nq, nk),
        in_specs=[
            pl.BlockSpec((1, tq, d), lambda b, qi, ki, c=q_col: (b, qi, c)),
            pl.BlockSpec((1, tk, d), lambda b, qi, ki, c=k_col: (b, ki, c)),
            pl.BlockSpec((1, tk, d), lambda b, qi, ki, c=v_col: (b, ki, c)),
            pl.BlockSpec((1, tq, d), lambda b, qi, ki: (b, qi, 0)),
            pl.BlockSpec((d, d), lambda b, qi, ki: (0, 0)),
            pl.BlockSpec((1, d), lambda b, qi, ki: (0, 0)),
        ],
        out_specs=pl.BlockSpec((1, tq, d), lambda b, qi, ki: (b, qi, 0)),
        out_shape=jax.ShapeDtypeStruct((B, Lq, d), jnp.float32),
        scratch_shapes=[pltpu.VMEM((tq, num_heads), jnp.float32),
                        pltpu.VMEM((tq, num_heads), jnp.float32),
                        pltpu.VMEM((tq, d), jnp.float32)],
        compiler_params=pltpu.CompilerParams(
            dimension_semantics=("parallel", "parallel", "arbitrary"),
            vmem_limit_bytes=VMEM_LIMIT),
        cost_estimate=pl.CostEstimate(
            flops=B * (4 * Lq * Lk * d + 2 * Lq * d * d),
            transcendentals=B * num_heads * Lq * Lk,
            bytes_accessed=2 * B * (Lq * d + 2 * Lk * d)
                           + 8 * B * Lq * d + 2 * d * d),
    )(q_arr, kv_arr, kv_arr, res, wo, bo)


# --------------------------- decoder block ----------------------------------

def transformer_decoder_block_bm(x, mem, p, num_heads):
    """Batch-major entry point.  x: (B, Lq, d) f32; mem: (B, Lk, d) f32."""
    B, Lq, d = x.shape
    Lk = mem.shape[1]

    # ---- self attention: [LN1 + fused QKV] -> [online attn + Wo + residual]
    sa = p["self_attn"]
    qkv = fused_ln_matmul(x.reshape(B * Lq, d), p["ln1_g"], p["ln1_b"],
                          sa["wqkv"], sa["bqkv"])
    qkv3 = qkv.reshape(B, Lq, 3 * d)
    x = fused_attention_outproj(qkv3, 0, qkv3, 1, 2, x, sa["wo"], sa["bo"],
                                num_heads=num_heads, Lq=Lq, Lk=Lq)

    # ---- cross attention: [LN2 + Q], [fused KV] -> [online attn + Wo + res]
    ca = p["cross_attn"]
    q = fused_ln_matmul(x.reshape(B * Lq, d), p["ln2_g"], p["ln2_b"],
                        ca["wq"], ca["bq"])
    kv = fused_matmul(mem.reshape(B * Lk, d), ca["wkv"], ca["bkv"])
    x = fused_attention_outproj(q.reshape(B, Lq, d), 0,
                                kv.reshape(B, Lk, 2 * d), 0, 1,
                                x, ca["wo"], ca["bo"],
                                num_heads=num_heads, Lq=Lq, Lk=Lk)

    # ---- FFN: [LN3 + W1 + exact GELU] -> [W2 + bias + residual]
    h = fused_ln_matmul(x.reshape(B * Lq, d), p["ln3_g"], p["ln3_b"],
                        p["ff_w1"], p["ff_b1"], gelu=True)
    out2d = fused_matmul_residual(h, p["ff_w2"], p["ff_b2"],
                                  x.reshape(B * Lq, d))
    return out2d.reshape(B, Lq, d)


def transformer_decoder_block(tgt, memory, params, num_heads):
    """Torch-layout entry: tgt (L_tgt, B, d), memory (L_mem, B, d).
    The two transposes are a one-time layout change at the model boundary;
    stacked layers should call transformer_decoder_block_bm directly."""
    x = jnp.transpose(tgt, (1, 0, 2))
    mem = jnp.transpose(memory, (1, 0, 2))
    out = transformer_decoder_block_bm(x, mem, params, num_heads)
    return jnp.transpose(out, (1, 0, 2))


# ----------------------- parameters (torch convention) ----------------------

def init_params(key, d_model, num_heads, dim_ff):
    keys = jax.random.split(key, 10)

    def lin(k, out_d, in_d):
        k1, k2 = jax.random.split(k)
        return (jax.random.normal(k1, (out_d, in_d), jnp.float32) * 0.05,
                jax.random.normal(k2, (out_d,), jnp.float32) * 0.05)

    def attn_params(ks):
        wq, bq = lin(ks[0], d_model, d_model)
        wk, bk = lin(ks[1], d_model, d_model)
        wv, bv = lin(ks[2], d_model, d_model)
        wo, bo = lin(ks[3], d_model, d_model)
        return dict(wq=wq, bq=bq, wk=wk, bk=bk, wv=wv, bv=bv, wo=wo, bo=bo)

    p = dict(
        self_attn=attn_params(keys[0:4]),
        cross_attn=attn_params(keys[4:8]),
        ln1_g=jnp.ones((d_model,), jnp.float32),
        ln1_b=jnp.zeros((d_model,), jnp.float32),
        ln2_g=jnp.ones((d_model,), jnp.float32),
        ln2_b=jnp.zeros((d_model,), jnp.float32),
        ln3_g=jnp.ones((d_model,), jnp.float32),
        ln3_b=jnp.zeros((d_model,), jnp.float32),
    )
    p["ff_w1"], p["ff_b1"] = lin(keys[8], dim_ff, d_model)
    p["ff_w2"], p["ff_b2"] = lin(keys[9], d_model, dim_ff)
    return p


def prepare_params(tp, d_model, num_heads):
    """One-time layout conversion: weights -> bf16 (d_in, d_out), Q/K/V (and
    K/V) weights concatenated, biases / LN params -> f32 (1, n), and the
    1/sqrt(d_k) attention scale folded into Wq / bq."""
    assert d_model % 128 == 0, "d_model must be a multiple of 128 (lane width)"
    inv_scale = 1.0 / math.sqrt(d_model // num_heads)
    bf16 = jnp.bfloat16

    def self_attn(a):
        wqkv = jnp.concatenate([jnp.transpose(a["wq"]) * inv_scale,
                                jnp.transpose(a["wk"]),
                                jnp.transpose(a["wv"])], axis=1)
        bqkv = jnp.concatenate([a["bq"] * inv_scale, a["bk"], a["bv"]])
        return dict(wqkv=wqkv.astype(bf16), bqkv=bqkv.reshape(1, -1),
                    wo=jnp.transpose(a["wo"]).astype(bf16),
                    bo=a["bo"].reshape(1, -1))

    def cross_attn(a):
        wkv = jnp.concatenate([jnp.transpose(a["wk"]),
                               jnp.transpose(a["wv"])], axis=1)
        bkv = jnp.concatenate([a["bk"], a["bv"]])
        return dict(wq=(jnp.transpose(a["wq"]) * inv_scale).astype(bf16),
                    bq=(a["bq"] * inv_scale).reshape(1, -1),
                    wkv=wkv.astype(bf16), bkv=bkv.reshape(1, -1),
                    wo=jnp.transpose(a["wo"]).astype(bf16),
                    bo=a["bo"].reshape(1, -1))

    return dict(
        self_attn=self_attn(tp["self_attn"]),
        cross_attn=cross_attn(tp["cross_attn"]),
        ln1_g=tp["ln1_g"].reshape(1, -1), ln1_b=tp["ln1_b"].reshape(1, -1),
        ln2_g=tp["ln2_g"].reshape(1, -1), ln2_b=tp["ln2_b"].reshape(1, -1),
        ln3_g=tp["ln3_g"].reshape(1, -1), ln3_b=tp["ln3_b"].reshape(1, -1),
        ff_w1=jnp.transpose(tp["ff_w1"]).astype(bf16),
        ff_b1=tp["ff_b1"].reshape(1, -1),
        ff_w2=jnp.transpose(tp["ff_w2"]).astype(bf16),
        ff_b2=tp["ff_b2"].reshape(1, -1))


# --------------------------- pure-JAX reference ------------------------------

def _ref_ln(x, g, b):
    mu = jnp.mean(x, -1, keepdims=True)
    var = jnp.mean((x - mu) ** 2, -1, keepdims=True)
    return (x - mu) / jnp.sqrt(var + EPS) * g + b


def _ref_linear(x, w, b):
    return x @ w.T + b


def _ref_mha(q, k, v, p, H):
    Lq, B, d = q.shape
    Lk = k.shape[0]
    dk = d // H
    Q = _ref_linear(q, p["wq"], p["bq"]).reshape(Lq, B, H, dk).transpose(1, 2, 0, 3)
    K = _ref_linear(k, p["wk"], p["bk"]).reshape(Lk, B, H, dk).transpose(1, 2, 0, 3)
    V = _ref_linear(v, p["wv"], p["bv"]).reshape(Lk, B, H, dk).transpose(1, 2, 0, 3)
    s = Q @ jnp.swapaxes(K, -2, -1) / math.sqrt(dk)
    a = jax.nn.softmax(s, -1)
    ctx = (a @ V).transpose(2, 0, 1, 3).reshape(Lq, B, d)
    return _ref_linear(ctx, p["wo"], p["bo"])


def _ref_block(tgt, memory, p, H):
    n1 = _ref_ln(tgt, p["ln1_g"], p["ln1_b"])
    tgt = tgt + _ref_mha(n1, n1, n1, p["self_attn"], H)
    n2 = _ref_ln(tgt, p["ln2_g"], p["ln2_b"])
    tgt = tgt + _ref_mha(n2, memory, memory, p["cross_attn"], H)
    n3 = _ref_ln(tgt, p["ln3_g"], p["ln3_b"])
    h = jax.nn.gelu(_ref_linear(n3, p["ff_w1"], p["ff_b1"]), approximate=False)
    return tgt + _ref_linear(h, p["ff_w2"], p["ff_b2"])


# --------------------------------- main --------------------------------------

if __name__ == "__main__":
    d_model, num_heads, dim_ff = 128, 4, 256
    L_tgt, L_mem, B = 24, 48, 2   # tq=8/tk=16 -> 3 K-tiles exercise online softmax

    key = jax.random.PRNGKey(0)
    kp, kt, km = jax.random.split(key, 3)
    torch_params = init_params(kp, d_model, num_heads, dim_ff)
    tgt = jax.random.normal(kt, (L_tgt, B, d_model), jnp.float32)
    memory = jax.random.normal(km, (L_mem, B, d_model), jnp.float32)

    kparams = prepare_params(torch_params, d_model, num_heads)

    fwd = jax.jit(partial(transformer_decoder_block, num_heads=num_heads))
    out = fwd(tgt, memory, kparams)
    out = jax.block_until_ready(out)

    ref = _ref_block(tgt, memory, torch_params, num_heads)
    assert out.shape == (L_tgt, B, d_model)
    max_err = float(jnp.max(jnp.abs(out - ref)))
    # tolerance accounts for the bf16 matmul datapath (f32 accumulation) and
    # the approximate EUP reciprocal in the softmax denominator.
    assert jnp.allclose(out, ref, atol=5e-2, rtol=5e-2), \
        f"mismatch vs pure-JAX f32 reference (max abs err {max_err})"
    print("KERNEL_OK")
</pallas_src>

<mosaic_0001>
module attributes {stable_mosaic.version = 11 : i64} {
  func.func @_matmul_kernel(%arg0: i32, %arg1: memref<96x128xf32, #tpu.memory_space<vmem>>, %arg2: memref<128x256xbf16, #tpu.memory_space<vmem>>, %arg3: memref<1x256xf32, #tpu.memory_space<vmem>>, %arg4: memref<96x256xbf16, #tpu.memory_space<vmem>>) attributes {dimension_semantics = [#tpu.dimension_semantics<parallel>], iteration_bounds = array<i64: 1>, scalar_prefetch = 0 : i64, scratch_operands = 0 : i64, tpu.core_type = #tpu.core_type<tc>, window_params = [{transform_indices = @transform_0, window_bounds = array<i64: 96, 128>}, {pipeline_mode = #tpu.pipeline_mode<synchronous>, transform_indices = @transform_1, window_bounds = array<i64: 128, 256>}, {pipeline_mode = #tpu.pipeline_mode<synchronous>, transform_indices = @transform_2, window_bounds = array<i64: 1, 256>}, {transform_indices = @transform_3, window_bounds = array<i64: 96, 256>}]} {
    %c0 = arith.constant 0 : index
    %c0_0 = arith.constant 0 : index
    %0 = vector.load %arg1[%c0, %c0_0] : memref<96x128xf32, #tpu.memory_space<vmem>>, vector<96x128xf32>
    %1 = arith.truncf %0 : vector<96x128xf32> to vector<96x128xbf16>
    %c0_1 = arith.constant 0 : index
    %c0_2 = arith.constant 0 : index
    %2 = vector.load %arg2[%c0_1, %c0_2] : memref<128x256xbf16, #tpu.memory_space<vmem>>, vector<128x256xbf16>
    %cst = arith.constant dense<0.000000e+00> : vector<96x256xf32>
    %3 = tpu.matmul %1, %2, %cst {dimension_numbers = #tpu.dot_dimension_numbers<[1], [0], [0], [1], [0, 0, 1, 1], [], []>} : vector<96x128xbf16>, vector<128x256xbf16>, vector<96x256xf32> -> vector<96x256xf32>
    %c0_3 = arith.constant 0 : index
    %c0_4 = arith.constant 0 : index
    %4 = vector.load %arg3[%c0_3, %c0_4] : memref<1x256xf32, #tpu.memory_space<vmem>>, vector<1x256xf32>
    %5 = vector.broadcast %4 : vector<1x256xf32> to vector<96x256xf32>
    %6 = arith.addf %3, %5 : vector<96x256xf32>
    %7 = arith.truncf %6 : vector<96x256xf32> to vector<96x256xbf16>
    %c0_5 = arith.constant 0 : index
    %c0_6 = arith.constant 0 : index
    %8 = vector.load %arg4[%c0_5, %c0_6] : memref<96x256xbf16, #tpu.memory_space<vmem>>, vector<96x256xbf16>
    tpu.vector_store %arg4[%c0_5, %c0_6], %7 {strides = array<i32>} : memref<96x256xbf16, #tpu.memory_space<vmem>>, vector<96x256xbf16>,
    return
  }
  func.func @transform_0(%arg0: i32) -> (i32, i32) {
    %c0_i32 = arith.constant 0 : i32
    %c0_i32_0 = arith.constant 0 : i32
    return %arg0, %c0_i32 : i32, i32
  }
  func.func @transform_1(%arg0: i32) -> (i32, i32) {
    %c0_i32 = arith.constant 0 : i32
    %c0_i32_0 = arith.constant 0 : i32
    %c0_i32_1 = arith.constant 0 : i32
    return %c0_i32, %c0_i32_0 : i32, i32
  }
  func.func @transform_2(%arg0: i32) -> (i32, i32) {
    %c0_i32 = arith.constant 0 : i32
    %c0_i32_0 = arith.constant 0 : i32
    %c0_i32_1 = arith.constant 0 : i32
    return %c0_i32, %c0_i32_0 : i32, i32
  }
  func.func @transform_3(%arg0: i32) -> (i32, i32) {
    %c0_i32 = arith.constant 0 : i32
    %c0_i32_0 = arith.constant 0 : i32
    return %arg0, %c0_i32 : i32, i32
  }
}

module attributes {stable_mosaic.version = 11 : i64} {
  func.func @_ln_matmul_kernel(%arg0: i32, %arg1: memref<48x128xf32, #tpu.memory_space<vmem>>, %arg2: memref<1x128xf32, #tpu.memory_space<vmem>>, %arg3: memref<1x128xf32, #tpu.memory_space<vmem>>, %arg4: memref<128x384xbf16, #tpu.memory_space<vmem>>, %arg5: memref<1x384xf32, #tpu.memory_space<vmem>>, %arg6: memref<48x384xbf16, #tpu.memory_space<vmem>>) attributes {dimension_semantics = [#tpu.dimension_semantics<parallel>], iteration_bounds = array<i64: 1>, scalar_prefetch = 0 : i64, scratch_operands = 0 : i64, tpu.core_type = #tpu.core_type<tc>, window_params = [{transform_indices = @transform_0, window_bounds = array<i64: 48, 128>}, {pipeline_mode = #tpu.pipeline_mode<synchronous>, transform_indices = @transform_1, window_bounds = array<i64: 1, 128>}, {pipeline_mode = #tpu.pipeline_mode<synchronous>, transform_indices = @transform_2, window_bounds = array<i64: 1, 128>}, {pipeline_mode = #tpu.pipeline_mode<synchronous>, transform_indices = @transform_3, window_bounds = array<i64: 128, 384>}, {pipeline_mode = #tpu.pipeline_mode<synchronous>, transform_indices = @transform_4, window_bounds = array<i64: 1, 384>}, {transform_indices = @transform_5, window_bounds = array<i64: 48, 384>}]} {
    %c0 = arith.constant 0 : index
    %c0_0 = arith.constant 0 : index
    %0 = vector.load %arg1[%c0, %c0_0] : memref<48x128xf32, #tpu.memory_space<vmem>>, vector<48x128xf32>
    %c0_1 = arith.constant 0 : index
    %c0_2 = arith.constant 0 : index
    %1 = vector.load %arg2[%c0_1, %c0_2] : memref<1x128xf32, #tpu.memory_space<vmem>>, vector<1x128xf32>
    %c0_3 = arith.constant 0 : index
    %c0_4 = arith.constant 0 : index
    %2 = vector.load %arg3[%c0_3, %c0_4] : memref<1x128xf32, #tpu.memory_space<vmem>>, vector<1x128xf32>
    %cst = arith.constant dense<0.000000e+00> : vector<48xf32>
    %3 = vector.multi_reduction <add>, %0, %cst [1] : vector<48x128xf32> to vector<48xf32>
    %4 = vector.shape_cast %3 : vector<48xf32> to vector<48x1xf32>
    %cst_5 = arith.constant 1.280000e+02 : f32
    %5 = vector.broadcast %cst_5 : f32 to vector<48x1xf32>
    %6 = arith.divf %4, %5 : vector<48x1xf32>
    %7 = vector.broadcast %6 : vector<48x1xf32> to vector<48x128xf32>
    %8 = arith.subf %0, %7 : vector<48x128xf32>
    %9 = arith.mulf %8, %8 : vector<48x128xf32>
    %cst_6 = arith.constant dense<0.000000e+00> : vector<48xf32>
    %10 = vector.multi_reduction <add>, %9, %cst_6 [1] : vector<48x128xf32> to vector<48xf32>
    %11 = vector.shape_cast %10 : vector<48xf32> to vector<48x1xf32>
    %cst_7 = arith.constant 1.280000e+02 : f32
    %12 = vector.broadcast %cst_7 : f32 to vector<48x1xf32>
    %13 = arith.divf %11, %12 : vector<48x1xf32>
    %14 = vector.broadcast %6 : vector<48x1xf32> to vector<48x128xf32>
    %15 = arith.subf %0, %14 : vector<48x128xf32>
    %cst_8 = arith.constant 9.99999974E-6 : f32
    %16 = vector.broadcast %cst_8 : f32 to vector<48x1xf32>
    %17 = arith.addf %13, %16 : vector<48x1xf32>
    %18 = math.rsqrt %17 : vector<48x1xf32>
    %19 = vector.broadcast %18 : vector<48x1xf32> to vector<48x128xf32>
    %20 = arith.mulf %15, %19 : vector<48x128xf32>
    %21 = vector.broadcast %1 : vector<1x128xf32> to vector<48x128xf32>
    %22 = arith.mulf %20, %21 : vector<48x128xf32>
    %23 = vector.broadcast %2 : vector<1x128xf32> to vector<48x128xf32>
    %24 = arith.addf %22, %23 : vector<48x128xf32>
    %25 = arith.truncf %24 : vector<48x128xf32> to vector<48x128xbf16>
    %c0_9 = arith.constant 0 : index
    %c0_10 = arith.constant 0 : index
    %26 = vector.load %arg4[%c0_9, %c0_10] : memref<128x384xbf16, #tpu.memory_space<vmem>>, vector<128x384xbf16>
    %cst_11 = arith.constant dense<0.000000e+00> : vector<48x384xf32>
    %27 = tpu.matmul %25, %26, %cst_11 {dimension_numbers = #tpu.dot_dimension_numbers<[1], [0], [0], [1], [0, 0, 1, 1], [], []>} : vector<48x128xbf16>, vector<128x384xbf16>, vector<48x384xf32> -> vector<48x384xf32>
    %c0_12 = arith.constant 0 : index
    %c0_13 = arith.constant 0 : index
    %28 = vector.load %arg5[%c0_12, %c0_13] : memref<1x384xf32, #tpu.memory_space<vmem>>, vector<1x384xf32>
    %29 = vector.broadcast %28 : vector<1x384xf32> to vector<48x384xf32>
    %30 = arith.addf %27, %29 : vector<48x384xf32>
    %31 = arith.truncf %30 : vector<48x384xf32> to vector<48x384xbf16>
    %c0_14 = arith.constant 0 : index
    %c0_15 = arith.constant 0 : index
    %32 = vector.load %arg6[%c0_14, %c0_15] : memref<48x384xbf16, #tpu.memory_space<vmem>>, vector<48x384xbf16>
    tpu.vector_store %arg6[%c0_14, %c0_15], %31 {strides = array<i32>} : memref<48x384xbf16, #tpu.memory_space<vmem>>, vector<48x384xbf16>,
    return
  }
  func.func @transform_0(%arg0: i32) -> (i32, i32) {
    %c0_i32 = arith.constant 0 : i32
    %c0_i32_0 = arith.constant 0 : i32
    return %arg0, %c0_i32 : i32, i32
  }
  func.func @transform_1(%arg0: i32) -> (i32, i32) {
    %c0_i32 = arith.constant 0 : i32
    %c0_i32_0 = arith.constant 0 : i32
    %c0_i32_1 = arith.constant 0 : i32
    return %c0_i32, %c0_i32_0 : i32, i32
  }
  func.func @transform_2(%arg0: i32) -> (i32, i32) {
    %c0_i32 = arith.constant 0 : i32
    %c0_i32_0 = arith.constant 0 : i32
    %c0_i32_1 = arith.constant 0 : i32
    return %c0_i32, %c0_i32_0 : i32, i32
  }
  func.func @transform_3(%arg0: i32) -> (i32, i32) {
    %c0_i32 = arith.constant 0 : i32
    %c0_i32_0 = arith.constant 0 : i32
    %c0_i32_1 = arith.constant 0 : i32
    return %c0_i32, %c0_i32_0 : i32, i32
  }
  func.func @transform_4(%arg0: i32) -> (i32, i32) {
    %c0_i32 = arith.constant 0 : i32
    %c0_i32_0 = arith.constant 0 : i32
    %c0_i32_1 = arith.constant 0 : i32
    return %c0_i32, %c0_i32_0 : i32, i32
  }
  func.func @transform_5(%arg0: i32) -> (i32, i32) {
    %c0_i32 = arith.constant 0 : i32
    %c0_i32_0 = arith.constant 0 : i32
    return %arg0, %c0_i32 : i32, i32
  }
}

module attributes {stable_mosaic.version = 11 : i64} {
  func.func @_ln_matmul_kernel(%arg0: i32, %arg1: memref<48x128xf32, #tpu.memory_space<vmem>>, %arg2: memref<1x128xf32, #tpu.memory_space<vmem>>, %arg3: memref<1x128xf32, #tpu.memory_space<vmem>>, %arg4: memref<128x128xbf16, #tpu.memory_space<vmem>>, %arg5: memref<1x128xf32, #tpu.memory_space<vmem>>, %arg6: memref<48x128xbf16, #tpu.memory_space<vmem>>) attributes {dimension_semantics = [#tpu.dimension_semantics<parallel>], iteration_bounds = array<i64: 1>, scalar_prefetch = 0 : i64, scratch_operands = 0 : i64, tpu.core_type = #tpu.core_type<tc>, window_params = [{transform_indices = @transform_0, window_bounds = array<i64: 48, 128>}, {pipeline_mode = #tpu.pipeline_mode<synchronous>, transform_indices = @transform_1, window_bounds = array<i64: 1, 128>}, {pipeline_mode = #tpu.pipeline_mode<synchronous>, transform_indices = @transform_2, window_bounds = array<i64: 1, 128>}, {pipeline_mode = #tpu.pipeline_mode<synchronous>, transform_indices = @transform_3, window_bounds = array<i64: 128, 128>}, {pipeline_mode = #tpu.pipeline_mode<synchronous>, transform_indices = @transform_4, window_bounds = array<i64: 1, 128>}, {transform_indices = @transform_5, window_bounds = array<i64: 48, 128>}]} {
    %c0 = arith.constant 0 : index
    %c0_0 = arith.constant 0 : index
    %0 = vector.load %arg1[%c0, %c0_0] : memref<48x128xf32, #tpu.memory_space<vmem>>, vector<48x128xf32>
    %c0_1 = arith.constant 0 : index
    %c0_2 = arith.constant 0 : index
    %1 = vector.load %arg2[%c0_1, %c0_2] : memref<1x128xf32, #tpu.memory_space<vmem>>, vector<1x128xf32>
    %c0_3 = arith.constant 0 : index
    %c0_4 = arith.constant 0 : index
    %2 = vector.load %arg3[%c0_3, %c0_4] : memref<1x128xf32, #tpu.memory_space<vmem>>, vector<1x128xf32>
    %cst = arith.constant dense<0.000000e+00> : vector<48xf32>
    %3 = vector.multi_reduction <add>, %0, %cst [1] : vector<48x128xf32> to vector<48xf32>
    %4 = vector.shape_cast %3 : vector<48xf32> to vector<48x1xf32>
    %cst_5 = arith.constant 1.280000e+02 : f32
    %5 = vector.broadcast %cst_5 : f32 to vector<48x1xf32>
    %6 = arith.divf %4, %5 : vector<48x1xf32>
    %7 = vector.broadcast %6 : vector<48x1xf32> to vector<48x128xf32>
    %8 = arith.subf %0, %7 : vector<48x128xf32>
    %9 = arith.mulf %8, %8 : vector<48x128xf32>
    %cst_6 = arith.constant dense<0.000000e+00> : vector<48xf32>
    %10 = vector.multi_reduction <add>, %9, %cst_6 [1] : vector<48x128xf32> to vector<48xf32>
    %11 = vector.shape_cast %10 : vector<48xf32> to vector<48x1xf32>
    %cst_7 = arith.constant 1.280000e+02 : f32
    %12 = vector.broadcast %cst_7 : f32 to vector<48x1xf32>
    %13 = arith.divf %11, %12 : vector<48x1xf32>
    %14 = vector.broadcast %6 : vector<48x1xf32> to vector<48x128xf32>
    %15 = arith.subf %0, %14 : vector<48x128xf32>
    %cst_8 = arith.constant 9.99999974E-6 : f32
    %16 = vector.broadcast %cst_8 : f32 to vector<48x1xf32>
    %17 = arith.addf %13, %16 : vector<48x1xf32>
    %18 = math.rsqrt %17 : vector<48x1xf32>
    %19 = vector.broadcast %18 : vector<48x1xf32> to vector<48x128xf32>
    %20 = arith.mulf %15, %19 : vector<48x128xf32>
    %21 = vector.broadcast %1 : vector<1x128xf32> to vector<48x128xf32>
    %22 = arith.mulf %20, %21 : vector<48x128xf32>
    %23 = vector.broadcast %2 : vector<1x128xf32> to vector<48x128xf32>
    %24 = arith.addf %22, %23 : vector<48x128xf32>
    %25 = arith.truncf %24 : vector<48x128xf32> to vector<48x128xbf16>
    %c0_9 = arith.constant 0 : index
    %c0_10 = arith.constant 0 : index
    %26 = vector.load %arg4[%c0_9, %c0_10] : memref<128x128xbf16, #tpu.memory_space<vmem>>, vector<128x128xbf16>
    %cst_11 = arith.constant dense<0.000000e+00> : vector<48x128xf32>
    %27 = tpu.matmul %25, %26, %cst_11 {dimension_numbers = #tpu.dot_dimension_numbers<[1], [0], [0], [1], [0, 0, 1, 1], [], []>} : vector<48x128xbf16>, vector<128x128xbf16>, vector<48x128xf32> -> vector<48x128xf32>
    %c0_12 = arith.constant 0 : index
    %c0_13 = arith.constant 0 : index
    %28 = vector.load %arg5[%c0_12, %c0_13] : memref<1x128xf32, #tpu.memory_space<vmem>>, vector<1x128xf32>
    %29 = vector.broadcast %28 : vector<1x128xf32> to vector<48x128xf32>
    %30 = arith.addf %27, %29 : vector<48x128xf32>
    %31 = arith.truncf %30 : vector<48x128xf32> to vector<48x128xbf16>
    %c0_14 = arith.constant 0 : index
    %c0_15 = arith.constant 0 : index
    %32 = vector.load %arg6[%c0_14, %c0_15] : memref<48x128xbf16, #tpu.memory_space<vmem>>, vector<48x128xbf16>
    tpu.vector_store %arg6[%c0_14, %c0_15], %31 {strides = array<i32>} : memref<48x128xbf16, #tpu.memory_space<vmem>>, vector<48x128xbf16>,
    return
  }
  func.func @transform_0(%arg0: i32) -> (i32, i32) {
    %c0_i32 = arith.constant 0 : i32
    %c0_i32_0 = arith.constant 0 : i32
    return %arg0, %c0_i32 : i32, i32
  }
  func.func @transform_1(%arg0: i32) -> (i32, i32) {
    %c0_i32 = arith.constant 0 : i32
    %c0_i32_0 = arith.constant 0 : i32
    %c0_i32_1 = arith.constant 0 : i32
    return %c0_i32, %c0_i32_0 : i32, i32
  }
  func.func @transform_2(%arg0: i32) -> (i32, i32) {
    %c0_i32 = arith.constant 0 : i32
    %c0_i32_0 = arith.constant 0 : i32
    %c0_i32_1 = arith.constant 0 : i32
    return %c0_i32, %c0_i32_0 : i32, i32
  }
  func.func @transform_3(%arg0: i32) -> (i32, i32) {
    %c0_i32 = arith.constant 0 : i32
    %c0_i32_0 = arith.constant 0 : i32
    %c0_i32_1 = arith.constant 0 : i32
    return %c0_i32, %c0_i32_0 : i32, i32
  }
  func.func @transform_4(%arg0: i32) -> (i32, i32) {
    %c0_i32 = arith.constant 0 : i32
    %c0_i32_0 = arith.constant 0 : i32
    %c0_i32_1 = arith.constant 0 : i32
    return %c0_i32, %c0_i32_0 : i32, i32
  }
  func.func @transform_5(%arg0: i32) -> (i32, i32) {
    %c0_i32 = arith.constant 0 : i32
    %c0_i32_0 = arith.constant 0 : i32
    return %arg0, %c0_i32 : i32, i32
  }
}

module attributes {stable_mosaic.version = 11 : i64} {
  func.func @_attn_kernel(%arg0: i32, %arg1: i32, %arg2: i32, %arg3: memref<1x8x128xbf16, #tpu.memory_space<vmem>>, %arg4: memref<1x8x128xbf16, #tpu.memory_space<vmem>>, %arg5: memref<1x8x128xbf16, #tpu.memory_space<vmem>>, %arg6: memref<1x8x128xf32, #tpu.memory_space<vmem>>, %arg7: memref<128x128xbf16, #tpu.memory_space<vmem>>, %arg8: memref<1x128xf32, #tpu.memory_space<vmem>>, %arg9: memref<1x8x128xf32, #tpu.memory_space<vmem>>, %arg10: memref<8x4xf32, #tpu.memory_space<vmem>>, %arg11: memref<8x4xf32, #tpu.memory_space<vmem>>, %arg12: memref<8x128xf32, #tpu.memory_space<vmem>>) attributes {dimension_semantics = [#tpu.dimension_semantics<parallel>, #tpu.dimension_semantics<parallel>, #tpu.dimension_semantics<arbitrary>], iteration_bounds = array<i64: 2, 3, 3>, scalar_prefetch = 0 : i64, scratch_operands = 3 : i64, tpu.core_type = #tpu.core_type<tc>, window_params = [{transform_indices = @transform_0, window_bounds = array<i64: 1, 8, 128>}, {transform_indices = @transform_1, window_bounds = array<i64: 1, 8, 128>}, {transform_indices = @transform_2, window_bounds = array<i64: 1, 8, 128>}, {transform_indices = @transform_3, window_bounds = array<i64: 1, 8, 128>}, {pipeline_mode = #tpu.pipeline_mode<synchronous>, transform_indices = @transform_4, window_bounds = array<i64: 128, 128>}, {pipeline_mode = #tpu.pipeline_mode<synchronous>, transform_indices = @transform_5, window_bounds = array<i64: 1, 128>}, {transform_indices = @transform_6, window_bounds = array<i64: 1, 8, 128>}]} {
    %c0_i32 = arith.constant 0 : i32
    %0 = arith.cmpi eq, %arg2, %c0_i32 : i32
    %1 = arith.extui %0 : i1 to i32
    %c0_i32_0 = arith.constant 0 : i32
    %2 = arith.cmpi ne, %1, %c0_i32_0 : i32
    scf.if %2 {
      %cst_67 = arith.constant 0xFF800000 : f32
      %120 = vector.broadcast %cst_67 : f32 to vector<8x4xf32>
      %c0_68 = arith.constant 0 : index
      %c0_69 = arith.constant 0 : index
      %121 = vector.load %arg10[%c0_68, %c0_69] : memref<8x4xf32, #tpu.memory_space<vmem>>, vector<8x4xf32>
      tpu.vector_store %arg10[%c0_68, %c0_69], %120 {strides = array<i32>} : memref<8x4xf32, #tpu.memory_space<vmem>>, vector<8x4xf32>,
      %cst_70 = arith.constant 0.000000e+00 : f32
      %122 = vector.broadcast %cst_70 : f32 to vector<8x4xf32>
      %c0_71 = arith.constant 0 : index
      %c0_72 = arith.constant 0 : index
      %123 = vector.load %arg11[%c0_71, %c0_72] : memref<8x4xf32, #tpu.memory_space<vmem>>, vector<8x4xf32>
      tpu.vector_store %arg11[%c0_71, %c0_72], %122 {strides = array<i32>} : memref<8x4xf32, #tpu.memory_space<vmem>>, vector<8x4xf32>,
      %cst_73 = arith.constant 0.000000e+00 : f32
      %124 = vector.broadcast %cst_73 : f32 to vector<8x128xf32>
      %c0_74 = arith.constant 0 : index
      %c0_75 = arith.constant 0 : index
      %125 = vector.load %arg12[%c0_74, %c0_75] : memref<8x128xf32, #tpu.memory_space<vmem>>, vector<8x128xf32>
      tpu.vector_store %arg12[%c0_74, %c0_75], %124 {strides = array<i32>} : memref<8x128xf32, #tpu.memory_space<vmem>>, vector<8x128xf32>,
    } else {
    }
    %c0 = arith.constant 0 : index
    %c0_1 = arith.constant 0 : index
    %c0_2 = arith.constant 0 : index
    %3 = vector.load %arg3[%c0, %c0_1, %c0_2] : memref<1x8x128xbf16, #tpu.memory_space<vmem>>, vector<1x8x128xbf16>
    %4 = vector.shape_cast %3 : vector<1x8x128xbf16> to vector<8x128xbf16>
    %c0_3 = arith.constant 0 : index
    %c0_4 = arith.constant 0 : index
    %c0_5 = arith.constant 0 : index
    %5 = vector.load %arg4[%c0_3, %c0_4, %c0_5] : memref<1x8x128xbf16, #tpu.memory_space<vmem>>, vector<1x8x128xbf16>
    %6 = vector.shape_cast %5 : vector<1x8x128xbf16> to vector<8x128xbf16>
    %c0_6 = arith.constant 0 : index
    %c0_7 = arith.constant 0 : index
    %c0_8 = arith.constant 0 : index
    %7 = vector.load %arg5[%c0_6, %c0_7, %c0_8] : memref<1x8x128xbf16, #tpu.memory_space<vmem>>, vector<1x8x128xbf16>
    %8 = vector.shape_cast %7 : vector<1x8x128xbf16> to vector<8x128xbf16>
    %9 = vector.extract_strided_slice %4 {offsets = [0, 0], sizes = [8, 32], strides = [1, 1]} : vector<8x128xbf16> to vector<8x32xbf16>
    %10 = vector.extract_strided_slice %6 {offsets = [0, 0], sizes = [8, 32], strides = [1, 1]} : vector<8x128xbf16> to vector<8x32xbf16>
    %11 = vector.extract_strided_slice %8 {offsets = [0, 0], sizes = [8, 32], strides = [1, 1]} : vector<8x128xbf16> to vector<8x32xbf16>
    %cst = arith.constant dense<0.000000e+00> : vector<8x8xf32>
    %12 = tpu.matmul %9, %10, %cst {dimension_numbers = #tpu.dot_dimension_numbers<[1], [1], [0], [0], [0, 0, 1, 0], [], []>} : vector<8x32xbf16>, vector<8x32xbf16>, vector<8x8xf32> -> vector<8x8xf32>
    %c0_9 = arith.constant 0 : index
    %c0_10 = arith.constant 0 : index
    %13 = vector.load %arg10[%c0_9, %c0_10] : memref<8x4xf32, #tpu.memory_space<vmem>>, vector<8x1xf32>
    %cst_11 = arith.constant dense<0xFF800000> : vector<8xf32>
    %14 = vector.multi_reduction <maximumf>, %12, %cst_11 [1] : vector<8x8xf32> to vector<8xf32>
    %15 = vector.shape_cast %14 : vector<8xf32> to vector<8x1xf32>
    %16 = arith.maximumf %13, %15 : vector<8x1xf32>
    %17 = arith.subf %13, %16 : vector<8x1xf32>
    %18 = math.exp %17 : vector<8x1xf32>
    %19 = vector.broadcast %16 : vector<8x1xf32> to vector<8x8xf32>
    %20 = arith.subf %12, %19 : vector<8x8xf32>
    %21 = math.exp %20 : vector<8x8xf32>
    %c0_12 = arith.constant 0 : index
    %c0_13 = arith.constant 0 : index
    %22 = vector.load %arg11[%c0_12, %c0_13] : memref<8x4xf32, #tpu.memory_space<vmem>>, vector<8x1xf32>
    %23 = arith.mulf %18, %22 : vector<8x1xf32>
    %cst_14 = arith.constant dense<0.000000e+00> : vector<8xf32>
    %24 = vector.multi_reduction <add>, %21, %cst_14 [1] : vector<8x8xf32> to vector<8xf32>
    %25 = vector.shape_cast %24 : vector<8xf32> to vector<8x1xf32>
    %26 = arith.addf %23, %25 : vector<8x1xf32>
    %c0_15 = arith.constant 0 : index
    %c0_16 = arith.constant 0 : index
    %27 = vector.load %arg11[%c0_15, %c0_16] : memref<8x4xf32, #tpu.memory_space<vmem>>, vector<8x1xf32>
    tpu.vector_store %arg11[%c0_15, %c0_16], %26 {strides = array<i32>} : memref<8x4xf32, #tpu.memory_space<vmem>>, vector<8x1xf32>,
    %c0_17 = arith.constant 0 : index
    %c0_18 = arith.constant 0 : index
    %28 = vector.load %arg12[%c0_17, %c0_18] : memref<8x128xf32, #tpu.memory_space<vmem>>, vector<8x32xf32>
    %29 = vector.broadcast %18 : vector<8x1xf32> to vector<8x32xf32>
    %30 = arith.mulf %29, %28 : vector<8x32xf32>
    %31 = arith.truncf %21 : vector<8x8xf32> to vector<8x8xbf16>
    %cst_19 = arith.constant dense<0.000000e+00> : vector<8x32xf32>
    %32 = tpu.matmul %31, %11, %cst_19 {dimension_numbers = #tpu.dot_dimension_numbers<[1], [0], [0], [1], [0, 0, 1, 1], [], []>} : vector<8x8xbf16>, vector<8x32xbf16>, vector<8x32xf32> -> vector<8x32xf32>
    %33 = arith.addf %30, %32 : vector<8x32xf32>
    %c0_20 = arith.constant 0 : index
    %c0_21 = arith.constant 0 : index
    %34 = vector.load %arg12[%c0_20, %c0_21] : memref<8x128xf32, #tpu.memory_space<vmem>>, vector<8x32xf32>
    tpu.vector_store %arg12[%c0_20, %c0_21], %33 {strides = array<i32>} : memref<8x128xf32, #tpu.memory_space<vmem>>, vector<8x32xf32>,
    %c0_22 = arith.constant 0 : index
    %c0_23 = arith.constant 0 : index
    %35 = vector.load %arg10[%c0_22, %c0_23] : memref<8x4xf32, #tpu.memory_space<vmem>>, vector<8x1xf32>
    tpu.vector_store %arg10[%c0_22, %c0_23], %16 {strides = array<i32>} : memref<8x4xf32, #tpu.memory_space<vmem>>, vector<8x1xf32>,
    %36 = vector.extract_strided_slice %4 {offsets = [0, 32], sizes = [8, 32], strides = [1, 1]} : vector<8x128xbf16> to vector<8x32xbf16>
    %37 = vector.extract_strided_slice %6 {offsets = [0, 32], sizes = [8, 32], strides = [1, 1]} : vector<8x128xbf16> to vector<8x32xbf16>
    %38 = vector.extract_strided_slice %8 {offsets = [0, 32], sizes = [8, 32], strides = [1, 1]} : vector<8x128xbf16> to vector<8x32xbf16>
    %cst_24 = arith.constant dense<0.000000e+00> : vector<8x8xf32>
    %39 = tpu.matmul %36, %37, %cst_24 {dimension_numbers = #tpu.dot_dimension_numbers<[1], [1], [0], [0], [0, 0, 1, 0], [], []>} : vector<8x32xbf16>, vector<8x32xbf16>, vector<8x8xf32> -> vector<8x8xf32>
    %c0_25 = arith.constant 0 : index
    %c1 = arith.constant 1 : index
    %40 = vector.load %arg10[%c0_25, %c1] : memref<8x4xf32, #tpu.memory_space<vmem>>, vector<8x1xf32>
    %cst_26 = arith.constant dense<0xFF800000> : vector<8xf32>
    %41 = vector.multi_reduction <maximumf>, %39, %cst_26 [1] : vector<8x8xf32> to vector<8xf32>
    %42 = vector.shape_cast %41 : vector<8xf32> to vector<8x1xf32>
    %43 = arith.maximumf %40, %42 : vector<8x1xf32>
    %44 = arith.subf %40, %43 : vector<8x1xf32>
    %45 = math.exp %44 : vector<8x1xf32>
    %46 = vector.broadcast %43 : vector<8x1xf32> to vector<8x8xf32>
    %47 = arith.subf %39, %46 : vector<8x8xf32>
    %48 = math.exp %47 : vector<8x8xf32>
    %c0_27 = arith.constant 0 : index
    %c1_28 = arith.constant 1 : index
    %49 = vector.load %arg11[%c0_27, %c1_28] : memref<8x4xf32, #tpu.memory_space<vmem>>, vector<8x1xf32>
    %50 = arith.mulf %45, %49 : vector<8x1xf32>
    %cst_29 = arith.constant dense<0.000000e+00> : vector<8xf32>
    %51 = vector.multi_reduction <add>, %48, %cst_29 [1] : vector<8x8xf32> to vector<8xf32>
    %52 = vector.shape_cast %51 : vector<8xf32> to vector<8x1xf32>
    %53 = arith.addf %50, %52 : vector<8x1xf32>
    %c0_30 = arith.constant 0 : index
    %c1_31 = arith.constant 1 : index
    %54 = vector.load %arg11[%c0_30, %c1_31] : memref<8x4xf32, #tpu.memory_space<vmem>>, vector<8x1xf32>
    tpu.vector_store %arg11[%c0_30, %c1_31], %53 {strides = array<i32>} : memref<8x4xf32, #tpu.memory_space<vmem>>, vector<8x1xf32>,
    %c0_32 = arith.constant 0 : index
    %c32 = arith.constant 32 : index
    %55 = vector.load %arg12[%c0_32, %c32] : memref<8x128xf32, #tpu.memory_space<vmem>>, vector<8x32xf32>
    %56 = vector.broadcast %45 : vector<8x1xf32> to vector<8x32xf32>
    %57 = arith.mulf %56, %55 : vector<8x32xf32>
    %58 = arith.truncf %48 : vector<8x8xf32> to vector<8x8xbf16>
    %cst_33 = arith.constant dense<0.000000e+00> : vector<8x32xf32>
    %59 = tpu.matmul %58, %38, %cst_33 {dimension_numbers = #tpu.dot_dimension_numbers<[1], [0], [0], [1], [0, 0, 1, 1], [], []>} : vector<8x8xbf16>, vector<8x32xbf16>, vector<8x32xf32> -> vector<8x32xf32>
    %60 = arith.addf %57, %59 : vector<8x32xf32>
    %c0_34 = arith.constant 0 : index
    %c32_35 = arith.constant 32 : index
    %61 = vector.load %arg12[%c0_34, %c32_35] : memref<8x128xf32, #tpu.memory_space<vmem>>, vector<8x32xf32>
    tpu.vector_store %arg12[%c0_34, %c32_35], %60 {strides = array<i32>} : memref<8x128xf32, #tpu.memory_space<vmem>>, vector<8x32xf32>,
    %c0_36 = arith.constant 0 : index
    %c1_37 = arith.constant 1 : index
    %62 = vector.load %arg10[%c0_36, %c1_37] : memref<8x4xf32, #tpu.memory_space<vmem>>, vector<8x1xf32>
    tpu.vector_store %arg10[%c0_36, %c1_37], %43 {strides = array<i32>} : memref<8x4xf32, #tpu.memory_space<vmem>>, vector<8x1xf32>,
    %63 = vector.extract_strided_slice %4 {offsets = [0, 64], sizes = [8, 32], strides = [1, 1]} : vector<8x128xbf16> to vector<8x32xbf16>
    %64 = vector.extract_strided_slice %6 {offsets = [0, 64], sizes = [8, 32], strides = [1, 1]} : vector<8x128xbf16> to vector<8x32xbf16>
    %65 = vector.extract_strided_slice %8 {offsets = [0, 64], sizes = [8, 32], strides = [1, 1]} : vector<8x128xbf16> to vector<8x32xbf16>
    %cst_38 = arith.constant dense<0.000000e+00> : vector<8x8xf32>
    %66 = tpu.matmul %63, %64, %cst_38 {dimension_numbers = #tpu.dot_dimension_numbers<[1], [1], [0], [0], [0, 0, 1, 0], [], []>} : vector<8x32xbf16>, vector<8x32xbf16>, vector<8x8xf32> -> vector<8x8xf32>
    %c0_39 = arith.constant 0 : index
    %c2 = arith.constant 2 : index
    %67 = vector.load %arg10[%c0_39, %c2] : memref<8x4xf32, #tpu.memory_space<vmem>>, vector<8x1xf32>
    %cst_40 = arith.constant dense<0xFF800000> : vector<8xf32>
    %68 = vector.multi_reduction <maximumf>, %66, %cst_40 [1] : vector<8x8xf32> to vector<8xf32>
    %69 = vector.shape_cast %68 : vector<8xf32> to vector<8x1xf32>
    %70 = arith.maximumf %67, %69 : vector<8x1xf32>
    %71 = arith.subf %67, %70 : vector<8x1xf32>
    %72 = math.exp %71 : vector<8x1xf32>
    %73 = vector.broadcast %70 : vector<8x1xf32> to vector<8x8xf32>
    %74 = arith.subf %66, %73 : vector<8x8xf32>
    %75 = math.exp %74 : vector<8x8xf32>
    %c0_41 = arith.constant 0 : index
    %c2_42 = arith.constant 2 : index
    %76 = vector.load %arg11[%c0_41, %c2_42] : memref<8x4xf32, #tpu.memory_space<vmem>>, vector<8x1xf32>
    %77 = arith.mulf %72, %76 : vector<8x1xf32>
    %cst_43 = arith.constant dense<0.000000e+00> : vector<8xf32>
    %78 = vector.multi_reduction <add>, %75, %cst_43 [1] : vector<8x8xf32> to vector<8xf32>
    %79 = vector.shape_cast %78 : vector<8xf32> to vector<8x1xf32>
    %80 = arith.addf %77, %79 : vector<8x1xf32>
    %c0_44 = arith.constant 0 : index
    %c2_45 = arith.constant 2 : index
    %81 = vector.load %arg11[%c0_44, %c2_45] : memref<8x4xf32, #tpu.memory_space<vmem>>, vector<8x1xf32>
    tpu.vector_store %arg11[%c0_44, %c2_45], %80 {strides = array<i32>} : memref<8x4xf32, #tpu.memory_space<vmem>>, vector<8x1xf32>,
    %c0_46 = arith.constant 0 : index
    %c64 = arith.constant 64 : index
    %82 = vector.load %arg12[%c0_46, %c64] : memref<8x128xf32, #tpu.memory_space<vmem>>, vector<8x32xf32>
    %83 = vector.broadcast %72 : vector<8x1xf32> to vector<8x32xf32>
    %84 = arith.mulf %83, %82 : vector<8x32xf32>
    %85 = arith.truncf %75 : vector<8x8xf32> to vector<8x8xbf16>
    %cst_47 = arith.constant dense<0.000000e+00> : vector<8x32xf32>
    %86 = tpu.matmul %85, %65, %cst_47 {dimension_numbers = #tpu.dot_dimension_numbers<[1], [0], [0], [1], [0, 0, 1, 1], [], []>} : vector<8x8xbf16>, vector<8x32xbf16>, vector<8x32xf32> -> vector<8x32xf32>
    %87 = arith.addf %84, %86 : vector<8x32xf32>
    %c0_48 = arith.constant 0 : index
    %c64_49 = arith.constant 64 : index
    %88 = vector.load %arg12[%c0_48, %c64_49] : memref<8x128xf32, #tpu.memory_space<vmem>>, vector<8x32xf32>
    tpu.vector_store %arg12[%c0_48, %c64_49], %87 {strides = array<i32>} : memref<8x128xf32, #tpu.memory_space<vmem>>, vector<8x32xf32>,
    %c0_50 = arith.constant 0 : index
    %c2_51 = arith.constant 2 : index
    %89 = vector.load %arg10[%c0_50, %c2_51] : memref<8x4xf32, #tpu.memory_space<vmem>>, vector<8x1xf32>
    tpu.vector_store %arg10[%c0_50, %c2_51], %70 {strides = array<i32>} : memref<8x4xf32, #tpu.memory_space<vmem>>, vector<8x1xf32>,
    %90 = vector.extract_strided_slice %4 {offsets = [0, 96], sizes = [8, 32], strides = [1, 1]} : vector<8x128xbf16> to vector<8x32xbf16>
    %91 = vector.extract_strided_slice %6 {offsets = [0, 96], sizes = [8, 32], strides = [1, 1]} : vector<8x128xbf16> to vector<8x32xbf16>
    %92 = vector.extract_strided_slice %8 {offsets = [0, 96], sizes = [8, 32], strides = [1, 1]} : vector<8x128xbf16> to vector<8x32xbf16>
    %cst_52 = arith.constant dense<0.000000e+00> : vector<8x8xf32>
    %93 = tpu.matmul %90, %91, %cst_52 {dimension_numbers = #tpu.dot_dimension_numbers<[1], [1], [0], [0], [0, 0, 1, 0], [], []>} : vector<8x32xbf16>, vector<8x32xbf16>, vector<8x8xf32> -> vector<8x8xf32>
    %c0_53 = arith.constant 0 : index
    %c3 = arith.constant 3 : index
    %94 = vector.load %arg10[%c0_53, %c3] : memref<8x4xf32, #tpu.memory_space<vmem>>, vector<8x1xf32>
    %cst_54 = arith.constant dense<0xFF800000> : vector<8xf32>
    %95 = vector.multi_reduction <maximumf>, %93, %cst_54 [1] : vector<8x8xf32> to vector<8xf32>
    %96 = vector.shape_cast %95 : vector<8xf32> to vector<8x1xf32>
    %97 = arith.maximumf %94, %96 : vector<8x1xf32>
    %98 = arith.subf %94, %97 : vector<8x1xf32>
    %99 = math.exp %98 : vector<8x1xf32>
    %100 = vector.broadcast %97 : vector<8x1xf32> to vector<8x8xf32>
    %101 = arith.subf %93, %100 : vector<8x8xf32>
    %102 = math.exp %101 : vector<8x8xf32>
    %c0_55 = arith.constant 0 : index
    %c3_56 = arith.constant 3 : index
    %103 = vector.load %arg11[%c0_55, %c3_56] : memref<8x4xf32, #tpu.memory_space<vmem>>, vector<8x1xf32>
    %104 = arith.mulf %99, %103 : vector<8x1xf32>
    %cst_57 = arith.constant dense<0.000000e+00> : vector<8xf32>
    %105 = vector.multi_reduction <add>, %102, %cst_57 [1] : vector<8x8xf32> to vector<8xf32>
    %106 = vector.shape_cast %105 : vector<8xf32> to vector<8x1xf32>
    %107 = arith.addf %104, %106 : vector<8x1xf32>
    %c0_58 = arith.constant 0 : index
    %c3_59 = arith.constant 3 : index
    %108 = vector.load %arg11[%c0_58, %c3_59] : memref<8x4xf32, #tpu.memory_space<vmem>>, vector<8x1xf32>
    tpu.vector_store %arg11[%c0_58, %c3_59], %107 {strides = array<i32>} : memref<8x4xf32, #tpu.memory_space<vmem>>, vector<8x1xf32>,
    %c0_60 = arith.constant 0 : index
    %c96 = arith.constant 96 : index
    %109 = vector.load %arg12[%c0_60, %c96] : memref<8x128xf32, #tpu.memory_space<vmem>>, vector<8x32xf32>
    %110 = vector.broadcast %99 : vector<8x1xf32> to vector<8x32xf32>
    %111 = arith.mulf %110, %109 : vector<8x32xf32>
    %112 = arith.truncf %102 : vector<8x8xf32> to vector<8x8xbf16>
    %cst_61 = arith.constant dense<0.000000e+00> : vector<8x32xf32>
    %113 = tpu.matmul %112, %92, %cst_61 {dimension_numbers = #tpu.dot_dimension_numbers<[1], [0], [0], [1], [0, 0, 1, 1], [], []>} : vector<8x8xbf16>, vector<8x32xbf16>, vector<8x32xf32> -> vector<8x32xf32>
    %114 = arith.addf %111, %113 : vector<8x32xf32>
    %c0_62 = arith.constant 0 : index
    %c96_63 = arith.constant 96 : index
    %115 = vector.load %arg12[%c0_62, %c96_63] : memref<8x128xf32, #tpu.memory_space<vmem>>, vector<8x32xf32>
    tpu.vector_store %arg12[%c0_62, %c96_63], %114 {strides = array<i32>} : memref<8x128xf32, #tpu.memory_space<vmem>>, vector<8x32xf32>,
    %c0_64 = arith.constant 0 : index
    %c3_65 = arith.constant 3 : index
    %116 = vector.load %arg10[%c0_64, %c3_65] : memref<8x4xf32, #tpu.memory_space<vmem>>, vector<8x1xf32>
    tpu.vector_store %arg10[%c0_64, %c3_65], %97 {strides = array<i32>} : memref<8x4xf32, #tpu.memory_space<vmem>>, vector<8x1xf32>,
    %c2_i32 = arith.constant 2 : i32
    %117 = arith.cmpi eq, %arg2, %c2_i32 : i32
    %118 = arith.extui %117 : i1 to i32
    %c0_i32_66 = arith.constant 0 : i32
    %119 = arith.cmpi ne, %118, %c0_i32_66 : i32
    scf.if %119 {
      %c0_67 = arith.constant 0 : index
      %c0_68 = arith.constant 0 : index
      %120 = vector.load %arg11[%c0_67, %c0_68] : memref<8x4xf32, #tpu.memory_space<vmem>>, vector<8x4xf32>
      %121 = tpu.reciprocal %120 {approx = true} : vector<8x4xf32> -> vector<8x4xf32>
      %122 = vector.extract_strided_slice %121 {offsets = [0, 0], sizes = [8, 1], strides = [1, 1]} : vector<8x4xf32> to vector<8x1xf32>
      %123 = vector.shape_cast %122 : vector<8x1xf32> to vector<8x1xf32>
      %124 = vector.broadcast %123 : vector<8x1xf32> to vector<8x32xf32>
      %125 = vector.extract_strided_slice %121 {offsets = [0, 1], sizes = [8, 1], strides = [1, 1]} : vector<8x4xf32> to vector<8x1xf32>
      %126 = vector.shape_cast %125 : vector<8x1xf32> to vector<8x1xf32>
      %127 = vector.broadcast %126 : vector<8x1xf32> to vector<8x32xf32>
      %128 = vector.extract_strided_slice %121 {offsets = [0, 2], sizes = [8, 1], strides = [1, 1]} : vector<8x4xf32> to vector<8x1xf32>
      %129 = vector.shape_cast %128 : vector<8x1xf32> to vector<8x1xf32>
      %130 = vector.broadcast %129 : vector<8x1xf32> to vector<8x32xf32>
      %131 = vector.extract_strided_slice %121 {offsets = [0, 3], sizes = [8, 1], strides = [1, 1]} : vector<8x4xf32> to vector<8x1xf32>
      %132 = vector.shape_cast %131 : vector<8x1xf32> to vector<8x1xf32>
      %133 = vector.broadcast %132 : vector<8x1xf32> to vector<8x32xf32>
      %134 = tpu.concatenate %124, %127, %130, %133 in 1 : vector<8x32xf32>, vector<8x32xf32>, vector<8x32xf32>, vector<8x32xf32> -> vector<8x128xf32>
      %c0_69 = arith.constant 0 : index
      %c0_70 = arith.constant 0 : index
      %135 = vector.load %arg12[%c0_69, %c0_70] : memref<8x128xf32, #tpu.memory_space<vmem>>, vector<8x128xf32>
      %136 = arith.mulf %135, %134 : vector<8x128xf32>
      %137 = arith.truncf %136 : vector<8x128xf32> to vector<8x128xbf16>
      %c0_71 = arith.constant 0 : index
      %c0_72 = arith.constant 0 : index
      %138 = vector.load %arg7[%c0_71, %c0_72] : memref<128x128xbf16, #tpu.memory_space<vmem>>, vector<128x128xbf16>
      %cst_73 = arith.constant dense<0.000000e+00> : vector<8x128xf32>
      %139 = tpu.matmul %137, %138, %cst_73 {dimension_numbers = #tpu.dot_dimension_numbers<[1], [0], [0], [1], [0, 0, 1, 1], [], []>} : vector<8x128xbf16>, vector<128x128xbf16>, vector<8x128xf32> -> vector<8x128xf32>
      %c0_74 = arith.constant 0 : index
      %c0_75 = arith.constant 0 : index
      %140 = vector.load %arg8[%c0_74, %c0_75] : memref<1x128xf32, #tpu.memory_space<vmem>>, vector<1x128xf32>
      %141 = vector.broadcast %140 : vector<1x128xf32> to vector<8x128xf32>
      %142 = arith.addf %139, %141 : vector<8x128xf32>
      %c0_76 = arith.constant 0 : index
      %c0_77 = arith.constant 0 : index
      %c0_78 = arith.constant 0 : index
      %143 = vector.load %arg6[%c0_76, %c0_77, %c0_78] : memref<1x8x128xf32, #tpu.memory_space<vmem>>, vector<1x8x128xf32>
      %144 = vector.shape_cast %143 : vector<1x8x128xf32> to vector<8x128xf32>
      %145 = arith.addf %142, %144 : vector<8x128xf32>
      %c0_79 = arith.constant 0 : index
      %c0_80 = arith.constant 0 : index
      %c0_81 = arith.constant 0 : index
      %146 = vector.load %arg9[%c0_79, %c0_80, %c0_81] : memref<1x8x128xf32, #tpu.memory_space<vmem>>, vector<1x8x128xf32>
      %147 = vector.shape_cast %146 : vector<1x8x128xf32> to vector<8x128xf32>
      %148 = vector.shape_cast %145 : vector<8x128xf32> to vector<1x8x128xf32>
      tpu.vector_store %arg9[%c0_79, %c0_80, %c0_81], %148 {strides = array<i32>} : memref<1x8x128xf32, #tpu.memory_space<vmem>>, vector<1x8x128xf32>,
    } else {
    }
    return
  }
  func.func @transform_0(%arg0: i32, %arg1: i32, %arg2: i32) -> (i32, i32, i32) {
    %c0_i32 = arith.constant 0 : i32
    %c0_i32_0 = arith.constant 0 : i32
    return %arg0, %arg1, %c0_i32 : i32, i32, i32
  }
  func.func @transform_1(%arg0: i32, %arg1: i32, %arg2: i32) -> (i32, i32, i32) {
    %c1_i32 = arith.constant 1 : i32
    %c0_i32 = arith.constant 0 : i32
    return %arg0, %arg2, %c1_i32 : i32, i32, i32
  }
  func.func @transform_2(%arg0: i32, %arg1: i32, %arg2: i32) -> (i32, i32, i32) {
    %c2_i32 = arith.constant 2 : i32
    %c0_i32 = arith.constant 0 : i32
    return %arg0, %arg2, %c2_i32 : i32, i32, i32
  }
  func.func @transform_3(%arg0: i32, %arg1: i32, %arg2: i32) -> (i32, i32, i32) {
    %c0_i32 = arith.constant 0 : i32
    %c0_i32_0 = arith.constant 0 : i32
    return %arg0, %arg1, %c0_i32 : i32, i32, i32
  }
  func.func @transform_4(%arg0: i32, %arg1: i32, %arg2: i32) -> (i32, i32) {
    %c0_i32 = arith.constant 0 : i32
    %c0_i32_0 = arith.constant 0 : i32
    %c0_i32_1 = arith.constant 0 : i32
    return %c0_i32, %c0_i32_0 : i32, i32
  }
  func.func @transform_5(%arg0: i32, %arg1: i32, %arg2: i32) -> (i32, i32) {
    %c0_i32 = arith.constant 0 : i32
    %c0_i32_0 = arith.constant 0 : i32
    %c0_i32_1 = arith.constant 0 : i32
    return %c0_i32, %c0_i32_0 : i32, i32
  }
  func.func @transform_6(%arg0: i32, %arg1: i32, %arg2: i32) -> (i32, i32, i32) {
    %c0_i32 = arith.constant 0 : i32
    %c0_i32_0 = arith.constant 0 : i32
    return %arg0, %arg1, %c0_i32 : i32, i32, i32
  }
}

module attributes {stable_mosaic.version = 11 : i64} {
  func.func @_ln_matmul_kernel(%arg0: i32, %arg1: memref<48x128xf32, #tpu.memory_space<vmem>>, %arg2: memref<1x128xf32, #tpu.memory_space<vmem>>, %arg3: memref<1x128xf32, #tpu.memory_space<vmem>>, %arg4: memref<128x256xbf16, #tpu.memory_space<vmem>>, %arg5: memref<1x256xf32, #tpu.memory_space<vmem>>, %arg6: memref<48x256xbf16, #tpu.memory_space<vmem>>) attributes {dimension_semantics = [#tpu.dimension_semantics<parallel>], iteration_bounds = array<i64: 1>, scalar_prefetch = 0 : i64, scratch_operands = 0 : i64, tpu.core_type = #tpu.core_type<tc>, window_params = [{transform_indices = @transform_0, window_bounds = array<i64: 48, 128>}, {pipeline_mode = #tpu.pipeline_mode<synchronous>, transform_indices = @transform_1, window_bounds = array<i64: 1, 128>}, {pipeline_mode = #tpu.pipeline_mode<synchronous>, transform_indices = @transform_2, window_bounds = array<i64: 1, 128>}, {pipeline_mode = #tpu.pipeline_mode<synchronous>, transform_indices = @transform_3, window_bounds = array<i64: 128, 256>}, {pipeline_mode = #tpu.pipeline_mode<synchronous>, transform_indices = @transform_4, window_bounds = array<i64: 1, 256>}, {transform_indices = @transform_5, window_bounds = array<i64: 48, 256>}]} {
    %c0 = arith.constant 0 : index
    %c0_0 = arith.constant 0 : index
    %0 = vector.load %arg1[%c0, %c0_0] : memref<48x128xf32, #tpu.memory_space<vmem>>, vector<48x128xf32>
    %c0_1 = arith.constant 0 : index
    %c0_2 = arith.constant 0 : index
    %1 = vector.load %arg2[%c0_1, %c0_2] : memref<1x128xf32, #tpu.memory_space<vmem>>, vector<1x128xf32>
    %c0_3 = arith.constant 0 : index
    %c0_4 = arith.constant 0 : index
    %2 = vector.load %arg3[%c0_3, %c0_4] : memref<1x128xf32, #tpu.memory_space<vmem>>, vector<1x128xf32>
    %cst = arith.constant dense<0.000000e+00> : vector<48xf32>
    %3 = vector.multi_reduction <add>, %0, %cst [1] : vector<48x128xf32> to vector<48xf32>
    %4 = vector.shape_cast %3 : vector<48xf32> to vector<48x1xf32>
    %cst_5 = arith.constant 1.280000e+02 : f32
    %5 = vector.broadcast %cst_5 : f32 to vector<48x1xf32>
    %6 = arith.divf %4, %5 : vector<48x1xf32>
    %7 = vector.broadcast %6 : vector<48x1xf32> to vector<48x128xf32>
    %8 = arith.subf %0, %7 : vector<48x128xf32>
    %9 = arith.mulf %8, %8 : vector<48x128xf32>
    %cst_6 = arith.constant dense<0.000000e+00> : vector<48xf32>
    %10 = vector.multi_reduction <add>, %9, %cst_6 [1] : vector<48x128xf32> to vector<48xf32>
    %11 = vector.shape_cast %10 : vector<48xf32> to vector<48x1xf32>
    %cst_7 = arith.constant 1.280000e+02 : f32
    %12 = vector.broadcast %cst_7 : f32 to vector<48x1xf32>
    %13 = arith.divf %11, %12 : vector<48x1xf32>
    %14 = vector.broadcast %6 : vector<48x1xf32> to vector<48x128xf32>
    %15 = arith.subf %0, %14 : vector<48x128xf32>
    %cst_8 = arith.constant 9.99999974E-6 : f32
    %16 = vector.broadcast %cst_8 : f32 to vector<48x1xf32>
    %17 = arith.addf %13, %16 : vector<48x1xf32>
    %18 = math.rsqrt %17 : vector<48x1xf32>
    %19 = vector.broadcast %18 : vector<48x1xf32> to vector<48x128xf32>
    %20 = arith.mulf %15, %19 : vector<48x128xf32>
    %21 = vector.broadcast %1 : vector<1x128xf32> to vector<48x128xf32>
    %22 = arith.mulf %20, %21 : vector<48x128xf32>
    %23 = vector.broadcast %2 : vector<1x128xf32> to vector<48x128xf32>
    %24 = arith.addf %22, %23 : vector<48x128xf32>
    %25 = arith.truncf %24 : vector<48x128xf32> to vector<48x128xbf16>
    %c0_9 = arith.constant 0 : index
    %c0_10 = arith.constant 0 : index
    %26 = vector.load %arg4[%c0_9, %c0_10] : memref<128x256xbf16, #tpu.memory_space<vmem>>, vector<128x256xbf16>
    %cst_11 = arith.constant dense<0.000000e+00> : vector<48x256xf32>
    %27 = tpu.matmul %25, %26, %cst_11 {dimension_numbers = #tpu.dot_dimension_numbers<[1], [0], [0], [1], [0, 0, 1, 1], [], []>} : vector<48x128xbf16>, vector<128x256xbf16>, vector<48x256xf32> -> vector<48x256xf32>
    %c0_12 = arith.constant 0 : index
    %c0_13 = arith.constant 0 : index
    %28 = vector.load %arg5[%c0_12, %c0_13] : memref<1x256xf32, #tpu.memory_space<vmem>>, vector<1x256xf32>
    %29 = vector.broadcast %28 : vector<1x256xf32> to vector<48x256xf32>
    %30 = arith.addf %27, %29 : vector<48x256xf32>
    %cst_14 = arith.constant 5.000000e-01 : f32
    %31 = vector.broadcast %cst_14 : f32 to vector<48x256xf32>
    %32 = arith.mulf %31, %30 : vector<48x256xf32>
    %cst_15 = arith.constant 0.707106769 : f32
    %33 = vector.broadcast %cst_15 : f32 to vector<48x256xf32>
    %34 = arith.mulf %30, %33 : vector<48x256xf32>
    %35 = math.erf %34 : vector<48x256xf32>
    %cst_16 = arith.constant 1.000000e+00 : f32
    %36 = vector.broadcast %cst_16 : f32 to vector<48x256xf32>
    %37 = arith.addf %36, %35 : vector<48x256xf32>
    %38 = arith.mulf %32, %37 : vector<48x256xf32>
    %39 = arith.truncf %38 : vector<48x256xf32> to vector<48x256xbf16>
    %c0_17 = arith.constant 0 : index
    %c0_18 = arith.constant 0 : index
    %40 = vector.load %arg6[%c0_17, %c0_18] : memref<48x256xbf16, #tpu.memory_space<vmem>>, vector<48x256xbf16>
    tpu.vector_store %arg6[%c0_17, %c0_18], %39 {strides = array<i32>} : memref<48x256xbf16, #tpu.memory_space<vmem>>, vector<48x256xbf16>,
    return
  }
  func.func @transform_0(%arg0: i32) -> (i32, i32) {
    %c0_i32 = arith.constant 0 : i32
    %c0_i32_0 = arith.constant 0 : i32
    return %arg0, %c0_i32 : i32, i32
  }
  func.func @transform_1(%arg0: i32) -> (i32, i32) {
    %c0_i32 = arith.constant 0 : i32
    %c0_i32_0 = arith.constant 0 : i32
    %c0_i32_1 = arith.constant 0 : i32
    return %c0_i32, %c0_i32_0 : i32, i32
  }
  func.func @transform_2(%arg0: i32) -> (i32, i32) {
    %c0_i32 = arith.constant 0 : i32
    %c0_i32_0 = arith.constant 0 : i32
    %c0_i32_1 = arith.constant 0 : i32
    return %c0_i32, %c0_i32_0 : i32, i32
  }
  func.func @transform_3(%arg0: i32) -> (i32, i32) {
    %c0_i32 = arith.constant 0 : i32
    %c0_i32_0 = arith.constant 0 : i32
    %c0_i32_1 = arith.constant 0 : i32
    return %c0_i32, %c0_i32_0 : i32, i32
  }
  func.func @transform_4(%arg0: i32) -> (i32, i32) {
    %c0_i32 = arith.constant 0 : i32
    %c0_i32_0 = arith.constant 0 : i32
    %c0_i32_1 = arith.constant 0 : i32
    return %c0_i32, %c0_i32_0 : i32, i32
  }
  func.func @transform_5(%arg0: i32) -> (i32, i32) {
    %c0_i32 = arith.constant 0 : i32
    %c0_i32_0 = arith.constant 0 : i32
    return %arg0, %c0_i32 : i32, i32
  }
}

module attributes {stable_mosaic.version = 11 : i64} {
  func.func @_attn_kernel(%arg0: i32, %arg1: i32, %arg2: i32, %arg3: memref<1x8x128xbf16, #tpu.memory_space<vmem>>, %arg4: memref<1x16x128xbf16, #tpu.memory_space<vmem>>, %arg5: memref<1x16x128xbf16, #tpu.memory_space<vmem>>, %arg6: memref<1x8x128xf32, #tpu.memory_space<vmem>>, %arg7: memref<128x128xbf16, #tpu.memory_space<vmem>>, %arg8: memref<1x128xf32, #tpu.memory_space<vmem>>, %arg9: memref<1x8x128xf32, #tpu.memory_space<vmem>>, %arg10: memref<8x4xf32, #tpu.memory_space<vmem>>, %arg11: memref<8x4xf32, #tpu.memory_space<vmem>>, %arg12: memref<8x128xf32, #tpu.memory_space<vmem>>) attributes {dimension_semantics = [#tpu.dimension_semantics<parallel>, #tpu.dimension_semantics<parallel>, #tpu.dimension_semantics<arbitrary>], iteration_bounds = array<i64: 2, 3, 3>, scalar_prefetch = 0 : i64, scratch_operands = 3 : i64, tpu.core_type = #tpu.core_type<tc>, window_params = [{transform_indices = @transform_0, window_bounds = array<i64: 1, 8, 128>}, {transform_indices = @transform_1, window_bounds = array<i64: 1, 16, 128>}, {transform_indices = @transform_2, window_bounds = array<i64: 1, 16, 128>}, {transform_indices = @transform_3, window_bounds = array<i64: 1, 8, 128>}, {pipeline_mode = #tpu.pipeline_mode<synchronous>, transform_indices = @transform_4, window_bounds = array<i64: 128, 128>}, {pipeline_mode = #tpu.pipeline_mode<synchronous>, transform_indices = @transform_5, window_bounds = array<i64: 1, 128>}, {transform_indices = @transform_6, window_bounds = array<i64: 1, 8, 128>}]} {
    %c0_i32 = arith.constant 0 : i32
    %0 = arith.cmpi eq, %arg2, %c0_i32 : i32
    %1 = arith.extui %0 : i1 to i32
    %c0_i32_0 = arith.constant 0 : i32
    %2 = arith.cmpi ne, %1, %c0_i32_0 : i32
    scf.if %2 {
      %cst_67 = arith.constant 0xFF800000 : f32
      %120 = vector.broadcast %cst_67 : f32 to vector<8x4xf32>
      %c0_68 = arith.constant 0 : index
      %c0_69 = arith.constant 0 : index
      %121 = vector.load %arg10[%c0_68, %c0_69] : memref<8x4xf32, #tpu.memory_space<vmem>>, vector<8x4xf32>
      tpu.vector_store %arg10[%c0_68, %c0_69], %120 {strides = array<i32>} : memref<8x4xf32, #tpu.memory_space<vmem>>, vector<8x4xf32>,
      %cst_70 = arith.constant 0.000000e+00 : f32
      %122 = vector.broadcast %cst_70 : f32 to vector<8x4xf32>
      %c0_71 = arith.constant 0 : index
      %c0_72 = arith.constant 0 : index
      %123 = vector.load %arg11[%c0_71, %c0_72] : memref<8x4xf32, #tpu.memory_space<vmem>>, vector<8x4xf32>
      tpu.vector_store %arg11[%c0_71, %c0_72], %122 {strides = array<i32>} : memref<8x4xf32, #tpu.memory_space<vmem>>, vector<8x4xf32>,
      %cst_73 = arith.constant 0.000000e+00 : f32
      %124 = vector.broadcast %cst_73 : f32 to vector<8x128xf32>
      %c0_74 = arith.constant 0 : index
      %c0_75 = arith.constant 0 : index
      %125 = vector.load %arg12[%c0_74, %c0_75] : memref<8x128xf32, #tpu.memory_space<vmem>>, vector<8x128xf32>
      tpu.vector_store %arg12[%c0_74, %c0_75], %124 {strides = array<i32>} : memref<8x128xf32, #tpu.memory_space<vmem>>, vector<8x128xf32>,
    } else {
    }
    %c0 = arith.constant 0 : index
    %c0_1 = arith.constant 0 : index
    %c0_2 = arith.constant 0 : index
    %3 = vector.load %arg3[%c0, %c0_1, %c0_2] : memref<1x8x128xbf16, #tpu.memory_space<vmem>>, vector<1x8x128xbf16>
    %4 = vector.shape_cast %3 : vector<1x8x128xbf16> to vector<8x128xbf16>
    %c0_3 = arith.constant 0 : index
    %c0_4 = arith.constant 0 : index
    %c0_5 = arith.constant 0 : index
    %5 = vector.load %arg4[%c0_3, %c0_4, %c0_5] : memref<1x16x128xbf16, #tpu.memory_space<vmem>>, vector<1x16x128xbf16>
    %6 = vector.shape_cast %5 : vector<1x16x128xbf16> to vector<16x128xbf16>
    %c0_6 = arith.constant 0 : index
    %c0_7 = arith.constant 0 : index
    %c0_8 = arith.constant 0 : index
    %7 = vector.load %arg5[%c0_6, %c0_7, %c0_8] : memref<1x16x128xbf16, #tpu.memory_space<vmem>>, vector<1x16x128xbf16>
    %8 = vector.shape_cast %7 : vector<1x16x128xbf16> to vector<16x128xbf16>
    %9 = vector.extract_strided_slice %4 {offsets = [0, 0], sizes = [8, 32], strides = [1, 1]} : vector<8x128xbf16> to vector<8x32xbf16>
    %10 = vector.extract_strided_slice %6 {offsets = [0, 0], sizes = [16, 32], strides = [1, 1]} : vector<16x128xbf16> to vector<16x32xbf16>
    %11 = vector.extract_strided_slice %8 {offsets = [0, 0], sizes = [16, 32], strides = [1, 1]} : vector<16x128xbf16> to vector<16x32xbf16>
    %cst = arith.constant dense<0.000000e+00> : vector<8x16xf32>
    %12 = tpu.matmul %9, %10, %cst {dimension_numbers = #tpu.dot_dimension_numbers<[1], [1], [0], [0], [0, 0, 1, 0], [], []>} : vector<8x32xbf16>, vector<16x32xbf16>, vector<8x16xf32> -> vector<8x16xf32>
    %c0_9 = arith.constant 0 : index
    %c0_10 = arith.constant 0 : index
    %13 = vector.load %arg10[%c0_9, %c0_10] : memref<8x4xf32, #tpu.memory_space<vmem>>, vector<8x1xf32>
    %cst_11 = arith.constant dense<0xFF800000> : vector<8xf32>
    %14 = vector.multi_reduction <maximumf>, %12, %cst_11 [1] : vector<8x16xf32> to vector<8xf32>
    %15 = vector.shape_cast %14 : vector<8xf32> to vector<8x1xf32>
    %16 = arith.maximumf %13, %15 : vector<8x1xf32>
    %17 = arith.subf %13, %16 : vector<8x1xf32>
    %18 = math.exp %17 : vector<8x1xf32>
    %19 = vector.broadcast %16 : vector<8x1xf32> to vector<8x16xf32>
    %20 = arith.subf %12, %19 : vector<8x16xf32>
    %21 = math.exp %20 : vector<8x16xf32>
    %c0_12 = arith.constant 0 : index
    %c0_13 = arith.constant 0 : index
    %22 = vector.load %arg11[%c0_12, %c0_13] : memref<8x4xf32, #tpu.memory_space<vmem>>, vector<8x1xf32>
    %23 = arith.mulf %18, %22 : vector<8x1xf32>
    %cst_14 = arith.constant dense<0.000000e+00> : vector<8xf32>
    %24 = vector.multi_reduction <add>, %21, %cst_14 [1] : vector<8x16xf32> to vector<8xf32>
    %25 = vector.shape_cast %24 : vector<8xf32> to vector<8x1xf32>
    %26 = arith.addf %23, %25 : vector<8x1xf32>
    %c0_15 = arith.constant 0 : index
    %c0_16 = arith.constant 0 : index
    %27 = vector.load %arg11[%c0_15, %c0_16] : memref<8x4xf32, #tpu.memory_space<vmem>>, vector<8x1xf32>
    tpu.vector_store %arg11[%c0_15, %c0_16], %26 {strides = array<i32>} : memref<8x4xf32, #tpu.memory_space<vmem>>, vector<8x1xf32>,
    %c0_17 = arith.constant 0 : index
    %c0_18 = arith.constant 0 : index
    %28 = vector.load %arg12[%c0_17, %c0_18] : memref<8x128xf32, #tpu.memory_space<vmem>>, vector<8x32xf32>
    %29 = vector.broadcast %18 : vector<8x1xf32> to vector<8x32xf32>
    %30 = arith.mulf %29, %28 : vector<8x32xf32>
    %31 = arith.truncf %21 : vector<8x16xf32> to vector<8x16xbf16>
    %cst_19 = arith.constant dense<0.000000e+00> : vector<8x32xf32>
    %32 = tpu.matmul %31, %11, %cst_19 {dimension_numbers = #tpu.dot_dimension_numbers<[1], [0], [0], [1], [0, 0, 1, 1], [], []>} : vector<8x16xbf16>, vector<16x32xbf16>, vector<8x32xf32> -> vector<8x32xf32>
    %33 = arith.addf %30, %32 : vector<8x32xf32>
    %c0_20 = arith.constant 0 : index
    %c0_21 = arith.constant 0 : index
    %34 = vector.load %arg12[%c0_20, %c0_21] : memref<8x128xf32, #tpu.memory_space<vmem>>, vector<8x32xf32>
    tpu.vector_store %arg12[%c0_20, %c0_21], %33 {strides = array<i32>} : memref<8x128xf32, #tpu.memory_space<vmem>>, vector<8x32xf32>,
    %c0_22 = arith.constant 0 : index
    %c0_23 = arith.constant 0 : index
    %35 = vector.load %arg10[%c0_22, %c0_23] : memref<8x4xf32, #tpu.memory_space<vmem>>, vector<8x1xf32>
    tpu.vector_store %arg10[%c0_22, %c0_23], %16 {strides = array<i32>} : memref<8x4xf32, #tpu.memory_space<vmem>>, vector<8x1xf32>,
    %36 = vector.extract_strided_slice %4 {offsets = [0, 32], sizes = [8, 32], strides = [1, 1]} : vector<8x128xbf16> to vector<8x32xbf16>
    %37 = vector.extract_strided_slice %6 {offsets = [0, 32], sizes = [16, 32], strides = [1, 1]} : vector<16x128xbf16> to vector<16x32xbf16>
    %38 = vector.extract_strided_slice %8 {offsets = [0, 32], sizes = [16, 32], strides = [1, 1]} : vector<16x128xbf16> to vector<16x32xbf16>
    %cst_24 = arith.constant dense<0.000000e+00> : vector<8x16xf32>
    %39 = tpu.matmul %36, %37, %cst_24 {dimension_numbers = #tpu.dot_dimension_numbers<[1], [1], [0], [0], [0, 0, 1, 0], [], []>} : vector<8x32xbf16>, vector<16x32xbf16>, vector<8x16xf32> -> vector<8x16xf32>
    %c0_25 = arith.constant 0 : index
    %c1 = arith.constant 1 : index
    %40 = vector.load %arg10[%c0_25, %c1] : memref<8x4xf32, #tpu.memory_space<vmem>>, vector<8x1xf32>
    %cst_26 = arith.constant dense<0xFF800000> : vector<8xf32>
    %41 = vector.multi_reduction <maximumf>, %39, %cst_26 [1] : vector<8x16xf32> to vector<8xf32>
    %42 = vector.shape_cast %41 : vector<8xf32> to vector<8x1xf32>
    %43 = arith.maximumf %40, %42 : vector<8x1xf32>
    %44 = arith.subf %40, %43 : vector<8x1xf32>
    %45 = math.exp %44 : vector<8x1xf32>
    %46 = vector.broadcast %43 : vector<8x1xf32> to vector<8x16xf32>
    %47 = arith.subf %39, %46 : vector<8x16xf32>
    %48 = math.exp %47 : vector<8x16xf32>
    %c0_27 = arith.constant 0 : index
    %c1_28 = arith.constant 1 : index
    %49 = vector.load %arg11[%c0_27, %c1_28] : memref<8x4xf32, #tpu.memory_space<vmem>>, vector<8x1xf32>
    %50 = arith.mulf %45, %49 : vector<8x1xf32>
    %cst_29 = arith.constant dense<0.000000e+00> : vector<8xf32>
    %51 = vector.multi_reduction <add>, %48, %cst_29 [1] : vector<8x16xf32> to vector<8xf32>
    %52 = vector.shape_cast %51 : vector<8xf32> to vector<8x1xf32>
    %53 = arith.addf %50, %52 : vector<8x1xf32>
    %c0_30 = arith.constant 0 : index
    %c1_31 = arith.constant 1 : index
    %54 = vector.load %arg11[%c0_30, %c1_31] : memref<8x4xf32, #tpu.memory_space<vmem>>, vector<8x1xf32>
    tpu.vector_store %arg11[%c0_30, %c1_31], %53 {strides = array<i32>} : memref<8x4xf32, #tpu.memory_space<vmem>>, vector<8x1xf32>,
    %c0_32 = arith.constant 0 : index
    %c32 = arith.constant 32 : index
    %55 = vector.load %arg12[%c0_32, %c32] : memref<8x128xf32, #tpu.memory_space<vmem>>, vector<8x32xf32>
    %56 = vector.broadcast %45 : vector<8x1xf32> to vector<8x32xf32>
    %57 = arith.mulf %56, %55 : vector<8x32xf32>
    %58 = arith.truncf %48 : vector<8x16xf32> to vector<8x16xbf16>
    %cst_33 = arith.constant dense<0.000000e+00> : vector<8x32xf32>
    %59 = tpu.matmul %58, %38, %cst_33 {dimension_numbers = #tpu.dot_dimension_numbers<[1], [0], [0], [1], [0, 0, 1, 1], [], []>} : vector<8x16xbf16>, vector<16x32xbf16>, vector<8x32xf32> -> vector<8x32xf32>
    %60 = arith.addf %57, %59 : vector<8x32xf32>
    %c0_34 = arith.constant 0 : index
    %c32_35 = arith.constant 32 : index
    %61 = vector.load %arg12[%c0_34, %c32_35] : memref<8x128xf32, #tpu.memory_space<vmem>>, vector<8x32xf32>
    tpu.vector_store %arg12[%c0_34, %c32_35], %60 {strides = array<i32>} : memref<8x128xf32, #tpu.memory_space<vmem>>, vector<8x32xf32>,
    %c0_36 = arith.constant 0 : index
    %c1_37 = arith.constant 1 : index
    %62 = vector.load %arg10[%c0_36, %c1_37] : memref<8x4xf32, #tpu.memory_space<vmem>>, vector<8x1xf32>
    tpu.vector_store %arg10[%c0_36, %c1_37], %43 {strides = array<i32>} : memref<8x4xf32, #tpu.memory_space<vmem>>, vector<8x1xf32>,
    %63 = vector.extract_strided_slice %4 {offsets = [0, 64], sizes = [8, 32], strides = [1, 1]} : vector<8x128xbf16> to vector<8x32xbf16>
    %64 = vector.extract_strided_slice %6 {offsets = [0, 64], sizes = [16, 32], strides = [1, 1]} : vector<16x128xbf16> to vector<16x32xbf16>
    %65 = vector.extract_strided_slice %8 {offsets = [0, 64], sizes = [16, 32], strides = [1, 1]} : vector<16x128xbf16> to vector<16x32xbf16>
    %cst_38 = arith.constant dense<0.000000e+00> : vector<8x16xf32>
    %66 = tpu.matmul %63, %64, %cst_38 {dimension_numbers = #tpu.dot_dimension_numbers<[1], [1], [0], [0], [0, 0, 1, 0], [], []>} : vector<8x32xbf16>, vector<16x32xbf16>, vector<8x16xf32> -> vector<8x16xf32>
    %c0_39 = arith.constant 0 : index
    %c2 = arith.constant 2 : index
    %67 = vector.load %arg10[%c0_39, %c2] : memref<8x4xf32, #tpu.memory_space<vmem>>, vector<8x1xf32>
    %cst_40 = arith.constant dense<0xFF800000> : vector<8xf32>
    %68 = vector.multi_reduction <maximumf>, %66, %cst_40 [1] : vector<8x16xf32> to vector<8xf32>
    %69 = vector.shape_cast %68 : vector<8xf32> to vector<8x1xf32>
    %70 = arith.maximumf %67, %69 : vector<8x1xf32>
    %71 = arith.subf %67, %70 : vector<8x1xf32>
    %72 = math.exp %71 : vector<8x1xf32>
    %73 = vector.broadcast %70 : vector<8x1xf32> to vector<8x16xf32>
    %74 = arith.subf %66, %73 : vector<8x16xf32>
    %75 = math.exp %74 : vector<8x16xf32>
    %c0_41 = arith.constant 0 : index
    %c2_42 = arith.constant 2 : index
    %76 = vector.load %arg11[%c0_41, %c2_42] : memref<8x4xf32, #tpu.memory_space<vmem>>, vector<8x1xf32>
    %77 = arith.mulf %72, %76 : vector<8x1xf32>
    %cst_43 = arith.constant dense<0.000000e+00> : vector<8xf32>
    %78 = vector.multi_reduction <add>, %75, %cst_43 [1] : vector<8x16xf32> to vector<8xf32>
    %79 = vector.shape_cast %78 : vector<8xf32> to vector<8x1xf32>
    %80 = arith.addf %77, %79 : vector<8x1xf32>
    %c0_44 = arith.constant 0 : index
    %c2_45 = arith.constant 2 : index
    %81 = vector.load %arg11[%c0_44, %c2_45] : memref<8x4xf32, #tpu.memory_space<vmem>>, vector<8x1xf32>
    tpu.vector_store %arg11[%c0_44, %c2_45], %80 {strides = array<i32>} : memref<8x4xf32, #tpu.memory_space<vmem>>, vector<8x1xf32>,
    %c0_46 = arith.constant 0 : index
    %c64 = arith.constant 64 : index
    %82 = vector.load %arg12[%c0_46, %c64] : memref<8x128xf32, #tpu.memory_space<vmem>>, vector<8x32xf32>
    %83 = vector.broadcast %72 : vector<8x1xf32> to vector<8x32xf32>
    %84 = arith.mulf %83, %82 : vector<8x32xf32>
    %85 = arith.truncf %75 : vector<8x16xf32> to vector<8x16xbf16>
    %cst_47 = arith.constant dense<0.000000e+00> : vector<8x32xf32>
    %86 = tpu.matmul %85, %65, %cst_47 {dimension_numbers = #tpu.dot_dimension_numbers<[1], [0], [0], [1], [0, 0, 1, 1], [], []>} : vector<8x16xbf16>, vector<16x32xbf16>, vector<8x32xf32> -> vector<8x32xf32>
    %87 = arith.addf %84, %86 : vector<8x32xf32>
    %c0_48 = arith.constant 0 : index
    %c64_49 = arith.constant 64 : index
    %88 = vector.load %arg12[%c0_48, %c64_49] : memref<8x128xf32, #tpu.memory_space<vmem>>, vector<8x32xf32>
    tpu.vector_store %arg12[%c0_48, %c64_49], %87 {strides = array<i32>} : memref<8x128xf32, #tpu.memory_space<vmem>>, vector<8x32xf32>,
    %c0_50 = arith.constant 0 : index
    %c2_51 = arith.constant 2 : index
    %89 = vector.load %arg10[%c0_50, %c2_51] : memref<8x4xf32, #tpu.memory_space<vmem>>, vector<8x1xf32>
    tpu.vector_store %arg10[%c0_50, %c2_51], %70 {strides = array<i32>} : memref<8x4xf32, #tpu.memory_space<vmem>>, vector<8x1xf32>,
    %90 = vector.extract_strided_slice %4 {offsets = [0, 96], sizes = [8, 32], strides = [1, 1]} : vector<8x128xbf16> to vector<8x32xbf16>
    %91 = vector.extract_strided_slice %6 {offsets = [0, 96], sizes = [16, 32], strides = [1, 1]} : vector<16x128xbf16> to vector<16x32xbf16>
    %92 = vector.extract_strided_slice %8 {offsets = [0, 96], sizes = [16, 32], strides = [1, 1]} : vector<16x128xbf16> to vector<16x32xbf16>
    %cst_52 = arith.constant dense<0.000000e+00> : vector<8x16xf32>
    %93 = tpu.matmul %90, %91, %cst_52 {dimension_numbers = #tpu.dot_dimension_numbers<[1], [1], [0], [0], [0, 0, 1, 0], [], []>} : vector<8x32xbf16>, vector<16x32xbf16>, vector<8x16xf32> -> vector<8x16xf32>
    %c0_53 = arith.constant 0 : index
    %c3 = arith.constant 3 : index
    %94 = vector.load %arg10[%c0_53, %c3] : memref<8x4xf32, #tpu.memory_space<vmem>>, vector<8x1xf32>
    %cst_54 = arith.constant dense<0xFF800000> : vector<8xf32>
    %95 = vector.multi_reduction <maximumf>, %93, %cst_54 [1] : vector<8x16xf32> to vector<8xf32>
    %96 = vector.shape_cast %95 : vector<8xf32> to vector<8x1xf32>
    %97 = arith.maximumf %94, %96 : vector<8x1xf32>
    %98 = arith.subf %94, %97 : vector<8x1xf32>
    %99 = math.exp %98 : vector<8x1xf32>
    %100 = vector.broadcast %97 : vector<8x1xf32> to vector<8x16xf32>
    %101 = arith.subf %93, %100 : vector<8x16xf32>
    %102 = math.exp %101 : vector<8x16xf32>
    %c0_55 = arith.constant 0 : index
    %c3_56 = arith.constant 3 : index
    %103 = vector.load %arg11[%c0_55, %c3_56] : memref<8x4xf32, #tpu.memory_space<vmem>>, vector<8x1xf32>
    %104 = arith.mulf %99, %103 : vector<8x1xf32>
    %cst_57 = arith.constant dense<0.000000e+00> : vector<8xf32>
    %105 = vector.multi_reduction <add>, %102, %cst_57 [1] : vector<8x16xf32> to vector<8xf32>
    %106 = vector.shape_cast %105 : vector<8xf32> to vector<8x1xf32>
    %107 = arith.addf %104, %106 : vector<8x1xf32>
    %c0_58 = arith.constant 0 : index
    %c3_59 = arith.constant 3 : index
    %108 = vector.load %arg11[%c0_58, %c3_59] : memref<8x4xf32, #tpu.memory_space<vmem>>, vector<8x1xf32>
    tpu.vector_store %arg11[%c0_58, %c3_59], %107 {strides = array<i32>} : memref<8x4xf32, #tpu.memory_space<vmem>>, vector<8x1xf32>,
    %c0_60 = arith.constant 0 : index
    %c96 = arith.constant 96 : index
    %109 = vector.load %arg12[%c0_60, %c96] : memref<8x128xf32, #tpu.memory_space<vmem>>, vector<8x32xf32>
    %110 = vector.broadcast %99 : vector<8x1xf32> to vector<8x32xf32>
    %111 = arith.mulf %110, %109 : vector<8x32xf32>
    %112 = arith.truncf %102 : vector<8x16xf32> to vector<8x16xbf16>
    %cst_61 = arith.constant dense<0.000000e+00> : vector<8x32xf32>
    %113 = tpu.matmul %112, %92, %cst_61 {dimension_numbers = #tpu.dot_dimension_numbers<[1], [0], [0], [1], [0, 0, 1, 1], [], []>} : vector<8x16xbf16>, vector<16x32xbf16>, vector<8x32xf32> -> vector<8x32xf32>
    %114 = arith.addf %111, %113 : vector<8x32xf32>
    %c0_62 = arith.constant 0 : index
    %c96_63 = arith.constant 96 : index
    %115 = vector.load %arg12[%c0_62, %c96_63] : memref<8x128xf32, #tpu.memory_space<vmem>>, vector<8x32xf32>
    tpu.vector_store %arg12[%c0_62, %c96_63], %114 {strides = array<i32>} : memref<8x128xf32, #tpu.memory_space<vmem>>, vector<8x32xf32>,
    %c0_64 = arith.constant 0 : index
    %c3_65 = arith.constant 3 : index
    %116 = vector.load %arg10[%c0_64, %c3_65] : memref<8x4xf32, #tpu.memory_space<vmem>>, vector<8x1xf32>
    tpu.vector_store %arg10[%c0_64, %c3_65], %97 {strides = array<i32>} : memref<8x4xf32, #tpu.memory_space<vmem>>, vector<8x1xf32>,
    %c2_i32 = arith.constant 2 : i32
    %117 = arith.cmpi eq, %arg2, %c2_i32 : i32
    %118 = arith.extui %117 : i1 to i32
    %c0_i32_66 = arith.constant 0 : i32
    %119 = arith.cmpi ne, %118, %c0_i32_66 : i32
    scf.if %119 {
      %c0_67 = arith.constant 0 : index
      %c0_68 = arith.constant 0 : index
      %120 = vector.load %arg11[%c0_67, %c0_68] : memref<8x4xf32, #tpu.memory_space<vmem>>, vector<8x4xf32>
      %121 = tpu.reciprocal %120 {approx = true} : vector<8x4xf32> -> vector<8x4xf32>
      %122 = vector.extract_strided_slice %121 {offsets = [0, 0], sizes = [8, 1], strides = [1, 1]} : vector<8x4xf32> to vector<8x1xf32>
      %123 = vector.shape_cast %122 : vector<8x1xf32> to vector<8x1xf32>
      %124 = vector.broadcast %123 : vector<8x1xf32> to vector<8x32xf32>
      %125 = vector.extract_strided_slice %121 {offsets = [0, 1], sizes = [8, 1], strides = [1, 1]} : vector<8x4xf32> to vector<8x1xf32>
      %126 = vector.shape_cast %125 : vector<8x1xf32> to vector<8x1xf32>
      %127 = vector.broadcast %126 : vector<8x1xf32> to vector<8x32xf32>
      %128 = vector.extract_strided_slice %121 {offsets = [0, 2], sizes = [8, 1], strides = [1, 1]} : vector<8x4xf32> to vector<8x1xf32>
      %129 = vector.shape_cast %128 : vector<8x1xf32> to vector<8x1xf32>
      %130 = vector.broadcast %129 : vector<8x1xf32> to vector<8x32xf32>
      %131 = vector.extract_strided_slice %121 {offsets = [0, 3], sizes = [8, 1], strides = [1, 1]} : vector<8x4xf32> to vector<8x1xf32>
      %132 = vector.shape_cast %131 : vector<8x1xf32> to vector<8x1xf32>
      %133 = vector.broadcast %132 : vector<8x1xf32> to vector<8x32xf32>
      %134 = tpu.concatenate %124, %127, %130, %133 in 1 : vector<8x32xf32>, vector<8x32xf32>, vector<8x32xf32>, vector<8x32xf32> -> vector<8x128xf32>
      %c0_69 = arith.constant 0 : index
      %c0_70 = arith.constant 0 : index
      %135 = vector.load %arg12[%c0_69, %c0_70] : memref<8x128xf32, #tpu.memory_space<vmem>>, vector<8x128xf32>
      %136 = arith.mulf %135, %134 : vector<8x128xf32>
      %137 = arith.truncf %136 : vector<8x128xf32> to vector<8x128xbf16>
      %c0_71 = arith.constant 0 : index
      %c0_72 = arith.constant 0 : index
      %138 = vector.load %arg7[%c0_71, %c0_72] : memref<128x128xbf16, #tpu.memory_space<vmem>>, vector<128x128xbf16>
      %cst_73 = arith.constant dense<0.000000e+00> : vector<8x128xf32>
      %139 = tpu.matmul %137, %138, %cst_73 {dimension_numbers = #tpu.dot_dimension_numbers<[1], [0], [0], [1], [0, 0, 1, 1], [], []>} : vector<8x128xbf16>, vector<128x128xbf16>, vector<8x128xf32> -> vector<8x128xf32>
      %c0_74 = arith.constant 0 : index
      %c0_75 = arith.constant 0 : index
      %140 = vector.load %arg8[%c0_74, %c0_75] : memref<1x128xf32, #tpu.memory_space<vmem>>, vector<1x128xf32>
      %141 = vector.broadcast %140 : vector<1x128xf32> to vector<8x128xf32>
      %142 = arith.addf %139, %141 : vector<8x128xf32>
      %c0_76 = arith.constant 0 : index
      %c0_77 = arith.constant 0 : index
      %c0_78 = arith.constant 0 : index
      %143 = vector.load %arg6[%c0_76, %c0_77, %c0_78] : memref<1x8x128xf32, #tpu.memory_space<vmem>>, vector<1x8x128xf32>
      %144 = vector.shape_cast %143 : vector<1x8x128xf32> to vector<8x128xf32>
      %145 = arith.addf %142, %144 : vector<8x128xf32>
      %c0_79 = arith.constant 0 : index
      %c0_80 = arith.constant 0 : index
      %c0_81 = arith.constant 0 : index
      %146 = vector.load %arg9[%c0_79, %c0_80, %c0_81] : memref<1x8x128xf32, #tpu.memory_space<vmem>>, vector<1x8x128xf32>
      %147 = vector.shape_cast %146 : vector<1x8x128xf32> to vector<8x128xf32>
      %148 = vector.shape_cast %145 : vector<8x128xf32> to vector<1x8x128xf32>
      tpu.vector_store %arg9[%c0_79, %c0_80, %c0_81], %148 {strides = array<i32>} : memref<1x8x128xf32, #tpu.memory_space<vmem>>, vector<1x8x128xf32>,
    } else {
    }
    return
  }
  func.func @transform_0(%arg0: i32, %arg1: i32, %arg2: i32) -> (i32, i32, i32) {
    %c0_i32 = arith.constant 0 : i32
    %c0_i32_0 = arith.constant 0 : i32
    return %arg0, %arg1, %c0_i32 : i32, i32, i32
  }
  func.func @transform_1(%arg0: i32, %arg1: i32, %arg2: i32) -> (i32, i32, i32) {
    %c0_i32 = arith.constant 0 : i32
    %c0_i32_0 = arith.constant 0 : i32
    return %arg0, %arg2, %c0_i32 : i32, i32, i32
  }
  func.func @transform_2(%arg0: i32, %arg1: i32, %arg2: i32) -> (i32, i32, i32) {
    %c1_i32 = arith.constant 1 : i32
    %c0_i32 = arith.constant 0 : i32
    return %arg0, %arg2, %c1_i32 : i32, i32, i32
  }
  func.func @transform_3(%arg0: i32, %arg1: i32, %arg2: i32) -> (i32, i32, i32) {
    %c0_i32 = arith.constant 0 : i32
    %c0_i32_0 = arith.constant 0 : i32
    return %arg0, %arg1, %c0_i32 : i32, i32, i32
  }
  func.func @transform_4(%arg0: i32, %arg1: i32, %arg2: i32) -> (i32, i32) {
    %c0_i32 = arith.constant 0 : i32
    %c0_i32_0 = arith.constant 0 : i32
    %c0_i32_1 = arith.constant 0 : i32
    return %c0_i32, %c0_i32_0 : i32, i32
  }
  func.func @transform_5(%arg0: i32, %arg1: i32, %arg2: i32) -> (i32, i32) {
    %c0_i32 = arith.constant 0 : i32
    %c0_i32_0 = arith.constant 0 : i32
    %c0_i32_1 = arith.constant 0 : i32
    return %c0_i32, %c0_i32_0 : i32, i32
  }
  func.func @transform_6(%arg0: i32, %arg1: i32, %arg2: i32) -> (i32, i32, i32) {
    %c0_i32 = arith.constant 0 : i32
    %c0_i32_0 = arith.constant 0 : i32
    return %arg0, %arg1, %c0_i32 : i32, i32, i32
  }
}

module attributes {stable_mosaic.version = 11 : i64} {
  func.func @_matmul_res_kernel(%arg0: i32, %arg1: memref<48x256xbf16, #tpu.memory_space<vmem>>, %arg2: memref<256x128xbf16, #tpu.memory_space<vmem>>, %arg3: memref<1x128xf32, #tpu.memory_space<vmem>>, %arg4: memref<48x128xf32, #tpu.memory_space<vmem>>, %arg5: memref<48x128xf32, #tpu.memory_space<vmem>>) attributes {dimension_semantics = [#tpu.dimension_semantics<parallel>], iteration_bounds = array<i64: 1>, scalar_prefetch = 0 : i64, scratch_operands = 0 : i64, tpu.core_type = #tpu.core_type<tc>, window_params = [{transform_indices = @transform_0, window_bounds = array<i64: 48, 256>}, {pipeline_mode = #tpu.pipeline_mode<synchronous>, transform_indices = @transform_1, window_bounds = array<i64: 256, 128>}, {pipeline_mode = #tpu.pipeline_mode<synchronous>, transform_indices = @transform_2, window_bounds = array<i64: 1, 128>}, {transform_indices = @transform_3, window_bounds = array<i64: 48, 128>}, {transform_indices = @transform_4, window_bounds = array<i64: 48, 128>}]} {
    %c0 = arith.constant 0 : index
    %c0_0 = arith.constant 0 : index
    %0 = vector.load %arg1[%c0, %c0_0] : memref<48x256xbf16, #tpu.memory_space<vmem>>, vector<48x256xbf16>
    %c0_1 = arith.constant 0 : index
    %c0_2 = arith.constant 0 : index
    %1 = vector.load %arg2[%c0_1, %c0_2] : memref<256x128xbf16, #tpu.memory_space<vmem>>, vector<256x128xbf16>
    %cst = arith.constant dense<0.000000e+00> : vector<48x128xf32>
    %2 = tpu.matmul %0, %1, %cst {dimension_numbers = #tpu.dot_dimension_numbers<[1], [0], [0], [1], [0, 0, 1, 1], [], []>} : vector<48x256xbf16>, vector<256x128xbf16>, vector<48x128xf32> -> vector<48x128xf32>
    %c0_3 = arith.constant 0 : index
    %c0_4 = arith.constant 0 : index
    %3 = vector.load %arg3[%c0_3, %c0_4] : memref<1x128xf32, #tpu.memory_space<vmem>>, vector<1x128xf32>
    %4 = vector.broadcast %3 : vector<1x128xf32> to vector<48x128xf32>
    %5 = arith.addf %2, %4 : vector<48x128xf32>
    %c0_5 = arith.constant 0 : index
    %c0_6 = arith.constant 0 : index
    %6 = vector.load %arg4[%c0_5, %c0_6] : memref<48x128xf32, #tpu.memory_space<vmem>>, vector<48x128xf32>
    %7 = arith.addf %5, %6 : vector<48x128xf32>
    %c0_7 = arith.constant 0 : index
    %c0_8 = arith.constant 0 : index
    %8 = vector.load %arg5[%c0_7, %c0_8] : memref<48x128xf32, #tpu.memory_space<vmem>>, vector<48x128xf32>
    tpu.vector_store %arg5[%c0_7, %c0_8], %7 {strides = array<i32>} : memref<48x128xf32, #tpu.memory_space<vmem>>, vector<48x128xf32>,
    return
  }
  func.func @transform_0(%arg0: i32) -> (i32, i32) {
    %c0_i32 = arith.constant 0 : i32
    %c0_i32_0 = arith.constant 0 : i32
    return %arg0, %c0_i32 : i32, i32
  }
  func.func @transform_1(%arg0: i32) -> (i32, i32) {
    %c0_i32 = arith.constant 0 : i32
    %c0_i32_0 = arith.constant 0 : i32
    %c0_i32_1 = arith.constant 0 : i32
    return %c0_i32, %c0_i32_0 : i32, i32
  }
  func.func @transform_2(%arg0: i32) -> (i32, i32) {
    %c0_i32 = arith.constant 0 : i32
    %c0_i32_0 = arith.constant 0 : i32
    %c0_i32_1 = arith.constant 0 : i32
    return %c0_i32, %c0_i32_0 : i32, i32
  }
  func.func @transform_3(%arg0: i32) -> (i32, i32) {
    %c0_i32 = arith.constant 0 : i32
    %c0_i32_0 = arith.constant 0 : i32
    return %arg0, %c0_i32 : i32, i32
  }
  func.func @transform_4(%arg0: i32) -> (i32, i32) {
    %c0_i32 = arith.constant 0 : i32
    %c0_i32_0 = arith.constant 0 : i32
    return %arg0, %c0_i32 : i32, i32
  }
}

</mosaic_0001>

<bundles_post_ra>
// kernel: transformer_decoder_block.7
= control target key start
LH: loop header
LB: loop body
LE: loop exit
PB: predicated region body
PF: predicated region fallthrough
CT: control target
= control target key end

     0   :  { %v589_v6 = vmov 128.0   ;;  %s889_s0 = inlined_call_operand.vmem [shape: f32[48,128], index: 0, kind: input, shape index: {}]   ;;  %s890_s1 = inlined_call_operand.vmem [shape: f32[1,128], index: 1, kind: input, shape index: {}]   ;;  %s891_s2 = inlined_call_operand.vmem [shape: f32[1,128], index: 2, kind: input, shape index: {}]   ;;  %s892_s3 = inlined_call_operand.vmem [shape: bf16[128,384], index: 3, kind: input, shape index: {}]   ;;  %s893_s4 = inlined_call_operand.vmem [shape: f32[1,384], index: 4, kind: input, shape index: {}]   ;;  %s894_s5 = inlined_call_operand.vmem [shape: bf16[48,384], index: 5, kind: output, shape index: {}]  }
   0x1   :  { %v24_v0 = vld [vmem:[%s889_s0 + $0x20] sm:$0xff]  ;;  %v22_v1 = vld [vmem:[%s889_s0 + $0x10] sm:$0xff]  ;;  %v25_v3 = vld [vmem:[%s889_s0 + $0x28] sm:$0xff]  ;;  %575 = vrcp.f32 %v589_v6 }
   0x2   :  { %v20_v2 = vld [vmem:[%s889_s0] sm:$0xff]  ;;  %36 = vadd.xlane.f32.xlu2 %v24_v0  ;;  %32 = vadd.xlane.f32.xlu1 %v22_v1  ;;  %v23_v4 = vld [vmem:[%s889_s0 + $0x18] sm:$0xff]  ;;  %v21_v5 = vld [vmem:[%s889_s0 + $0x8] sm:$0xff] }
   0x3   :  { %28 = vadd.xlane.f32.xlu0 %v20_v2  ;;  %v530_v37 = vld [vmem:[%s892_s3 + $0xa8] sm:$0xf]  ;;  %v562_v38 = vld [vmem:[%s892_s3 + $0xb0] sm:$0xf0]  ;;  %v561_v39 = vld [vmem:[%s892_s3 + $0xac] sm:$0xf] }
   0x4   :  { %v531_v40 = vor.u32 %v562_v38, %v530_v37  ;;  %v532_v41 = vld [vmem:[%s892_s3 + $0xb4] sm:$0xf0]  ;;  %v538_v42 = vld [vmem:[%s892_s3 + $0xb0] sm:$0xf]  ;;  %v563_v43 = vld [vmem:[%s892_s3 + $0xb8] sm:$0xf0] }
   0x5   :  { %v535_v44 = vor.u32 %v561_v39, %v532_v41  ;;  %v539_v45 = vor.u32 %v563_v43, %v538_v42  ;;  %v518_v46 = vld [vmem:[%s892_s3 + $0x90] sm:$0xf]  ;;  %v559_v47 = vld [vmem:[%s892_s3 + $0x98] sm:$0xf0]  ;;  %v558_v48 = vld [vmem:[%s892_s3 + $0x94] sm:$0xf] }
   0x6   :  { %344 = vmatpush.bf16.msra.mxu0 %v531_v40  ;;  %564 = vmatpush.bf16.msra.mxu3 %v531_v40  ;;  %v519_v49 = vor.u32 %v559_v47, %v518_v46  ;;  %v520_v50 = vld [vmem:[%s892_s3 + $0x9c] sm:$0xf0]  ;;  %v526_v51 = vld [vmem:[%s892_s3 + $0x98] sm:$0xf]  ;;  %v560_v52 = vld [vmem:[%s892_s3 + $0xa0] sm:$0xf0] }
   0x7   :  { %v576_v7 = vpop.eup %575  ;;  %368 = vmatpush.bf16.msra.mxu1 %v535_v44  ;;  %392 = vmatpush.bf16.msra.mxu2 %v539_v45  ;;  %v523_v53 = vor.u32 %v558_v48, %v520_v50  ;;  %v527_v54 = vor.u32 %v560_v52, %v526_v51  ;;  %v506_v55 = vld [vmem:[%s892_s3 + $0x78] sm:$0xf]  ;;  %v556_v56 = vld [vmem:[%s892_s3 + $0x80] sm:$0xf0]  ;;  %v555_v57 = vld [vmem:[%s892_s3 + $0x7c] sm:$0xf] }
   0x8   :  { %v41_v8 = vmul.f32 128.0, %v576_v7  ;;  %vm45_vm0 = vweird.f32 %v576_v7  ;;  %v507_v58 = vor.u32 %v556_v56, %v506_v55  ;;  %v508_v59 = vld [vmem:[%s892_s3 + $0x84] sm:$0xf0]  ;;  %v514_v60 = vld [vmem:[%s892_s3 + $0x80] sm:$0xf] }
   0x9   :  { %v557_v61 = vld [vmem:[%s892_s3 + $0x88] sm:$0xf0]  ;;  %v511_v62 = vor.u32 %v555_v57, %v508_v59  ;;  %v554_v6 = vld [vmem:[%s892_s3 + $0x70] sm:$0xf0]  ;;  %v460_v39 = vld [vmem:[%s892_s3 + $0x24] sm:$0xf0] }
   0xa   :  { %38 = vadd.xlane.f32.xlu2 %v25_v3  ;;  %34 = vadd.xlane.f32.xlu1 %v23_v4  ;;  %v42_v9 = vsub.f32 1.0, %v41_v8  ;;  %v515_v63 = vor.u32 %v557_v61, %v514_v60  ;;  %v466_v40 = vld [vmem:[%s892_s3 + $0x20] sm:$0xf]  ;;  %v545_v41 = vld [vmem:[%s892_s3 + $0x28] sm:$0xf0] }
   0xb   :  { %30 = vadd.xlane.f32.xlu0 %v21_v5  ;;  %345 = vmatpush.bf16.msra.mxu0 %v519_v49  ;;  %v467_v45 = vor.u32 %v545_v41, %v466_v40  ;;  %v446_v48 = vld [vmem:[%s892_s3] sm:$0xf]  ;;  %v540_v52 = vld [vmem:[%s892_s3 + $0x4] sm:$0xf]  ;;  %v454_v55 = vld [vmem:[%s892_s3 + $0x8] sm:$0xf] }
   0xc   :  { %v43_v10 = vmul.f32 %v576_v7, %v42_v9  ;;  %565 = vmatpush.bf16.msra.mxu3 %v519_v49  ;;  %369 = vmatpush.bf16.msra.mxu1 %v523_v53  ;;  %v482_v9 = vld [vmem:[%s892_s3 + $0x48] sm:$0xf]  ;;  %v541_v49 = vld [vmem:[%s892_s3 + $0x8] sm:$0xf0]  ;;  %v448_v53 = vld [vmem:[%s892_s3 + $0xc] sm:$0xf0] }
   0xd   :  { %393 = vmatpush.bf16.msra.mxu2 %v527_v54  ;;  %v447_v51 = vor.u32 %v541_v49, %v446_v48  ;;  %v451_v54 = vor.u32 %v540_v52, %v448_v53  ;;  %v542_v56 = vld [vmem:[%s892_s3 + $0x10] sm:$0xf0]  ;;  %v573_v41 = vld [vmem:[%s890_s1] ss:$0 sm:$0xff] }
   0xe   :  { %v44_v11 = vadd.f32 %v576_v7, %v43_v10  ;;  %v550_v10 = vld [vmem:[%s892_s3 + $0x50] sm:$0xf0]  ;;  %v455_v57 = vor.u32 %v542_v56, %v454_v55  ;;  %v574_v52 = vld [vmem:[%s891_s2] ss:$0 sm:$0xff] }
   0xf   :  { %346 = vmatpush.bf16.msra.mxu0 %v507_v58 }
  0x10   :  { %v638_v12 = vsel %vm45_vm0, %v576_v7, %v44_v11  ;;  %566 = vmatpush.bf16.msra.mxu3 %v507_v58  ;;  %370 = vmatpush.bf16.msra.mxu1 %v511_v62  ;;  %v549_v11 = vld [vmem:[%s892_s3 + $0x4c] sm:$0xf] }
  0x11   :  { %394 = vmatpush.bf16.msra.mxu2 %v515_v63 }
  0x75   :  { %v37_v13 = vpop.xlane.xlu2 %36  ;;  %v33_v14 = vpop.xlane.xlu1 %32 }
  0x76   :  { %v49_v15 = vmul.f32 %v638_v12, %v33_v14  ;;  %v29_v16 = vpop.xlane.xlu0 %28  ;;  %v51_v30 = vmul.f32 %v638_v12, %v37_v13  ;;  %v483_v13 = vor.u32 %v550_v10, %v482_v9  ;;  %v484_v14 = vld [vmem:[%s892_s3 + $0x54] sm:$0xf0] }
  0x77   :  { %v47_v17 = vmul.f32 %v638_v12, %v29_v16  ;;  %v551_v16 = vld [vmem:[%s892_s3 + $0x58] sm:$0xf0] }
  0x78   :  { %v642_v18 = vsub.f32 %v22_v1, %v49_v15  ;;  %v666_v35 = vsub.f32 %v24_v0, %v51_v30  ;;  %v494_v0 = vld [vmem:[%s892_s3 + $0x60] sm:$0xf]  ;;  %v553_v1 = vld [vmem:[%s892_s3 + $0x68] sm:$0xf0]  ;;  %v490_v15 = vld [vmem:[%s892_s3 + $0x50] sm:$0xf] }
  0x79   :  { %v644_v19 = vsub.f32 %v20_v2, %v47_v17  ;;  %v552_v2 = vld [vmem:[%s892_s3 + $0x64] sm:$0xf]  ;;  %v487_v17 = vor.u32 %v549_v11, %v484_v14 }
  0x7a   :  { %v61_v20 = vmul.f32 %v642_v18, %v642_v18  ;;  %v63_v36 = vmul.f32 %v666_v35, %v666_v35 }
  0x7b   :  { %v59_v21 = vmul.f32 %v644_v19, %v644_v19 }
  0x7c   :  { %69 = vadd.xlane.f32.xlu2 %v61_v20  ;;  %v491_v20 = vor.u32 %v551_v16, %v490_v15 }
  0x7d   :  { %65 = vadd.xlane.f32.xlu0 %v59_v21  ;;  %v39_v22 = vpop.xlane.xlu2 %38  ;;  %v35_v23 = vpop.xlane.xlu1 %34  ;;  %v470_v21 = vld [vmem:[%s892_s3 + $0x30] sm:$0xf] }
  0x7e   :  { %v52_v24 = vmul.f32 %v638_v12, %v39_v22  ;;  %v50_v25 = vmul.f32 %v638_v12, %v35_v23  ;;  %v31_v26 = vpop.xlane.xlu0 %30  ;;  %v547_v22 = vld [vmem:[%s892_s3 + $0x38] sm:$0xf0]  ;;  %v546_v23 = vld [vmem:[%s892_s3 + $0x34] sm:$0xf] }
  0x7f   :  { %v48_v27 = vmul.f32 %v638_v12, %v31_v26  ;;  %v478_v26 = vld [vmem:[%s892_s3 + $0x38] sm:$0xf] }
  0x80   :  { %v653_v28 = vsub.f32 %v25_v3, %v52_v24  ;;  %v655_v29 = vsub.f32 %v23_v4, %v50_v25  ;;  %v495_v3 = vor.u32 %v553_v1, %v494_v0  ;;  %v496_v4 = vld [vmem:[%s892_s3 + $0x6c] sm:$0xf0]  ;;  %v471_v24 = vor.u32 %v547_v22, %v470_v21  ;;  %v472_v25 = vld [vmem:[%s892_s3 + $0x3c] sm:$0xf0] }
  0x81   :  { %v658_v31 = vsub.f32 %v21_v5, %v48_v27  ;;  %v502_v5 = vld [vmem:[%s892_s3 + $0x68] sm:$0xf]  ;;  %v499_v7 = vor.u32 %v552_v2, %v496_v4  ;;  %v548_v27 = vld [vmem:[%s892_s3 + $0x40] sm:$0xf0]  ;;  %v475_v30 = vor.u32 %v546_v23, %v472_v25 }
  0x82   :  { %v64_v32 = vmul.f32 %v653_v28, %v653_v28  ;;  %v62_v33 = vmul.f32 %v655_v29, %v655_v29  ;;  %v503_v8 = vor.u32 %v554_v6, %v502_v5  ;;  %347 = vmatpush.bf16.msra.mxu0 %v495_v3  ;;  %567 = vmatpush.bf16.msra.mxu3 %v495_v3 }
  0x83   :  { %v60_v34 = vmul.f32 %v658_v31, %v658_v31  ;;  %371 = vmatpush.bf16.msra.mxu1 %v499_v7 }
  0x84   :  { %75 = vadd.xlane.f32.xlu2 %v64_v32  ;;  %395 = vmatpush.bf16.msra.mxu2 %v503_v8  ;;  %v479_v32 = vor.u32 %v548_v27, %v478_v26 }
  0x85   :  { %71 = vadd.xlane.f32.xlu0 %v62_v33  ;;  %67 = vadd.xlane.f32.xlu1 %v60_v34  ;;  %v458_v33 = vld [vmem:[%s892_s3 + $0x18] sm:$0xf]  ;;  %v544_v34 = vld [vmem:[%s892_s3 + $0x20] sm:$0xf0] }
  0x86   :  { %348 = vmatpush.bf16.msra.mxu0 %v483_v13  ;;  %568 = vmatpush.bf16.msra.mxu3 %v483_v13  ;;  %v459_v38 = vor.u32 %v544_v34, %v458_v33 }
  0x87   :  { %372 = vmatpush.bf16.msra.mxu1 %v487_v17 }
  0x88   :  { %396 = vmatpush.bf16.msra.mxu2 %v491_v20 }
  0x8a   :  { %349 = vmatpush.bf16.msra.mxu0 %v471_v24  ;;  %569 = vmatpush.bf16.msra.mxu3 %v471_v24 }
  0x8b   :  { %373 = vmatpush.bf16.msra.mxu1 %v475_v30 }
  0x8c   :  { %397 = vmatpush.bf16.msra.mxu2 %v479_v32 }
  0x8d   :  { %73 = vadd.xlane.f32.xlu1 %v63_v36  ;;  %v543_v36 = vld [vmem:[%s892_s3 + $0x1c] sm:$0xf] }
  0x8e   :  { %v463_v44 = vor.u32 %v543_v36, %v460_v39  ;;  %350 = vmatpush.bf16.msra.mxu0 %v459_v38  ;;  %570 = vmatpush.bf16.msra.mxu3 %v459_v38 }
  0x90   :  { %374 = vmatpush.bf16.msra.mxu1 %v463_v44  ;;  %398 = vmatpush.bf16.msra.mxu2 %v467_v45 }
  0x92   :  { %351 = vmatpush.bf16.msra.mxu0 %v447_v51  ;;  %571 = vmatpush.bf16.msra.mxu3 %v447_v51 }
  0x94   :  { %375 = vmatpush.bf16.msra.mxu1 %v451_v54  ;;  %399 = vmatpush.bf16.msra.mxu2 %v455_v57 }
  0xef   :  { %v70_v37 = vpop.xlane.xlu2 %69 }
  0xf0   :  { %v79_v42 = vmul.f32 %v70_v37, %v638_v12  ;;  %v66_v43 = vpop.xlane.xlu0 %65 }
  0xf1   :  { %v77_v46 = vmul.f32 %v66_v43, %v638_v12 }
  0xf2   :  { %v85_v47 = vadd.f32 1e-05, %v79_v42 }
  0xf3   :  { %v83_v50 = vadd.f32 1e-05, %v77_v46 }
  0xf4   :  { %577 = vrsqrt.f32 %v85_v47  ;;  %vm115_vm1 = vweird.f32 %v85_v47 }
  0xf5   :  { %579 = vrsqrt.f32 %v83_v50  ;;  %vm95_vm5 = vweird.f32 %v83_v50 }
  0xf7   :  { %v76_v58 = vpop.xlane.xlu2 %75 }
  0xf8   :  { %v82_v59 = vmul.f32 %v76_v58, %v638_v12  ;;  %v68_v60 = vpop.xlane.xlu1 %67  ;;  %v72_v61 = vpop.xlane.xlu0 %71 }
  0xf9   :  { %v78_v62 = vmul.f32 %v68_v60, %v638_v12  ;;  %v80_v63 = vmul.f32 %v72_v61, %v638_v12 }
  0xfa   :  { %v578_v0 = vpop.eup %577  ;;  %v819_v1 = vadd.f32 1e-05, %v82_v59 }
  0xfb   :  { %v580_v2 = vpop.eup %579  ;;  %v110_v3 = vmul.f32 %v578_v0, %v85_v47  ;;  %v84_v4 = vadd.f32 1e-05, %v78_v62  ;;  %v86_v5 = vadd.f32 1e-05, %v80_v63  ;;  %vm116_vm2 = vweird.f32 %v578_v0 }
  0xfc   :  { %v90_v6 = vmul.f32 %v580_v2, %v83_v50  ;;  %581 = vrsqrt.f32 %v819_v1  ;;  %vm96_vm3 = vweird.f32 %v580_v2  ;;  %vm827_vm4 = vmor %vm115_vm1, %vm116_vm2  ;;  %vm145_vm15 = vweird.f32 %v819_v1 }
  0xfd   :  { %v111_v7 = vmul.f32 %v578_v0, %v110_v3  ;;  %583 = vrsqrt.f32 %v84_v4  ;;  %vm97_vm6 = vmor %vm95_vm5, %vm96_vm3  ;;  %vm125_vm7 = vweird.f32 %v86_v5  ;;  %vm105_vm10 = vweird.f32 %v84_v4 }
  0xfe   :  { %v91_v8 = vmul.f32 %v580_v2, %v90_v6  ;;  %585 = vrsqrt.f32 %v86_v5 }
  0xff   :  { %v112_v9 = vmul.f32 0.5, %v111_v7 }
 0x100   :  { %v92_v10 = vmul.f32 0.5, %v91_v8  ;;  %v74_v11 = vpop.xlane.xlu1 %73 }
 0x101   :  { %v113_v13 = vsub.f32 1.5, %v112_v9  ;;  %v81_v14 = vmul.f32 %v74_v11, %v638_v12 }
 0x102   :  { %v823_v15 = vpop.eup %581  ;;  %v93_v16 = vsub.f32 1.5, %v92_v10  ;;  %v208_v10 = vld [vmem:[%s893_s4] sm:$0x7] }
 0x103   :  { %v584_v17 = vpop.eup %583  ;;  %v87_v20 = vadd.f32 1e-05, %v81_v14  ;;  %v114_v24 = vmul.f32 %v578_v0, %v113_v13  ;;  %v140_v25 = vmul.f32 %v823_v15, %v819_v1  ;;  %vm146_vm0 = vweird.f32 %v823_v15 }
 0x104   :  { %v586_v21 = vpop.eup %585  ;;  %v94_v22 = vmul.f32 %v580_v2, %v93_v16  ;;  %v100_v23 = vmul.f32 %v584_v17, %v84_v4  ;;  %vm106_vm9 = vweird.f32 %v584_v17  ;;  %vm147_vm2 = vmor %vm145_vm15, %vm146_vm0  ;;  %v210_v11 = vperm.slane %v208_v10, 0 }
 0x105   :  { %v120_v26 = vmul.f32 %v586_v21, %v86_v5  ;;  %587 = vrsqrt.f32 %v87_v20  ;;  %v118_v34 = vsel %vm827_vm4, %v578_v0, %v114_v24  ;;  %v141_v36 = vmul.f32 %v823_v15, %v140_v25  ;;  %vm107_vm12 = vmor %vm105_vm10, %vm106_vm9 }
 0x106   :  { %v101_v12 = vmul.f32 %v584_v17, %v100_v23  ;;  %v98_v32 = vsel %vm97_vm6, %v580_v2, %v94_v22  ;;  %vm126_vm8 = vweird.f32 %v586_v21  ;;  %v151_v43 = vmul.f32 %v118_v34, %v642_v18 }
 0x107   :  { %v121_v30 = vmul.f32 %v586_v21, %v120_v26  ;;  %v149_v39 = vmul.f32 %v98_v32, %v644_v19  ;;  %vm127_vm11 = vmor %vm125_vm7, %vm126_vm8  ;;  %v142_v45 = vmul.f32 0.5, %v141_v36  ;;  %vm135_vm13 = vweird.f32 %v87_v20 }
 0x108   :  { %v102_v33 = vmul.f32 0.5, %v101_v12  ;;  %v160_v18 = vmul.f32 %v573_v41, %v151_v43  ;;  %v211_v13 = vperm.slane %v208_v10, 1 }
 0x109   :  { %v122_v37 = vmul.f32 0.5, %v121_v30  ;;  %v158_v51 = vmul.f32 %v573_v41, %v149_v39  ;;  %v143_v54 = vsub.f32 1.5, %v142_v45 }
 0x10a   :  { %v103_v38 = vsub.f32 1.5, %v102_v33  ;;  %v169_v60 = vadd.f32 %v574_v52, %v160_v18 }
 0x10b   :  { %v123_v40 = vsub.f32 1.5, %v122_v37  ;;  %v588_v42 = vpop.eup %587  ;;  %v167_v58 = vadd.f32 %v574_v52, %v158_v51  ;;  %v144_v62 = vmul.f32 %v823_v15, %v143_v54 }
 0x10c   :  { %v104_v44 = vmul.f32 %v584_v17, %v103_v38  ;;  %v130_v47 = vmul.f32 %v588_v42, %v87_v20  ;;  %vm136_vm14 = vweird.f32 %v588_v42 }
 0x10d   :  { %v124_v46 = vmul.f32 %v586_v21, %v123_v40  ;;  %vm137_vm1 = vmor %vm135_vm13, %vm136_vm14  ;;  %v148_v1 = vsel %vm147_vm2, %v823_v15, %v144_v62 }
 0x10e   :  { %v108_v48 = vsel %vm107_vm12, %v584_v17, %v104_v44  ;;  %v131_v19 = vmul.f32 %v588_v42, %v130_v47  ;;  %v154_v4 = vmul.f32 %v148_v1, %v653_v28  ;;  %v212_v17 = vperm.slane %v208_v10, 2 }
 0x10f   :  { %v150_v49 = vmul.f32 %v108_v48, %v658_v31  ;;  %v128_v50 = vsel %vm127_vm11, %v586_v21, %v124_v46 }
 0x110   :  { %v152_v53 = vmul.f32 %v128_v50, %v655_v29  ;;  %v132_v55 = vmul.f32 0.5, %v131_v19  ;;  %v163_v6 = vmul.f32 %v573_v41, %v154_v4 }
 0x111   :  { %v159_v56 = vmul.f32 %v573_v41, %v150_v49 }
 0x112   :  { %v161_v57 = vmul.f32 %v573_v41, %v152_v53  ;;  %v133_v31 = vsub.f32 1.5, %v132_v55  ;;  %v172_v8 = vadd.f32 %v574_v52, %v163_v6 }
 0x113   :  { %v168_v59 = vadd.f32 %v574_v52, %v159_v56 }
 0x114   :  { %v170_v61 = vadd.f32 %v574_v52, %v161_v57  ;;  %v134_v29 = vmul.f32 %v588_v42, %v133_v31 }
 0x115   :  { %v173_v63 = vpack.c.bf16 %v168_v59, %v167_v58 }
 0x116   :  { %v174_v0 = vpack.c.bf16 %v170_v61, %v169_v60  ;;  %v138_v2 = vsel %vm137_vm1, %v588_v42, %v134_v29 }
 0x117   :  { %352 = vmatmul.bf16.vlgmr.msra.gmra.mxu0 %v173_v63  ;;  %376 = vmatmul.bf16.vlgmr.msra.gmra.mxu1 %v173_v63  ;;  %v153_v3 = vmul.f32 %v138_v2, %v666_v35 }
 0x118   :  { %357 = vmatmul.bf16.vlgmr.msra.gmra.mxu3 %v174_v0  ;;  %400 = vmatmul.bf16.vlgmr.msra.gmra.mxu2 %v173_v63 }
 0x119   :  { %v162_v5 = vmul.f32 %v573_v41, %v153_v3 }
 0x11b   :  { %v171_v7 = vadd.f32 %v574_v52, %v162_v5 }
 0x11d   :  { %v175_v9 = vpack.c.bf16 %v172_v8, %v171_v7 }
 0x127   :  { %381 = vmatmul.bf16.gmra.mxu1 %v174_v0 }
 0x128   :  { %362 = vmatmul.bf16.gmra.mxu3 %v175_v9  ;;  %405 = vmatmul.bf16.gmra.mxu2 %v174_v0 }
 0x137   :  { %386 = vmatmul.bf16.gmra.mxu1 %v175_v9 }
 0x138   :  { %410 = vmatmul.bf16.gmra.mxu2 %v175_v9 }
 0x194   :  { %v353_v14 = vpop.f32.mrf.mxu0  ;;  %v377_v35 = vpop.f32.mrf.mxu1 }
 0x195   :  { %v354_v15 = vadd.f32 %v353_v14, %v210_v11  ;;  %v378_v28 = vadd.f32 %v377_v35, %v211_v13 }
 0x197   :  { %v416_v16 = vpack.c.bf16 %v378_v28, %v354_v15 }
 0x199   :  { %428 = vst [vmem:[%s894_s5] sm:$0xff] %v416_v16 }
 0x19b   :  { %v358_v20 = vpop.f32.mrf.mxu3  ;;  %v401_v21 = vpop.f32.mrf.mxu2 }
 0x19c   :  { %v402_v22 = vadd.f32 %v401_v21, %v212_v17  ;;  %v355_v23 = vpop.f32.mrf.mxu0  ;;  %v379_v24 = vpop.f32.mrf.mxu1  ;;  %v359_v34 = vadd.f32 %v358_v20, %v210_v11 }
 0x19d   :  { %v356_v25 = vadd.f32 %v355_v23, %v210_v11  ;;  %v380_v26 = vadd.f32 %v379_v24, %v211_v13 }
 0x19e   :  { %v417_v27 = vpack.c.bf16 %v402_v22, %v402_v22 }
 0x19f   :  { %v418_v12 = vpack.c.bf16 %v380_v26, %v356_v25 }
 0x1a0   :  { %429 = vst [vmem:[%s894_s5 + $0x8] sm:$0xf] %v417_v27 }
 0x1a1   :  { %430 = vst [vmem:[%s894_s5 + $0xc] sm:$0xff] %v418_v12 }
 0x1a3   :  { %v403_v30 = vpop.f32.mrf.mxu2  ;;  %v360_v37 = vpop.f32.mrf.mxu3 }
 0x1a4   :  { %v404_v32 = vadd.f32 %v403_v30, %v212_v17  ;;  %v382_v33 = vpop.f32.mrf.mxu1  ;;  %v361_v43 = vadd.f32 %v360_v37, %v210_v11 }
 0x1a5   :  { %v383_v36 = vadd.f32 %v382_v33, %v211_v13 }
 0x1a6   :  { %v419_v38 = vpack.c.bf16 %v404_v32, %v404_v32 }
 0x1a7   :  { %v420_v39 = vpack.c.bf16 %v383_v36, %v359_v34 }
 0x1a8   :  { %431 = vst [vmem:[%s894_s5 + $0x14] sm:$0xf] %v419_v38 }
 0x1a9   :  { %432 = vst [vmem:[%s894_s5 + $0x18] sm:$0xff] %v420_v39 }
 0x1ab   :  { %v406_v40 = vpop.f32.mrf.mxu2  ;;  %v363_v47 = vpop.f32.mrf.mxu3 }
 0x1ac   :  { %v407_v41 = vadd.f32 %v406_v40, %v212_v17  ;;  %v384_v42 = vpop.f32.mrf.mxu1  ;;  %v364_v19 = vadd.f32 %v363_v47, %v210_v11 }
 0x1ad   :  { %v385_v44 = vadd.f32 %v384_v42, %v211_v13 }
 0x1ae   :  { %v421_v45 = vpack.c.bf16 %v407_v41, %v407_v41 }
 0x1af   :  { %v422_v46 = vpack.c.bf16 %v385_v44, %v361_v43 }
 0x1b0   :  { %433 = vst [vmem:[%s894_s5 + $0x20] sm:$0xf] %v421_v45 }
 0x1b1   :  { %434 = vst [vmem:[%s894_s5 + $0x24] sm:$0xff] %v422_v46 }
 0x1b3   :  { %v408_v48 = vpop.f32.mrf.mxu2  ;;  %v365_v18 = vpop.f32.mrf.mxu3 }
 0x1b4   :  { %v409_v49 = vadd.f32 %v408_v48, %v212_v17  ;;  %v387_v50 = vpop.f32.mrf.mxu1  ;;  %v366_v57 = vadd.f32 %v365_v18, %v210_v11 }
 0x1b5   :  { %v388_v51 = vadd.f32 %v387_v50, %v211_v13 }
 0x1b6   :  { %v423_v52 = vpack.c.bf16 %v409_v49, %v409_v49 }
 0x1b7   :  { %v424_v53 = vpack.c.bf16 %v388_v51, %v364_v19 }
 0x1b8   :  { %435 = vst [vmem:[%s894_s5 + $0x2c] sm:$0xf] %v423_v52 }
 0x1b9   :  { %436 = vst [vmem:[%s894_s5 + $0x30] sm:$0xff] %v424_v53 }
 0x1bb   :  { %v411_v54 = vpop.f32.mrf.mxu2 }
 0x1bc   :  { %v412_v55 = vadd.f32 %v411_v54, %v212_v17  ;;  %v389_v56 = vpop.f32.mrf.mxu1 }
 0x1bd   :  { %v390_v31 = vadd.f32 %v389_v56, %v211_v13 }
 0x1be   :  { %v425_v58 = vpack.c.bf16 %v412_v55, %v412_v55 }
 0x1bf   :  { %v426_v59 = vpack.c.bf16 %v390_v31, %v366_v57 }
 0x1c0   :  { %437 = vst [vmem:[%s894_s5 + $0x38] sm:$0xf] %v425_v58 }
 0x1c1   :  { %438 = vst [vmem:[%s894_s5 + $0x3c] sm:$0xff] %v426_v59 }
 0x1c3   :  { %v413_v60 = vpop.f32.mrf.mxu2 }
 0x1c4   :  { %v414_v61 = vadd.f32 %v413_v60, %v212_v17 }
 0x1c6   :  { %v427_v62 = vpack.c.bf16 %v414_v61, %v414_v61 }
 0x1c8   :  { %439 = vst [vmem:[%s894_s5 + $0x44] sm:$0xf] %v427_v62 }

// kernel: transformer_decoder_block.9
= control target key start
LH: loop header
LB: loop body
LE: loop exit
PB: predicated region body
PF: predicated region fallthrough
CT: control target
= control target key end

     0   :  { %v375_v6 = vmov 128.0   ;;  %s530_s0 = inlined_call_operand.vmem [shape: f32[48,128], index: 0, kind: input, shape index: {}]   ;;  %s531_s1 = inlined_call_operand.vmem [shape: f32[1,128], index: 1, kind: input, shape index: {}]   ;;  %s532_s2 = inlined_call_operand.vmem [shape: f32[1,128], index: 2, kind: input, shape index: {}]   ;;  %s533_s4 = inlined_call_operand.vmem [shape: f32[1,128], index: 4, kind: input, shape index: {}]   ;;  %s534_s3 = inlined_call_operand.vmem [shape: bf16[128,128], index: 3, kind: input, shape index: {}]   ;;  %s535_s5 = inlined_call_operand.vmem [shape: bf16[48,128], index: 5, kind: output, shape index: {}]  }
   0x1   :  { %v24_v0 = vld [vmem:[%s530_s0 + $0x20] sm:$0xff]  ;;  %v22_v1 = vld [vmem:[%s530_s0 + $0x10] sm:$0xff]  ;;  %v25_v3 = vld [vmem:[%s530_s0 + $0x28] sm:$0xff]  ;;  %361 = vrcp.f32 %v375_v6 }
   0x2   :  { %v20_v2 = vld [vmem:[%s530_s0] sm:$0xff]  ;;  %36 = vadd.xlane.f32.xlu0 %v24_v0  ;;  %32 = vadd.xlane.f32.xlu2 %v22_v1  ;;  %v23_v4 = vld [vmem:[%s530_s0 + $0x18] sm:$0xff]  ;;  %v21_v5 = vld [vmem:[%s530_s0 + $0x8] sm:$0xff] }
   0x3   :  { %28 = vadd.xlane.f32.xlu1 %v20_v2  ;;  %v323_v37 = vld [vmem:[%s534_s3 + $0x38] sm:$0xff]  ;;  %v322_v38 = vld [vmem:[%s534_s3 + $0x30] sm:$0xff]  ;;  %v321_v39 = vld [vmem:[%s534_s3 + $0x28] sm:$0xff] }
   0x4   :  { %244 = vmatpush.bf16.msra.mxu0 %v323_v37  ;;  %342 = vmatpush.bf16.msra.mxu2 %v323_v37  ;;  %v320_v40 = vld [vmem:[%s534_s3 + $0x20] sm:$0xff]  ;;  %v319_v41 = vld [vmem:[%s534_s3 + $0x18] sm:$0xff]  ;;  %v318_v42 = vld [vmem:[%s534_s3 + $0x10] sm:$0xff] }
   0x5   :  { %341 = vmatpush.bf16.msra.mxu1 %v323_v37  ;;  %v317_v44 = vld [vmem:[%s534_s3 + $0x8] sm:$0xff]  ;;  %v316_v50 = vld [vmem:[%s534_s3] sm:$0xff] }
   0x7   :  { %v362_v7 = vpop.eup %361 }
   0x8   :  { %v41_v8 = vmul.f32 128.0, %v362_v7  ;;  %vm45_vm0 = vweird.f32 %v362_v7  ;;  %245 = vmatpush.bf16.msra.mxu0 %v322_v38  ;;  %344 = vmatpush.bf16.msra.mxu2 %v322_v38 }
   0x9   :  { %343 = vmatpush.bf16.msra.mxu1 %v322_v38 }
   0xa   :  { %38 = vadd.xlane.f32.xlu0 %v25_v3  ;;  %34 = vadd.xlane.f32.xlu2 %v23_v4  ;;  %v42_v9 = vsub.f32 1.0, %v41_v8 }
   0xb   :  { %30 = vadd.xlane.f32.xlu1 %v21_v5 }
   0xc   :  { %v43_v10 = vmul.f32 %v362_v7, %v42_v9  ;;  %246 = vmatpush.bf16.msra.mxu0 %v321_v39  ;;  %346 = vmatpush.bf16.msra.mxu2 %v321_v39 }
   0xd   :  { %345 = vmatpush.bf16.msra.mxu1 %v321_v39 }
   0xe   :  { %v44_v11 = vadd.f32 %v362_v7, %v43_v10 }
  0x10   :  { %v424_v12 = vsel %vm45_vm0, %v362_v7, %v44_v11  ;;  %247 = vmatpush.bf16.msra.mxu0 %v320_v40  ;;  %348 = vmatpush.bf16.msra.mxu2 %v320_v40 }
  0x11   :  { %347 = vmatpush.bf16.msra.mxu1 %v320_v40 }
  0x14   :  { %248 = vmatpush.bf16.msra.mxu0 %v319_v41  ;;  %350 = vmatpush.bf16.msra.mxu2 %v319_v41 }
  0x15   :  { %349 = vmatpush.bf16.msra.mxu1 %v319_v41 }
  0x18   :  { %249 = vmatpush.bf16.msra.mxu0 %v318_v42  ;;  %352 = vmatpush.bf16.msra.mxu2 %v318_v42 }
  0x19   :  { %351 = vmatpush.bf16.msra.mxu1 %v318_v42 }
  0x1c   :  { %250 = vmatpush.bf16.msra.mxu0 %v317_v44  ;;  %354 = vmatpush.bf16.msra.mxu2 %v317_v44 }
  0x1d   :  { %353 = vmatpush.bf16.msra.mxu1 %v317_v44 }
  0x20   :  { %251 = vmatpush.bf16.msra.mxu0 %v316_v50  ;;  %356 = vmatpush.bf16.msra.mxu2 %v316_v50 }
  0x21   :  { %355 = vmatpush.bf16.msra.mxu1 %v316_v50 }
  0x75   :  { %v37_v13 = vpop.xlane.xlu0 %36  ;;  %v33_v14 = vpop.xlane.xlu2 %32 }
  0x76   :  { %v51_v15 = vmul.f32 %v424_v12, %v37_v13  ;;  %v29_v16 = vpop.xlane.xlu1 %28  ;;  %v49_v31 = vmul.f32 %v424_v12, %v33_v14 }
  0x77   :  { %v47_v17 = vmul.f32 %v424_v12, %v29_v16 }
  0x78   :  { %v428_v18 = vsub.f32 %v24_v0, %v51_v15  ;;  %v452_v35 = vsub.f32 %v22_v1, %v49_v31 }
  0x79   :  { %v430_v19 = vsub.f32 %v20_v2, %v47_v17 }
  0x7a   :  { %v63_v20 = vmul.f32 %v428_v18, %v428_v18  ;;  %v61_v36 = vmul.f32 %v452_v35, %v452_v35 }
  0x7b   :  { %v59_v21 = vmul.f32 %v430_v19, %v430_v19 }
  0x7c   :  { %73 = vadd.xlane.f32.xlu0 %v63_v20 }
  0x7d   :  { %65 = vadd.xlane.f32.xlu2 %v59_v21  ;;  %v39_v22 = vpop.xlane.xlu0 %38  ;;  %v35_v23 = vpop.xlane.xlu2 %34 }
  0x7e   :  { %v52_v24 = vmul.f32 %v424_v12, %v39_v22  ;;  %v50_v25 = vmul.f32 %v424_v12, %v35_v23  ;;  %v31_v26 = vpop.xlane.xlu1 %30 }
  0x7f   :  { %v48_v27 = vmul.f32 %v424_v12, %v31_v26 }
  0x80   :  { %v439_v28 = vsub.f32 %v25_v3, %v52_v24  ;;  %v441_v29 = vsub.f32 %v23_v4, %v50_v25 }
  0x81   :  { %v443_v30 = vsub.f32 %v21_v5, %v48_v27 }
  0x82   :  { %v64_v32 = vmul.f32 %v439_v28, %v439_v28  ;;  %v62_v33 = vmul.f32 %v441_v29, %v441_v29 }
  0x83   :  { %v60_v34 = vmul.f32 %v443_v30, %v443_v30 }
  0x84   :  { %75 = vadd.xlane.f32.xlu1 %v64_v32 }
  0x85   :  { %71 = vadd.xlane.f32.xlu2 %v62_v33  ;;  %67 = vadd.xlane.f32.xlu0 %v60_v34 }
  0x8c   :  { %69 = vadd.xlane.f32.xlu1 %v61_v36  ;;  %v358_v36 = vld [vmem:[%s531_s1] ss:$0 sm:$0xff] }
  0xef   :  { %v74_v43 = vpop.xlane.xlu0 %73 }
  0xf0   :  { %v81_v45 = vmul.f32 %v74_v43, %v424_v12  ;;  %v66_v46 = vpop.xlane.xlu2 %65 }
  0xf1   :  { %v77_v47 = vmul.f32 %v66_v46, %v424_v12 }
  0xf2   :  { %v87_v48 = vadd.f32 1e-05, %v81_v45 }
  0xf3   :  { %v83_v49 = vadd.f32 1e-05, %v77_v47 }
  0xf4   :  { %363 = vrsqrt.f32 %v87_v48  ;;  %vm135_vm2 = vweird.f32 %v87_v48 }
  0xf5   :  { %365 = vrsqrt.f32 %v83_v49  ;;  %vm95_vm3 = vweird.f32 %v83_v49 }
  0xf7   :  { %v76_v51 = vpop.xlane.xlu1 %75 }
  0xf8   :  { %v72_v52 = vpop.xlane.xlu2 %71  ;;  %v68_v53 = vpop.xlane.xlu0 %67  ;;  %v82_v54 = vmul.f32 %v76_v51, %v424_v12 }
  0xf9   :  { %v80_v55 = vmul.f32 %v72_v52, %v424_v12  ;;  %v78_v56 = vmul.f32 %v68_v53, %v424_v12 }
  0xfa   :  { %v364_v57 = vpop.eup %363  ;;  %v88_v58 = vadd.f32 1e-05, %v82_v54 }
  0xfb   :  { %v366_v59 = vpop.eup %365  ;;  %v130_v60 = vmul.f32 %v364_v57, %v87_v48  ;;  %v86_v61 = vadd.f32 1e-05, %v80_v55  ;;  %v84_v62 = vadd.f32 1e-05, %v78_v56  ;;  %vm136_vm1 = vweird.f32 %v364_v57 }
  0xfc   :  { %v90_v63 = vmul.f32 %v366_v59, %v83_v49  ;;  %367 = vrsqrt.f32 %v88_v58  ;;  %vm96_vm4 = vweird.f32 %v366_v59  ;;  %vm486_vm5 = vmor %vm135_vm2, %vm136_vm1  ;;  %vm145_vm8 = vweird.f32 %v88_v58 }
  0xfd   :  { %v131_v0 = vmul.f32 %v364_v57, %v130_v60  ;;  %369 = vrsqrt.f32 %v86_v61  ;;  %vm492_vm6 = vmor %vm95_vm3, %vm96_vm4  ;;  %vm125_vm7 = vweird.f32 %v86_v61  ;;  %vm105_vm11 = vweird.f32 %v84_v62 }
  0xfe   :  { %v91_v1 = vmul.f32 %v366_v59, %v90_v63  ;;  %371 = vrsqrt.f32 %v84_v62 }
  0xff   :  { %v132_v2 = vmul.f32 0.5, %v131_v0  ;;  %v70_v3 = vpop.xlane.xlu1 %69 }
 0x100   :  { %v92_v4 = vmul.f32 0.5, %v91_v1  ;;  %v79_v5 = vmul.f32 %v70_v3, %v424_v12 }
 0x101   :  { %v133_v6 = vsub.f32 1.5, %v132_v2 }
 0x102   :  { %v368_v7 = vpop.eup %367  ;;  %v93_v8 = vsub.f32 1.5, %v92_v4  ;;  %v85_v9 = vadd.f32 1e-05, %v79_v5 }
 0x103   :  { %v370_v10 = vpop.eup %369  ;;  %v134_v11 = vmul.f32 %v364_v57, %v133_v6  ;;  %v140_v13 = vmul.f32 %v368_v7, %v88_v58  ;;  %vm146_vm9 = vweird.f32 %v368_v7  ;;  %v360_v6 = vld [vmem:[%s533_s4] ss:$0 sm:$0xff] }
 0x104   :  { %v372_v14 = vpop.eup %371  ;;  %v120_v15 = vmul.f32 %v370_v10, %v86_v61  ;;  %373 = vrsqrt.f32 %v85_v9  ;;  %v94_v16 = vmul.f32 %v366_v59, %v93_v8  ;;  %vm126_vm10 = vweird.f32 %v370_v10  ;;  %vm147_vm13 = vmor %vm145_vm8, %vm146_vm9 }
 0x105   :  { %v100_v17 = vmul.f32 %v372_v14, %v84_v62  ;;  %v141_v20 = vmul.f32 %v368_v7, %v140_v13  ;;  %v138_v24 = vsel %vm486_vm5, %v364_v57, %v134_v11  ;;  %vm106_vm12 = vweird.f32 %v372_v14  ;;  %vm505_vm14 = vmor %vm125_vm7, %vm126_vm10 }
 0x106   :  { %v121_v12 = vmul.f32 %v370_v10, %v120_v15  ;;  %v98_v32 = vsel %vm492_vm6, %v366_v59, %v94_v16  ;;  %v153_v37 = vmul.f32 %v138_v24, %v428_v18  ;;  %vm107_vm15 = vmor %vm105_vm11, %vm106_vm12  ;;  %v359_v18 = vld [vmem:[%s532_s2] ss:$0 sm:$0xff]  ;;  %vm115_vm1 = vweird.f32 %v85_v9 }
 0x107   :  { %v101_v22 = vmul.f32 %v372_v14, %v100_v17  ;;  %v142_v23 = vmul.f32 0.5, %v141_v20  ;;  %v149_v42 = vmul.f32 %v98_v32, %v430_v19 }
 0x108   :  { %v122_v26 = vmul.f32 0.5, %v121_v12  ;;  %v162_v48 = vmul.f32 %v358_v36, %v153_v37 }
 0x109   :  { %v102_v27 = vmul.f32 0.5, %v101_v22  ;;  %v143_v31 = vsub.f32 1.5, %v142_v23  ;;  %v158_v52 = vmul.f32 %v358_v36, %v149_v42 }
 0x10a   :  { %v374_v33 = vpop.eup %373  ;;  %v123_v34 = vsub.f32 1.5, %v122_v26  ;;  %v171_v56 = vadd.f32 %v359_v18, %v162_v48 }
 0x10b   :  { %v103_v38 = vsub.f32 1.5, %v102_v27  ;;  %v144_v39 = vmul.f32 %v368_v7, %v143_v31  ;;  %v110_v40 = vmul.f32 %v374_v33, %v85_v9  ;;  %vm116_vm0 = vweird.f32 %v374_v33 }
 0x10c   :  { %v124_v41 = vmul.f32 %v370_v10, %v123_v34  ;;  %vm117_vm2 = vmor %vm115_vm1, %vm116_vm0 }
 0x10d   :  { %v104_v44 = vmul.f32 %v372_v14, %v103_v38  ;;  %v111_v45 = vmul.f32 %v374_v33, %v110_v40  ;;  %v148_v46 = vsel %vm147_vm13, %v368_v7, %v144_v39 }
 0x10e   :  { %v154_v47 = vmul.f32 %v148_v46, %v439_v28  ;;  %v128_v19 = vsel %vm505_vm14, %v370_v10, %v124_v41  ;;  %v167_v28 = vadd.f32 %v359_v18, %v158_v52 }
 0x10f   :  { %v112_v49 = vmul.f32 0.5, %v111_v45  ;;  %v108_v50 = vsel %vm107_vm15, %v372_v14, %v104_v44  ;;  %v152_v58 = vmul.f32 %v128_v19, %v441_v29 }
 0x110   :  { %v150_v51 = vmul.f32 %v108_v50, %v443_v30  ;;  %v163_v53 = vmul.f32 %v358_v36, %v154_v47 }
 0x111   :  { %v113_v54 = vsub.f32 1.5, %v112_v49  ;;  %v161_v0 = vmul.f32 %v358_v36, %v152_v58 }
 0x112   :  { %v159_v55 = vmul.f32 %v358_v36, %v150_v51  ;;  %v172_v57 = vadd.f32 %v359_v18, %v163_v53 }
 0x113   :  { %v114_v59 = vmul.f32 %v374_v33, %v113_v54  ;;  %v170_v3 = vadd.f32 %v359_v18, %v161_v0 }
 0x114   :  { %v168_v60 = vadd.f32 %v359_v18, %v159_v55  ;;  %v175_v61 = vpack.c.bf16 %v172_v57, %v171_v56 }
 0x115   :  { %v118_v62 = vsel %vm117_vm2, %v374_v33, %v114_v59 }
 0x116   :  { %v173_v63 = vpack.c.bf16 %v168_v60, %v167_v28  ;;  %262 = vmatmul.bf16.vlgmr.msra.gmra.mxu2 %v175_v61  ;;  %v151_v30 = vmul.f32 %v118_v62, %v452_v35 }
 0x118   :  { %252 = vmatmul.bf16.vlgmr.msra.gmra.mxu0 %v173_v63  ;;  %v160_v1 = vmul.f32 %v358_v36, %v151_v30 }
 0x11a   :  { %v169_v2 = vadd.f32 %v359_v18, %v160_v1 }
 0x11c   :  { %v174_v4 = vpack.c.bf16 %v170_v3, %v169_v2 }
 0x11e   :  { %257 = vmatmul.bf16.vlgmr.msra.gmra.mxu1 %v174_v4 }
 0x195   :  { %v253_v5 = vpop.f32.mrf.mxu0 }
 0x196   :  { %v254_v9 = vadd.f32 %v360_v6, %v253_v5 }
 0x199   :  { %v263_v29 = vpop.f32.mrf.mxu2 }
 0x19a   :  { %v264_v35 = vadd.f32 %v360_v6, %v263_v29 }
 0x19b   :  { %v258_v7 = vpop.f32.mrf.mxu1 }
 0x19c   :  { %v259_v16 = vadd.f32 %v360_v6, %v258_v7 }
 0x19d   :  { %v255_v8 = vpop.f32.mrf.mxu0 }
 0x19e   :  { %v256_v10 = vadd.f32 %v360_v6, %v255_v8 }
 0x1a0   :  { %v327_v11 = vpack.c.bf16 %v256_v10, %v254_v9 }
 0x1a1   :  { %v265_v13 = vpop.f32.mrf.mxu2 }
 0x1a2   :  { %328 = vst [vmem:[%s535_s5] sm:$0xff] %v327_v11   ;;  %v266_v14 = vadd.f32 %v360_v6, %v265_v13 }
 0x1a3   :  { %v260_v15 = vpop.f32.mrf.mxu1 }
 0x1a4   :  { %v337_v17 = vpack.c.bf16 %v266_v14, %v264_v35  ;;  %v261_v20 = vadd.f32 %v360_v6, %v260_v15 }
 0x1a6   :  { %340 = vst [vmem:[%s535_s5 + $0x10] sm:$0xff] %v337_v17   ;;  %v332_v21 = vpack.c.bf16 %v261_v20, %v259_v16 }
 0x1a8   :  { %339 = vst [vmem:[%s535_s5 + $0x8] sm:$0xff] %v332_v21  }

// kernel: transformer_decoder_block.10
= control target key start
LH: loop header
LB: loop body
LE: loop exit
PB: predicated region body
PF: predicated region fallthrough
CT: control target
= control target key end

     0   :  { %s555_s1 = inlined_call_operand.vmem [shape: bf16[128,256], index: 1, kind: input, shape index: {}]   ;;  %s556_s0 = inlined_call_operand.vmem [shape: f32[96,128], index: 0, kind: input, shape index: {}]   ;;  %s557_s2 = inlined_call_operand.vmem [shape: f32[1,256], index: 2, kind: input, shape index: {}]   ;;  %s558_s3 = inlined_call_operand.vmem [shape: bf16[96,256], index: 3, kind: output, shape index: {}]  }
   0x1   :  { %v298_v0 = vld [vmem:[%s555_s1 + $0x70] sm:$0xf]  ;;  %v319_v1 = vld [vmem:[%s555_s1 + $0x74] sm:$0xf0]  ;;  %v318_v2 = vld [vmem:[%s555_s1 + $0x74] sm:$0xf] }
   0x2   :  { %v299_v3 = vor.u32 %v319_v1, %v298_v0  ;;  %v300_v4 = vld [vmem:[%s555_s1 + $0x78] sm:$0xf0]  ;;  %v290_v5 = vld [vmem:[%s555_s1 + $0x60] sm:$0xf]  ;;  %v317_v6 = vld [vmem:[%s555_s1 + $0x64] sm:$0xf0] }
   0x3   :  { %v303_v7 = vor.u32 %v318_v2, %v300_v4  ;;  %v316_v8 = vld [vmem:[%s555_s1 + $0x64] sm:$0xf]  ;;  %v292_v9 = vld [vmem:[%s555_s1 + $0x68] sm:$0xf0]  ;;  %v291_v10 = vor.u32 %v317_v6, %v290_v5  ;;  %v282_v12 = vld [vmem:[%s555_s1 + $0x50] sm:$0xf] }
   0x4   :  { %134 = vmatpush.bf16.msra.mxu0 %v299_v3  ;;  %320 = vmatpush.bf16.msra.mxu2 %v299_v3  ;;  %v295_v11 = vor.u32 %v316_v8, %v292_v9  ;;  %v315_v13 = vld [vmem:[%s555_s1 + $0x54] sm:$0xf0]  ;;  %v314_v14 = vld [vmem:[%s555_s1 + $0x54] sm:$0xf]  ;;  %v284_v15 = vld [vmem:[%s555_s1 + $0x58] sm:$0xf0] }
   0x5   :  { %173 = vmatpush.bf16.msra.mxu1 %v303_v7  ;;  %328 = vmatpush.bf16.msra.mxu3 %v303_v7  ;;  %v283_v16 = vor.u32 %v315_v13, %v282_v12  ;;  %v287_v17 = vor.u32 %v314_v14, %v284_v15  ;;  %v274_v18 = vld [vmem:[%s555_s1 + $0x40] sm:$0xf]  ;;  %v313_v19 = vld [vmem:[%s555_s1 + $0x44] sm:$0xf0]  ;;  %v312_v20 = vld [vmem:[%s555_s1 + $0x44] sm:$0xf] }
   0x6   :  { %v276_v21 = vld [vmem:[%s555_s1 + $0x48] sm:$0xf0]  ;;  %v275_v22 = vor.u32 %v313_v19, %v274_v18  ;;  %v266_v24 = vld [vmem:[%s555_s1 + $0x30] sm:$0xf]  ;;  %v311_v25 = vld [vmem:[%s555_s1 + $0x34] sm:$0xf0] }
   0x7   :  { %v279_v23 = vor.u32 %v312_v20, %v276_v21  ;;  %v310_v26 = vld [vmem:[%s555_s1 + $0x34] sm:$0xf]  ;;  %v268_v27 = vld [vmem:[%s555_s1 + $0x38] sm:$0xf0]  ;;  %v267_v28 = vor.u32 %v311_v25, %v266_v24  ;;  %v258_v30 = vld [vmem:[%s555_s1 + $0x20] sm:$0xf] }
   0x8   :  { %135 = vmatpush.bf16.msra.mxu0 %v291_v10  ;;  %321 = vmatpush.bf16.msra.mxu2 %v291_v10  ;;  %v271_v29 = vor.u32 %v310_v26, %v268_v27  ;;  %v309_v31 = vld [vmem:[%s555_s1 + $0x24] sm:$0xf0]  ;;  %v308_v32 = vld [vmem:[%s555_s1 + $0x24] sm:$0xf]  ;;  %v260_v33 = vld [vmem:[%s555_s1 + $0x28] sm:$0xf0] }
   0x9   :  { %174 = vmatpush.bf16.msra.mxu1 %v295_v11  ;;  %329 = vmatpush.bf16.msra.mxu3 %v295_v11  ;;  %v259_v34 = vor.u32 %v309_v31, %v258_v30  ;;  %v263_v35 = vor.u32 %v308_v32, %v260_v33  ;;  %v250_v36 = vld [vmem:[%s555_s1 + $0x10] sm:$0xf]  ;;  %v307_v37 = vld [vmem:[%s555_s1 + $0x14] sm:$0xf0]  ;;  %v306_v38 = vld [vmem:[%s555_s1 + $0x14] sm:$0xf] }
   0xa   :  { %v252_v39 = vld [vmem:[%s555_s1 + $0x18] sm:$0xf0]  ;;  %v251_v40 = vor.u32 %v307_v37, %v250_v36  ;;  %v242_v42 = vld [vmem:[%s555_s1] sm:$0xf]  ;;  %v305_v43 = vld [vmem:[%s555_s1 + $0x4] sm:$0xf0] }
   0xb   :  { %v255_v41 = vor.u32 %v306_v38, %v252_v39  ;;  %v304_v44 = vld [vmem:[%s555_s1 + $0x4] sm:$0xf]  ;;  %v244_v45 = vld [vmem:[%s555_s1 + $0x8] sm:$0xf0]  ;;  %v243_v47 = vor.u32 %v305_v43, %v242_v42  ;;  %v20_v49 = vld [vmem:[%s556_s0 + $0x30] sm:$0xff] }
   0xc   :  { %136 = vmatpush.bf16.msra.mxu0 %v283_v16  ;;  %322 = vmatpush.bf16.msra.mxu2 %v283_v16  ;;  %v14_v46 = vld [vmem:[%s556_s0] sm:$0xff]  ;;  %v15_v48 = vld [vmem:[%s556_s0 + $0x8] sm:$0xff]  ;;  %v21_v50 = vld [vmem:[%s556_s0 + $0x38] sm:$0xff]  ;;  %v247_v51 = vor.u32 %v304_v44, %v244_v45 }
   0xd   :  { %175 = vmatpush.bf16.msra.mxu1 %v287_v17  ;;  %330 = vmatpush.bf16.msra.mxu3 %v287_v17  ;;  %v26_v52 = vpack.c.bf16 %v15_v48, %v14_v46  ;;  %v29_v53 = vpack.c.bf16 %v21_v50, %v20_v49  ;;  %v16_v54 = vld [vmem:[%s556_s0 + $0x10] sm:$0xff]  ;;  %v17_v55 = vld [vmem:[%s556_s0 + $0x18] sm:$0xff]  ;;  %v22_v56 = vld [vmem:[%s556_s0 + $0x40] sm:$0xff] }
   0xe   :  { %v23_v57 = vld [vmem:[%s556_s0 + $0x48] sm:$0xff]  ;;  %v27_v58 = vpack.c.bf16 %v17_v55, %v16_v54  ;;  %v18_v60 = vld [vmem:[%s556_s0 + $0x20] sm:$0xff]  ;;  %v24_v62 = vld [vmem:[%s556_s0 + $0x50] sm:$0xff] }
   0xf   :  { %v30_v59 = vpack.c.bf16 %v23_v57, %v22_v56  ;;  %v19_v61 = vld [vmem:[%s556_s0 + $0x28] sm:$0xff]  ;;  %v25_v63 = vld [vmem:[%s556_s0 + $0x58] sm:$0xff]  ;;  %v48_v2 = vld [vmem:[%s557_s2] sm:$0x3] }
  0x10   :  { %137 = vmatpush.bf16.msra.mxu0 %v275_v22  ;;  %323 = vmatpush.bf16.msra.mxu2 %v275_v22  ;;  %v28_v0 = vpack.c.bf16 %v19_v61, %v18_v60  ;;  %v31_v1 = vpack.c.bf16 %v25_v63, %v24_v62  ;;  %v491_v3 = vperm.slane %v48_v2, 0  ;;  %v493_v4 = vperm.slane %v48_v2, 1 }
  0x11   :  { %176 = vmatpush.bf16.msra.mxu1 %v279_v23  ;;  %331 = vmatpush.bf16.msra.mxu3 %v279_v23 }
  0x14   :  { %138 = vmatpush.bf16.msra.mxu0 %v267_v28  ;;  %324 = vmatpush.bf16.msra.mxu2 %v267_v28 }
  0x15   :  { %177 = vmatpush.bf16.msra.mxu1 %v271_v29  ;;  %332 = vmatpush.bf16.msra.mxu3 %v271_v29 }
  0x18   :  { %139 = vmatpush.bf16.msra.mxu0 %v259_v34  ;;  %325 = vmatpush.bf16.msra.mxu2 %v259_v34 }
  0x19   :  { %178 = vmatpush.bf16.msra.mxu1 %v263_v35  ;;  %333 = vmatpush.bf16.msra.mxu3 %v263_v35 }
  0x1c   :  { %140 = vmatpush.bf16.msra.mxu0 %v251_v40  ;;  %326 = vmatpush.bf16.msra.mxu2 %v251_v40 }
  0x1d   :  { %179 = vmatpush.bf16.msra.mxu1 %v255_v41  ;;  %334 = vmatpush.bf16.msra.mxu3 %v255_v41 }
  0x20   :  { %141 = vmatpush.bf16.msra.mxu0 %v243_v47  ;;  %327 = vmatpush.bf16.msra.mxu2 %v243_v47 }
  0x21   :  { %180 = vmatpush.bf16.msra.mxu1 %v247_v51  ;;  %335 = vmatpush.bf16.msra.mxu3 %v247_v51 }
  0x23   :  { %142 = vmatmul.bf16.vlgmr.msra.gmra.mxu0 %v26_v52  ;;  %157 = vmatmul.bf16.vlgmr.msra.gmra.mxu2 %v29_v53 }
  0x24   :  { %181 = vmatmul.bf16.vlgmr.msra.gmra.mxu1 %v26_v52  ;;  %196 = vmatmul.bf16.vlgmr.msra.gmra.mxu3 %v29_v53 }
  0x33   :  { %147 = vmatmul.bf16.gmra.mxu0 %v27_v58  ;;  %162 = vmatmul.bf16.gmra.mxu2 %v30_v59 }
  0x34   :  { %186 = vmatmul.bf16.gmra.mxu1 %v27_v58  ;;  %201 = vmatmul.bf16.gmra.mxu3 %v30_v59 }
  0x43   :  { %152 = vmatmul.bf16.gmra.mxu0 %v28_v0  ;;  %167 = vmatmul.bf16.gmra.mxu2 %v31_v1 }
  0x44   :  { %191 = vmatmul.bf16.gmra.mxu1 %v28_v0  ;;  %206 = vmatmul.bf16.gmra.mxu3 %v31_v1 }
  0xa0   :  { %v143_v5 = vpop.f32.mrf.mxu0 }
  0xa1   :  { %v144_v6 = vadd.f32 %v143_v5, %v491_v3  ;;  %v182_v7 = vpop.f32.mrf.mxu1 }
  0xa2   :  { %v183_v8 = vadd.f32 %v182_v7, %v493_v4 }
  0xa4   :  { %v212_v9 = vpack.c.bf16 %v183_v8, %v144_v6 }
  0xa6   :  { %224 = vst [vmem:[%s558_s3] sm:$0xff] %v212_v9  ;;  %v158_v10 = vpop.f32.mrf.mxu2 }
  0xa7   :  { %v159_v11 = vadd.f32 %v158_v10, %v491_v3  ;;  %v197_v12 = vpop.f32.mrf.mxu3 }
  0xa8   :  { %v198_v13 = vadd.f32 %v197_v12, %v493_v4  ;;  %v145_v14 = vpop.f32.mrf.mxu0 }
  0xa9   :  { %v146_v15 = vadd.f32 %v145_v14, %v491_v3  ;;  %v184_v16 = vpop.f32.mrf.mxu1 }
  0xaa   :  { %v218_v17 = vpack.c.bf16 %v198_v13, %v159_v11  ;;  %v185_v18 = vadd.f32 %v184_v16, %v493_v4 }
  0xac   :  { %230 = vst [vmem:[%s558_s3 + $0x30] sm:$0xff] %v218_v17  ;;  %v213_v19 = vpack.c.bf16 %v185_v18, %v146_v15 }
  0xae   :  { %225 = vst [vmem:[%s558_s3 + $0x8] sm:$0xff] %v213_v19  ;;  %v160_v20 = vpop.f32.mrf.mxu2 }
  0xaf   :  { %v161_v21 = vadd.f32 %v160_v20, %v491_v3  ;;  %v199_v22 = vpop.f32.mrf.mxu3 }
  0xb0   :  { %v200_v23 = vadd.f32 %v199_v22, %v493_v4  ;;  %v148_v24 = vpop.f32.mrf.mxu0 }
  0xb1   :  { %v149_v25 = vadd.f32 %v148_v24, %v491_v3  ;;  %v187_v26 = vpop.f32.mrf.mxu1 }
  0xb2   :  { %v219_v27 = vpack.c.bf16 %v200_v23, %v161_v21  ;;  %v188_v28 = vadd.f32 %v187_v26, %v493_v4 }
  0xb4   :  { %231 = vst [vmem:[%s558_s3 + $0x38] sm:$0xff] %v219_v27  ;;  %v214_v29 = vpack.c.bf16 %v188_v28, %v149_v25 }
  0xb6   :  { %226 = vst [vmem:[%s558_s3 + $0x10] sm:$0xff] %v214_v29  ;;  %v163_v30 = vpop.f32.mrf.mxu2 }
  0xb7   :  { %v164_v31 = vadd.f32 %v163_v30, %v491_v3  ;;  %v202_v32 = vpop.f32.mrf.mxu3 }
  0xb8   :  { %v203_v33 = vadd.f32 %v202_v32, %v493_v4  ;;  %v150_v34 = vpop.f32.mrf.mxu0 }
  0xb9   :  { %v151_v35 = vadd.f32 %v150_v34, %v491_v3  ;;  %v189_v36 = vpop.f32.mrf.mxu1 }
  0xba   :  { %v220_v37 = vpack.c.bf16 %v203_v33, %v164_v31  ;;  %v190_v38 = vadd.f32 %v189_v36, %v493_v4 }
  0xbc   :  { %232 = vst [vmem:[%s558_s3 + $0x40] sm:$0xff] %v220_v37  ;;  %v215_v39 = vpack.c.bf16 %v190_v38, %v151_v35 }
  0xbe   :  { %227 = vst [vmem:[%s558_s3 + $0x18] sm:$0xff] %v215_v39  ;;  %v165_v40 = vpop.f32.mrf.mxu2 }
  0xbf   :  { %v166_v41 = vadd.f32 %v165_v40, %v491_v3  ;;  %v204_v42 = vpop.f32.mrf.mxu3 }
  0xc0   :  { %v205_v43 = vadd.f32 %v204_v42, %v493_v4  ;;  %v153_v44 = vpop.f32.mrf.mxu0 }
  0xc1   :  { %v154_v45 = vadd.f32 %v153_v44, %v491_v3  ;;  %v192_v46 = vpop.f32.mrf.mxu1 }
  0xc2   :  { %v221_v47 = vpack.c.bf16 %v205_v43, %v166_v41  ;;  %v193_v48 = vadd.f32 %v192_v46, %v493_v4 }
  0xc4   :  { %233 = vst [vmem:[%s558_s3 + $0x48] sm:$0xff] %v221_v47  ;;  %v216_v49 = vpack.c.bf16 %v193_v48, %v154_v45 }
  0xc6   :  { %228 = vst [vmem:[%s558_s3 + $0x20] sm:$0xff] %v216_v49  ;;  %v168_v50 = vpop.f32.mrf.mxu2 }
  0xc7   :  { %v169_v51 = vadd.f32 %v168_v50, %v491_v3  ;;  %v207_v52 = vpop.f32.mrf.mxu3 }
  0xc8   :  { %v208_v53 = vadd.f32 %v207_v52, %v493_v4  ;;  %v155_v54 = vpop.f32.mrf.mxu0 }
  0xc9   :  { %v156_v55 = vadd.f32 %v155_v54, %v491_v3  ;;  %v194_v56 = vpop.f32.mrf.mxu1 }
  0xca   :  { %v222_v57 = vpack.c.bf16 %v208_v53, %v169_v51  ;;  %v195_v58 = vadd.f32 %v194_v56, %v493_v4 }
  0xcc   :  { %234 = vst [vmem:[%s558_s3 + $0x50] sm:$0xff] %v222_v57  ;;  %v217_v59 = vpack.c.bf16 %v195_v58, %v156_v55 }
  0xce   :  { %229 = vst [vmem:[%s558_s3 + $0x28] sm:$0xff] %v217_v59  ;;  %v170_v60 = vpop.f32.mrf.mxu2 }
  0xcf   :  { %v171_v61 = vadd.f32 %v170_v60, %v491_v3  ;;  %v209_v62 = vpop.f32.mrf.mxu3 }
  0xd0   :  { %v210_v63 = vadd.f32 %v209_v62, %v493_v4 }
  0xd2   :  { %v223_v0 = vpack.c.bf16 %v210_v63, %v171_v61 }
  0xd4   :  { %235 = vst [vmem:[%s558_s3 + $0x58] sm:$0xff] %v223_v0 }

// kernel: transformer_decoder_block.8
= control target key start
LH: loop header
LB: loop body
LE: loop exit
PB: predicated region body
PF: predicated region fallthrough
CT: control target
= control target key end

     0   :  { %s1296_s21 = smov 0   ;;  %s1298_s22 = smov 0   ;;  %s1512_s0 = inlined_call_operand.vmem [shape: bf16[2,24,384], index: 0, kind: input, shape index: {}, may-alias: {0,1,2}]   ;;  %s1513_s1 = inlined_call_operand.vmem [shape: bf16[2,24,384], index: 1, kind: input, shape index: {}, may-alias: {0,1,2}]   ;;  %s1514_s2 = inlined_call_operand.vmem [shape: bf16[2,24,384], index: 2, kind: input, shape index: {}, may-alias: {0,1,2}]   ;;  %s1515_s3 = inlined_call_operand.vmem [shape: f32[2,24,128], index: 3, kind: input, shape index: {}]   ;;  %s1516_s4 = inlined_call_operand.vmem [shape: bf16[128,128], index: 4, kind: input, shape index: {}]   ;;  %s1517_s5 = inlined_call_operand.vmem [shape: f32[1,128], index: 5, kind: input, shape index: {}]   ;;  %s1518_s6 = inlined_call_operand.vmem [shape: f32[2,24,128], index: 6, kind: output, shape index: {}]  }
   0x1   :  { %s1300_s23 = smov 0   ;;  %s1302_s24 = smov 0  }
   0x2   :  { %s1304_s25 = smov 0   ;;  %s1306_s26 = smov 0  }
   0x3   :  { %s1308_s27 = smov 0  }
   0x4 LB: > { %1521 = sst [smem:[#allocation5_spill]] %s1238_s25  ;;  %s28_s28 = sadd.s32 1, %s1234_s24  ;;  %s1246_s27 = sphi %s1308_s27, %s16_s27   ;;  %s1242_s26 = sphi %s1306_s26, %s1533_s26   ;;  %s1238_s25 = sphi %s1304_s25, %s1529_s25   ;;  %s1234_s24 = sphi %s1302_s24, %s1532_s24   ;;  %s1230_s23 = sphi %s1300_s23, %s1527_s23   ;;  %s1226_s22 = sphi %s1298_s22, %s1526_s22   ;;  %s1222_s21 = sphi %s1296_s21, %s1531_s21  }
   0x5   : > { %1522 = sst [smem:[#allocation6_spill]] %s1242_s26  ;;  %p29_p0 = scmp.ge.s32.totalorder %s28_s28, 3 }
   0x6   : > { %s31_s29 = sadd.s32 1, %s1238_s25  ;;  %p1027_p1 = scmp.ge.s32.totalorder %s1246_s27, 1 }
   0x7   : > { %p288_p2 = scmp.lt.s32.totalorder %s1246_s27, 19  ;;  %s1535_s28 = smov (%p29_p0, %s28_s28), 0 }
   0x8   : > { %1523 = sst [smem:[#allocation7_spill]] %s1535_s28  ;;  %s1537_s29 = smov (!%p29_p0, %s31_s29), %s1238_s25 }
   0x9   : > { %p289_p3 = pnand %p1027_p1, %p288_p2  ;;  %p33_p4 = scmp.ge.s32.totalorder %s1537_s29, 3 }
   0xa   : > { %s35_s30 = sadd.s32 1, %s1242_s26  ;;  %p353_p6 = scmp.lt.s32.totalorder (!%p289_p3), %s1230_s23, 1 }
   0xb   : > { %s1539_s29 = smov (%p33_p4, %s1537_s29), 0  ;;  %s1541_s30 = smov (!%p33_p4, %s35_s30), %s1242_s26 }
   0xc   : > { %1524 = sst [smem:[#allocation8_spill]] %s1539_s29  ;;  %p37_p5 = scmp.ge.s32.totalorder %s1541_s30, 2 }
   0xd   : > { %292 = sbr.rel (%p289_p3) target bundleno = 1352 (0x548), region = 44  ;;  %p355_p7 = scmp.lt.s32.totalorder (!%p289_p3), %s1226_s22, 2 }
   0xe   : > { %s1543_s30 = smov (%p37_p5, %s1541_s30), 0  ;;  %p364_p8 = scmp.lt.s32.totalorder (!%p289_p3), %s1222_s21, 2 }
   0xf   : > { %1525 = sst [smem:[#allocation9_spill]] %s1543_s30  ;;  %p1033_p9 = scmp.ne.s32.totalorder (!%p289_p3), %s1222_s21, 0 }
  0x12   : > { %s1545_s23 = smov (!%p353_p6, %s1230_s23), 1  ;;  %s1547_s22 = smov (!%p355_p7, %s1226_s22), 2 }
  0x13   : > { %s1088_s7 = smul.u32 9, %s1545_s23 }
  0x14   : > { %s1087_s8 = smul.u32 3, %s1547_s22 }
  0x15   : > { %s365_s9 = scalar_select %p364_p8, %s1222_s21, 2 }
  0x16   : > { %s359_s10 = sadd.s32 %s1088_s7, %s1087_s8  ;;  %s1089_s11 = smul.u32 3, %s1545_s23 }
  0x17   : > { %s1028_s12 = sshll.u32 %s359_s10, 2  ;;  %s940_s13 = smul.u32 3, %s365_s9 }
  0x18   : > { %s361_s16 = scalar_lea.vmem %s1512_s0, %s1028_s12  ;;  %s387_s17 = sadd.s32 %s1089_s11, %s1547_s22 }
  0x19   : > { %s942_s18 = sadd.s32 %s1088_s7, %s940_s13  ;;  %s1031_s19 = sshll.u32 %s387_s17, 3 }
  0x1a   : > { %s1029_s20 = sshll.u32 %s942_s18, 2  ;;  %s1348_s28 = scalar_lea.vmem %s1515_s3, %s1031_s19 }
  0x1b   : > { %s944_s8 = scalar_lea.vmem %s1513_s1, %s1029_s20  ;;  %s1356_s9 = scalar_lea.vmem %s1514_s2, %s1029_s20 }
  0x1c   : > { %s1361_s22 = scalar_lea.vmem %s1518_s6, %s1031_s19  ;;  %402 = sbr.rel (%p1033_p9) target bundleno = 37 (0x25), region = 48 }
  0x21   : > { %vm403_vm0 = vcmask 31744   ;;  %v1248_v0 = vmov -inf   ;;  %v1249_v1 = vmov 0.0  }
  0x22   : > { %404 = vst.msk [vmem:[#allocation2] sm:$0xff] %vm403_vm0, %v1248_v0 }
  0x23   : > { %405 = vst.msk [vmem:[#allocation3] sm:$0xff] %vm403_vm0, %v1249_v1 }
  0x24   : > { %406 = vst [vmem:[#allocation4] sm:$0xff] %v1249_v1 }
  0x25 PF: > { %v1034_v2 = vld [vmem:[%s944_s8 + $0x4] sm:$0xf]  ;;  %vm410_vm1 = vcmask 261120   ;;  %v407_v4 = vld [vmem:[%s361_s16] sm:$0xf]  ;;  %vm431_vm2 = vcmask 64512  }
  0x26   : > { %v415_v3 = vsel %vm410_vm1, %v1034_v2, 0  ;;  %v492_v7 = vunpack.c.l.b16 %v1034_v2  ;;  %s1250_s25 = smov 64   ;;  %v487_v10 = vunpack.c.l.b16 %v407_v4  ;;  %s1251_s26 = smov 96   ;;  %v1253_v12 = vmov 0   ;;  %v1035_v19 = vld [vmem:[%s1356_s9 + $0x8] sm:$0xf] }
  0x27   : > { %424 = vmatpush.bf16.xpose.msra.mxu0 %v415_v3  ;;  %s1252_s29 = smov 32   ;;  %1159 = vset.pattern.permute.xlu1 %v1253_v12  ;;  %vm453_vm3 = vcmask 7168   ;;  %vm466_vm4 = vcmask 1043456   ;;  %v548_v43 = vunpack.c.l.b16 %v1035_v19  ;;  %v1254_v46 = vmov 1   ;;  %p1044_p10 = scmp.ne.s32.totalorder %s1222_s21, 2 }
  0x28   : > { %v493_v8 = vpack.c.b16 %v492_v7, %v492_v7  ;;  %v488_v11 = vpack.c.b16 %v487_v10, %v487_v10  ;;  %v468_v20 = vsel %vm466_vm4, %v1035_v19, 0  ;;  %1160 = vset.pattern.permute.xlu2 %v1254_v46  ;;  %v1255_v47 = vmov 2  }
  0x29   : > { %v1372_v13 = vld [vmem:[#allocation2] sm:$0xff]  ;;  %477 = vmatpush.bf16.msra.mxu1 %v468_v20  ;;  %v549_v44 = vpack.c.b16 %v548_v43, %v548_v43  ;;  %1161 = vset.pattern.permute.xlu0 %v1255_v47  ;;  %v1256_v48 = vmov 3   ;;  %vm537_vm5 = vcmask 15368   ;;  %vm624_vm6 = vcmask 23568  }
  0x2a   : > { %581 = vrot.lane.b32.xlu2 %v493_v8, %s1250_s25  ;;  %vm708_vm7 = vcmask 31768   ;;  %vm576_vm8 = vcmask 523520   ;;  %vm660_vm9 = vcmask 785920   ;;  %vm744_vm10 = vcmask 1048320  }
  0x2e   : > { %1036 = vmatmul.msk.bf16.vlgmr.msra.gmra.mxu0 %vm410_vm1, %v407_v4 }
  0x32   : > { %579 = vrot.lane.b32.xlu2 %v488_v11, %s1250_s25 }
  0x3a   : > { %663 = vrot.lane.b32.xlu2 %v488_v11, %s1252_s29 }
  0x84   : > { %v582_v21 = vpop.permute.xlu2 %581 }
  0x85   : > { %v587_v22 = vsel %vm410_vm1, %v582_v21, 0 }
  0x86   : > { %596 = vmatpush.bf16.xpose.msrb.mxu1 %v587_v22 }
  0x8c   : > { %v580_v29 = vpop.permute.xlu2 %579 }
  0x94   : > { %v664_v32 = vpop.permute.xlu2 %663 }
  0xab   : > { %v426_v5 = vpop.f32.mrf.mxu0 }
  0xac   : > { %v432_v6 = vsel %vm431_vm2, %v426_v5, -inf }
  0xad   : > { %433 = vmax.xlane.f32.xlu0 %v432_v6 }
  0xb3   : > { %v428_v9 = vpop.f32.mrf.mxu0 }
  0xc1   : > { %494 = vrot.lane.b32.xlu0 %v493_v8, %s1251_s26 }
 0x120   : > { %v434_v14 = vpop.xlane.xlu0 %433 }
 0x121   : > { %v1375_v15 = vmax.f32 %v1372_v13, %v434_v14 }
 0x123   : > { %v436_v16 = vsub.f32 %v1372_v13, %v1375_v15  ;;  %485 = vst.msk [vmem:[#allocation2] sm:$0xff] %vm453_vm3, %v1375_v15  ;;  %441 = vperm.xlu1 %1159, %v1375_v15   ;;  %v455_v15 = vld [vmem:[#allocation4] sm:$0xff] }
 0x125   : > { %v437_v54 = vmul.f32 1.442695, %v436_v16 }
 0x12a   : > { %v515_v49 = vld [vmem:[#allocation2] sm:$0xff] }
 0x12b   : > { %489 = vrot.lane.b32.xlu1 %v488_v11, %s1251_s26 }
 0x12c   : > { %1162 = vset.pattern.permute.xlu1 %v1256_v48 }
 0x133   : > { %665 = vrot.lane.b32.xlu1 %v493_v8, %s1252_s29  ;;  %v495_v17 = vpop.permute.xlu0 %494 }
 0x134   : > { %v500_v18 = vsel %vm410_vm1, %v495_v17, 0 }
 0x135   : > { %509 = vmatpush.bf16.xpose.msra.mxu2 %v500_v18 }
 0x195   : > { %v442_v23 = vpop.permute.xlu1 %441 }
 0x196   : > { %v444_v24 = vsub.f32 %v426_v5, %v442_v23 }
 0x198   : > { %v445_v25 = vmul.f32 1.442695, %v444_v24 }
 0x19a   : > { %1168 = vpow2.f32 %v445_v25 }
 0x19b   : > { %1170 = vpow2.f32 %v437_v54 }
 0x19d   : > { %v490_v26 = vpop.permute.xlu1 %489 }
 0x19e   : > { %1038 = vmatmul.msk.bf16.vlgmr.msra.gmra.mxu2 %vm410_vm1, %v490_v26 }
 0x1a0   : > { %v1389_v27 = vpop.eup %1168 }
 0x1a1   : > { %v462_v28 = vpack.c.bf16 %v1389_v27, %v1389_v27  ;;  %v1171_v61 = vpop.eup %1170  ;;  %v449_v1 = vsel %vm431_vm2, %v1389_v27, 0.0 }
 0x1a3   : > { %1037 = vmatmul.msk.bf16.vlgmr.msra.gmra.mxu1 %vm431_vm2, %v462_v28 }
 0x1a5   : > { %v666_v30 = vpop.permute.xlu1 %665 }
 0x1a6   : > { %v671_v31 = vsel %vm410_vm1, %v666_v30, 0 }
 0x1a7   : > { %680 = vmatpush.bf16.xpose.msrb.mxu0 %v671_v31  ;;  %v447_v31 = vld [vmem:[#allocation3] sm:$0xff] }
 0x1ae   : > { %1042 = vmatmul.msk.bf16.vlgmr.msrb.gmra.mxu0 %vm410_vm1, %v664_v32  ;;  %v448_v32 = vmul.f32 %v1171_v61, %v447_v31 }
 0x1b3   : > { %1040 = vmatmul.msk.bf16.vlgmr.msrb.gmra.mxu1 %vm410_vm1, %v580_v29 }
 0x220   : > { %v1397_v33 = vpop.f32.mrf.mxu1 }
 0x221   : > { %v1399_v34 = vpop.f32.mrf.mxu2 }
 0x222   : > { %v516_v35 = vsel %vm431_vm2, %v1399_v34, -inf }
 0x223   : > { %517 = vmax.xlane.f32.xlu1 %v516_v35 }
 0x228   : > { %v481_v36 = vpop.f32.mrf.mxu1 }
 0x229   : > { %v513_v37 = vpop.f32.mrf.mxu2 }
 0x22b   : > { %v1403_v38 = vpop.f32.mrf.mxu0 }
 0x22c   : > { %v687_v39 = vsel %vm431_vm2, %v1403_v38, -inf }
 0x22d   : > { %688 = vmax.xlane.f32.xlu0 %v687_v39 }
 0x230   : > { %v1407_v40 = vpop.f32.mrf.mxu1 }
 0x231   : > { %v603_v41 = vsel %vm431_vm2, %v1407_v40, -inf }
 0x232   : > { %604 = vmax.xlane.f32.xlu2 %v603_v41 }
 0x233   : > { %v684_v42 = vpop.f32.mrf.mxu0 }
 0x238   : > { %v600_v45 = vpop.f32.mrf.mxu1 }
 0x23c   : > { %550 = vrot.lane.b32.xlu1 %v549_v44, %s1251_s26 }
 0x296   : > { %v518_v50 = vpop.xlane.xlu1 %517 }
 0x297   : > { %v519_v51 = vmax.f32 %v515_v49, %v518_v50 }
 0x299   : > { %578 = vst.msk [vmem:[#allocation2] sm:$0xff] %vm537_vm5, %v519_v51  ;;  %525 = vperm.xlu2 %1160, %v519_v51   ;;  %v520_v57 = vsub.f32 %v515_v49, %v519_v51 }
 0x29b   : > { %v521_v59 = vmul.f32 1.442695, %v520_v57 }
 0x29d   : > { %1172 = vpow2.f32 %v521_v59 }
 0x2a0   : > { %v602_v53 = vld [vmem:[#allocation2] sm:$0xff]  ;;  %v689_v58 = vpop.xlane.xlu0 %688 }
 0x2a1   : > { %634 = vrot.lane.b32.xlu2 %v549_v44, %s1250_s25 }
 0x2a2   : > { %1163 = vset.pattern.permute.xlu2 %v1253_v12 }
 0x2a3   : > { %v1173_v0 = vpop.eup %1172 }
 0x2a5   : > { %v605_v52 = vpop.xlane.xlu2 %604 }
 0x2a6   : > { %v606_v55 = vmax.f32 %v602_v53, %v605_v52 }
 0x2a8   : > { %v607_v56 = vsub.f32 %v602_v53, %v606_v55  ;;  %662 = vst.msk [vmem:[#allocation2] sm:$0xff] %vm624_vm6, %v606_v55  ;;  %612 = vperm.xlu0 %1161, %v606_v55  }
 0x2a9   : > { %718 = vrot.lane.b32.xlu2 %v549_v44, %s1252_s29 }
 0x2aa   : > { %v608_v4 = vmul.f32 1.442695, %v607_v56 }
 0x2ac   : > { %1174 = vpow2.f32 %v608_v4 }
 0x2ae   : > { %v551_v2 = vpop.permute.xlu1 %550 }
 0x2af   : > { %v1420_v60 = vld [vmem:[#allocation2] sm:$0xff]  ;;  %v556_v3 = vsel %vm466_vm4, %v551_v2, 0 }
 0x2b0   : > { %v1423_v62 = vmax.f32 %v1420_v60, %v689_v58  ;;  %1167 = vset.pattern.permute.xlu0 %v1256_v48  ;;  %565 = vmatpush.bf16.msra.mxu3 %v556_v3 }
 0x2b1   : > { %458 = vperm.xlu2 %1163, %v1171_v61  }
 0x2b2   : > { %v691_v63 = vsub.f32 %v1420_v60, %v1423_v62  ;;  %746 = vst.msk [vmem:[#allocation2] sm:$0xff] %vm708_vm7, %v1423_v62  ;;  %696 = vperm.xlu1 %1162, %v1423_v62   ;;  %v1433_v6 = vpop.eup %1174 }
 0x2b4   : > { %v692_v45 = vmul.f32 1.442695, %v691_v63 }
 0x2b9   : > { %1164 = vset.pattern.permute.xlu2 %v1254_v46 }
 0x2ba   : > { %542 = vperm.xlu2 %1164, %v1173_v0   ;;  %1165 = vset.pattern.permute.xlu1 %v1255_v47 }
 0x2c2   : > { %1166 = vset.pattern.permute.xlu2 %v1256_v48 }
 0x2dc   : > { %450 = vadd.xlane.f32.xlu1 %v449_v1 }
 0x2f3   : > { %v526_v5 = vpop.permute.xlu2 %525 }
 0x2f4   : > { %v528_v7 = vsub.f32 %v1399_v34, %v526_v5 }
 0x2f5   : > { %629 = vperm.xlu1 %1165, %v1433_v6  }
 0x2f6   : > { %v529_v8 = vmul.f32 1.442695, %v528_v7 }
 0x2f8   : > { %1176 = vpow2.f32 %v529_v8 }
 0x2fb   : > { %v635_v9 = vpop.permute.xlu2 %634 }
 0x2fc   : > { %v640_v13 = vsel %vm466_vm4, %v635_v9, 0 }
 0x2fd   : > { %649 = vmatpush.bf16.msrb.mxu3 %v640_v13 }
 0x2fe   : > { %v1177_v10 = vpop.eup %1176 }
 0x2ff   : > { %v533_v11 = vsel %vm431_vm2, %v1177_v10, 0.0  ;;  %v546_v12 = vpack.c.bf16 %v1177_v10, %v1177_v10 }
 0x300   : > { %534 = vadd.xlane.f32.xlu0 %v533_v11 }
 0x301   : > { %1039 = vmatmul.msk.bf16.vlgmr.msra.gmra.mxu3 %vm431_vm2, %v546_v12 }
 0x303   : > { %v719_v14 = vpop.permute.xlu2 %718 }
 0x304   : > { %v724_v16 = vsel %vm466_vm4, %v719_v14, 0 }
 0x305   : > { %733 = vmatpush.bf16.msrb.mxu2 %v724_v16 }
 0x30b   : > { %v459_v17 = vpop.permute.xlu2 %458 }
 0x30c   : > { %v461_v18 = vmul.f32 %v459_v17, %v455_v15 }
 0x30e   : > { %v483_v19 = vadd.f32 %v1397_v33, %v461_v18 }
 0x310   : > { %484 = vst.msk [vmem:[#allocation4] sm:$0xff] %vm410_vm1, %v483_v19 }
 0x314   : > { %v543_v48 = vpop.permute.xlu2 %542 }
 0x317   : > { %v539_v49 = vld [vmem:[#allocation4] sm:$0xff] }
 0x318   : > { %v545_v50 = vmul.f32 %v543_v48, %v539_v49 }
 0x31a   : > { %v613_v20 = vpop.permute.xlu0 %612 }
 0x31b   : > { %v615_v21 = vsub.f32 %v1407_v40, %v613_v20 }
 0x31d   : > { %v616_v22 = vmul.f32 1.442695, %v615_v21 }
 0x31f   : > { %1178 = vpow2.f32 %v616_v22 }
 0x324   : > { %v697_v23 = vpop.permute.xlu1 %696 }
 0x325   : > { %v1179_v24 = vpop.eup %1178  ;;  %v699_v25 = vsub.f32 %v1403_v38, %v697_v23 }
 0x326   : > { %v633_v26 = vpack.c.bf16 %v1179_v24, %v1179_v24  ;;  %v620_v42 = vsel %vm431_vm2, %v1179_v24, 0.0 }
 0x327   : > { %v700_v27 = vmul.f32 1.442695, %v699_v25 }
 0x328   : > { %1041 = vmatmul.msk.bf16.vlgmr.msrb.gmra.mxu3 %vm431_vm2, %v633_v26 }
 0x329   : > { %1180 = vpow2.f32 %v700_v27 }
 0x32a   : > { %1182 = vpow2.f32 %v692_v45 }
 0x32f   : > { %v1181_v28 = vpop.eup %1180 }
 0x330   : > { %v704_v29 = vsel %vm431_vm2, %v1181_v28, 0.0  ;;  %v717_v30 = vpack.c.bf16 %v1181_v28, %v1181_v28  ;;  %v1183_v47 = vpop.eup %1182 }
 0x331   : > { %705 = vadd.xlane.f32.xlu1 %v704_v29 }
 0x332   : > { %1043 = vmatmul.msk.bf16.vlgmr.msrb.gmra.mxu2 %vm431_vm2, %v717_v30 }
 0x34f   : > { %v451_v33 = vpop.xlane.xlu1 %450 }
 0x350   : > { %v452_v34 = vadd.f32 %v451_v33, %v448_v32 }
 0x352   : > { %454 = vst.msk [vmem:[#allocation3] sm:$0xff] %vm453_vm3, %v452_v34 }
 0x359   : > { %v531_v35 = vld [vmem:[#allocation3] sm:$0xff] }
 0x35a   : > { %v532_v36 = vmul.f32 %v1173_v0, %v531_v35 }
 0x367   : > { %v630_v54 = vpop.permute.xlu1 %629 }
 0x373   : > { %v535_v37 = vpop.xlane.xlu0 %534 }
 0x374   : > { %v536_v38 = vadd.f32 %v535_v37, %v532_v36 }
 0x376   : > { %538 = vst.msk [vmem:[#allocation3] sm:$0xff] %vm537_vm5, %v536_v38 }
 0x37d   : > { %v618_v56 = vld [vmem:[#allocation3] sm:$0xff] }
 0x37e   : > { %v619_v59 = vmul.f32 %v1433_v6, %v618_v56 }
 0x384   : > { %v567_v39 = vpop.f32.mrf.mxu3 }
 0x385   : > { %572 = vrot.lane.b32.xlu2 %v567_v39, %s1252_s29 }
 0x38c   : > { %v569_v40 = vpop.f32.mrf.mxu3 }
 0x3a4   : > { %v706_v5 = vpop.xlane.xlu1 %705 }
 0x3ab   : > { %v651_v41 = vpop.f32.mrf.mxu3 }
 0x3ac   : > { %656 = vrot.lane.b32.xlu0 %v651_v41, %s1250_s25 }
 0x3ae   : > { %621 = vadd.xlane.f32.xlu2 %v620_v42 }
 0x3b3   : > { %v653_v43 = vpop.f32.mrf.mxu3 }
 0x3b5   : > { %v735_v44 = vpop.f32.mrf.mxu2 }
 0x3b6   : > { %740 = vrot.lane.b32.xlu0 %v735_v44, %s1251_s26 }
 0x3bd   : > { %v737_v46 = vpop.f32.mrf.mxu2 }
 0x3c6   : > { %713 = vperm.xlu2 %1166, %v1183_v47  }
 0x3df   : > { %v573_v51 = vpop.permute.xlu2 %572 }
 0x3e0   : > { %v575_v52 = vadd.f32 %v573_v51, %v545_v50 }
 0x3e2   : > { %577 = vst.msk [vmem:[#allocation4] sm:$0xff] %vm576_vm8, %v575_v52 }
 0x3e9   : > { %v626_v53 = vld [vmem:[#allocation4] sm:$0xff] }
 0x3ea   : > { %v632_v55 = vmul.f32 %v630_v54, %v626_v53 }
 0x41e   : > { %v657_v57 = vpop.permute.xlu0 %656 }
 0x41f   : > { %v659_v58 = vadd.f32 %v657_v57, %v632_v55 }
 0x421   : > { %661 = vst.msk [vmem:[#allocation4] sm:$0xff] %vm660_vm9, %v659_v58  ;;  %v622_v60 = vpop.xlane.xlu2 %621 }
 0x422   : > { %v623_v61 = vadd.f32 %v622_v60, %v619_v59 }
 0x424   : > { %625 = vst.msk [vmem:[#allocation3] sm:$0xff] %vm624_vm6, %v623_v61 }
 0x428   : > { %v710_v62 = vld [vmem:[#allocation4] sm:$0xff]  ;;  %v741_v2 = vpop.permute.xlu0 %740 }
 0x429   : > { %v714_v63 = vpop.permute.xlu2 %713 }
 0x42a   : > { %v716_v0 = vmul.f32 %v714_v63, %v710_v62 }
 0x42b   : > { %v702_v1 = vld [vmem:[#allocation3] sm:$0xff] }
 0x42c   : > { %v703_v3 = vmul.f32 %v1183_v47, %v702_v1  ;;  %v743_v4 = vadd.f32 %v741_v2, %v716_v0  ;;  %750 = sbr.rel (%p1044_p10) target bundleno = 1352 (0x548), region = 52 }
 0x42e   : > { %v707_v7 = vadd.f32 %v706_v5, %v703_v3  ;;  %745 = vst.msk [vmem:[#allocation4] sm:$0xff] %vm744_vm10, %v743_v4 }
 0x430   : > { %709 = vst.msk [vmem:[#allocation3] sm:$0xff] %vm708_vm7, %v707_v7 }
 0x431   : > { %v1086_v8 = vld [vmem:[%s1516_s4 + $0x38] sm:$0xff]  ;;  %v1257_v9 = vmov 0   ;;  %v1258_v10 = vmov 2   ;;  %v1085_v11 = vld [vmem:[%s1516_s4 + $0x30] sm:$0xff]  ;;  %v1084_v12 = vld [vmem:[%s1516_s4 + $0x28] sm:$0xff]  ;;  %v1259_v15 = vmov 1  }
 0x432   : > { %1184 = vset.pattern.permute.xlu0 %v1257_v9  ;;  %1186 = vset.pattern.permute.xlu1 %v1258_v10  ;;  %v1083_v14 = vld [vmem:[%s1516_s4 + $0x20] sm:$0xff]  ;;  %v1260_v16 = vmov 3   ;;  %v1082_v17 = vld [vmem:[%s1516_s4 + $0x18] sm:$0xff]  ;;  %v1081_v18 = vld [vmem:[%s1516_s4 + $0x10] sm:$0xff]  ;;  %vm771_vm11 = vcmask 523264   ;;  %vm773_vm12 = vcmask 785408  }
 0x433   : > { %846 = vmatpush.bf16.msra.mxu0 %v1086_v8  ;;  %v1080_v19 = vld [vmem:[%s1516_s4 + $0x8] sm:$0xff]  ;;  %v1079_v20 = vld [vmem:[%s1516_s4] sm:$0xff] }
 0x434   : > { %v1189_v31 = vld [vmem:[%s1517_s5] ss:$0 sm:$0xff] }
 0x435   : > { %v775_v26 = vld [vmem:[#allocation4] sm:$0xff]  ;;  %v859_v33 = vld [vmem:[%s1348_s28] sm:$0xff] }
 0x437   : > { %v751_v6 = vld [vmem:[#allocation3] sm:$0xff]  ;;  %847 = vmatpush.bf16.msra.mxu0 %v1085_v11 }
 0x438   : > { %1190 = vrcp.f32 %v751_v6 }
 0x43b   : > { %848 = vmatpush.bf16.msra.mxu0 %v1084_v12 }
 0x43e   : > { %v1191_v13 = vpop.eup %1190 }
 0x43f   : > { %755 = vperm.xlu0 %1184, %v1191_v13   ;;  %763 = vperm.xlu1 %1186, %v1191_v13  }
 0x440   : > { %849 = vmatpush.bf16.msra.mxu0 %v1083_v14 }
 0x444   : > { %850 = vmatpush.bf16.msra.mxu0 %v1082_v17 }
 0x447   : > { %1185 = vset.pattern.permute.xlu0 %v1259_v15  ;;  %1187 = vset.pattern.permute.xlu1 %v1260_v16 }
 0x448   : > { %759 = vperm.xlu0 %1185, %v1191_v13   ;;  %767 = vperm.xlu1 %1187, %v1191_v13  }
 0x449   : > { %851 = vmatpush.bf16.msra.mxu0 %v1081_v18 }
 0x44d   : > { %852 = vmatpush.bf16.msra.mxu0 %v1080_v19 }
 0x450   : > { %1188 = vset.pattern.permute.xlu0 %v1260_v16 }
 0x451   : > { %853 = vmatpush.bf16.msra.mxu0 %v1079_v20 }
 0x4b1   : > { %v756_v21 = vpop.permute.xlu0 %755  ;;  %v764_v22 = vpop.permute.xlu1 %763 }
 0x4ba   : > { %v760_v23 = vpop.permute.xlu0 %759  ;;  %v768_v24 = vpop.permute.xlu1 %767 }
 0x4bb   : > { %v770_v25 = vsel %vm410_vm1, %v756_v21, %v760_v23 }
 0x4bc   : > { %v772_v27 = vsel %vm771_vm11, %v770_v25, %v764_v22 }
 0x4bd   : > { %v774_v28 = vsel %vm773_vm12, %v772_v27, %v768_v24 }
 0x4be   : > { %v776_v29 = vmul.f32 %v775_v26, %v774_v28 }
 0x4c0   : > { %v777_v30 = vpack.c.bf16 %v776_v29, %v776_v29 }
 0x4c2   : > { %854 = vmatmul.bf16.vlgmr.msra.gmra.mxu0 %v777_v30 }
 0x53f   : > { %v855_v32 = vpop.f32.mrf.mxu0 }
 0x540   : > { %v856_v34 = vadd.f32 %v1189_v31, %v855_v32 }
 0x542   : > { %v860_v35 = vadd.f32 %v859_v33, %v856_v34 }
 0x544   : > { %861 = vst [vmem:[%s1361_s22] sm:$0xff] %v860_v35 }
 0x547   : > { %v857_v36 = vpop.f32.mrf.mxu0 }
 0x548 PF: > { %s16_s27 = sadd.s32 1, %s1246_s27   ;;  %s1526_s22 = sld [smem:[#allocation5_spill]] }
 0x549   : > { %p13_p11 = scmp.ge.s32.totalorder %s16_s27, 20   ;;  %s1527_s23 = sld [smem:[#allocation6_spill]] }
 0x54a   : > { %s1528_s26 = sld [smem:[#allocation7_spill]]  ;;  %s1531_s21 = smov %s1234_s24 }
 0x54b   : > { %s1529_s25 = sld [smem:[#allocation8_spill]] }
 0x54c   : > { %s1530_s29 = sld [smem:[#allocation9_spill]] }
 0x54e   :  { %15 = sbr.rel (!%p13_p11) target bundleno = 4 (0x4), region = 91 }
 0x550   : > { %s1532_s24 = smov %s1528_s26 }
 0x552   : > { %s1533_s26 = smov %s1530_s29 }

// kernel: transformer_decoder_block.13
= control target key start
LH: loop header
LB: loop body
LE: loop exit
PB: predicated region body
PF: predicated region fallthrough
CT: control target
= control target key end

     0   :  { %s530_s1 = inlined_call_operand.vmem [shape: bf16[256,128], index: 1, kind: input, shape index: {}]   ;;  %s531_s2 = inlined_call_operand.vmem [shape: f32[1,128], index: 2, kind: input, shape index: {}]   ;;  %s532_s0 = inlined_call_operand.vmem [shape: bf16[48,256], index: 0, kind: input, shape index: {}]   ;;  %s533_s3 = inlined_call_operand.vmem [shape: f32[48,128], index: 3, kind: input, shape index: {}, may-alias: {3,4}]   ;;  %s534_s4 = inlined_call_operand.vmem [shape: f32[48,128], index: 4, kind: output, shape index: {}, may-alias: {3,4}]  }
   0x1   :  { %v356_v0 = vld [vmem:[%s530_s1 + $0x38] sm:$0xff]  ;;  %v355_v2 = vld [vmem:[%s530_s1 + $0x30] sm:$0xff]  ;;  %v354_v4 = vld [vmem:[%s530_s1 + $0x28] sm:$0xff] }
   0x2   :  { %v364_v1 = vld [vmem:[%s530_s1 + $0x78] sm:$0xff]  ;;  %365 = vmatpush.bf16.msra.mxu2 %v356_v0  ;;  %v363_v3 = vld [vmem:[%s530_s1 + $0x70] sm:$0xff]  ;;  %185 = vmatpush.bf16.msra.mxu0 %v356_v0  ;;  %v362_v5 = vld [vmem:[%s530_s1 + $0x68] sm:$0xff] }
   0x3   :  { %373 = vmatpush.bf16.msra.mxu3 %v364_v1  ;;  %209 = vmatpush.bf16.msra.mxu1 %v364_v1  ;;  %v353_v6 = vld [vmem:[%s530_s1 + $0x20] sm:$0xff]  ;;  %v352_v8 = vld [vmem:[%s530_s1 + $0x18] sm:$0xff]  ;;  %v351_v10 = vld [vmem:[%s530_s1 + $0x10] sm:$0xff] }
   0x4   :  { %v361_v7 = vld [vmem:[%s530_s1 + $0x60] sm:$0xff]  ;;  %v360_v9 = vld [vmem:[%s530_s1 + $0x58] sm:$0xff]  ;;  %v359_v11 = vld [vmem:[%s530_s1 + $0x50] sm:$0xff] }
   0x5   :  { %v350_v12 = vld [vmem:[%s530_s1 + $0x8] sm:$0xff]  ;;  %v349_v14 = vld [vmem:[%s530_s1] sm:$0xff]  ;;  %v265_v16 = vld [vmem:[%s532_s0 + $0x10] sm:$0xf] }
   0x6   :  { %366 = vmatpush.bf16.msra.mxu2 %v355_v2  ;;  %186 = vmatpush.bf16.msra.mxu0 %v355_v2  ;;  %v358_v13 = vld [vmem:[%s530_s1 + $0x48] sm:$0xff]  ;;  %v357_v15 = vld [vmem:[%s530_s1 + $0x40] sm:$0xff]  ;;  %v346_v17 = vld [vmem:[%s532_s0 + $0x14] sm:$0xf0] }
   0x7   :  { %374 = vmatpush.bf16.msra.mxu3 %v363_v3  ;;  %210 = vmatpush.bf16.msra.mxu1 %v363_v3  ;;  %v345_v18 = vld [vmem:[%s532_s0 + $0x14] sm:$0xf]  ;;  %v267_v19 = vld [vmem:[%s532_s0 + $0x18] sm:$0xf0]  ;;  %v257_v20 = vld [vmem:[%s532_s0] sm:$0xf]  ;;  %v266_v24 = vor.u32 %v346_v17, %v265_v16 }
   0x8   :  { %v344_v21 = vld [vmem:[%s532_s0 + $0x4] sm:$0xf0]  ;;  %v343_v22 = vld [vmem:[%s532_s0 + $0x4] sm:$0xf]  ;;  %v259_v23 = vld [vmem:[%s532_s0 + $0x8] sm:$0xf0]  ;;  %v270_v25 = vor.u32 %v345_v18, %v267_v19 }
   0x9   :  { %v258_v26 = vor.u32 %v344_v21, %v257_v20  ;;  %v262_v27 = vor.u32 %v343_v22, %v259_v23  ;;  %v273_v28 = vld [vmem:[%s532_s0 + $0x20] sm:$0xf]  ;;  %v348_v29 = vld [vmem:[%s532_s0 + $0x24] sm:$0xf0]  ;;  %v347_v30 = vld [vmem:[%s532_s0 + $0x24] sm:$0xf] }
   0xa   :  { %367 = vmatpush.bf16.msra.mxu2 %v354_v4  ;;  %187 = vmatpush.bf16.msra.mxu0 %v354_v4  ;;  %v275_v31 = vld [vmem:[%s532_s0 + $0x28] sm:$0xf0]  ;;  %v274_v32 = vor.u32 %v348_v29, %v273_v28  ;;  %v381_v34 = vld [vmem:[%s531_s2] ss:$0 sm:$0xff]  ;;  %v235_v44 = vld [vmem:[%s533_s3 + $0x10] sm:$0xff] }
   0xb   :  { %375 = vmatpush.bf16.msra.mxu3 %v362_v5  ;;  %211 = vmatpush.bf16.msra.mxu1 %v362_v5  ;;  %v278_v33 = vor.u32 %v347_v30, %v275_v31  ;;  %v233_v38 = vld [vmem:[%s533_s3] sm:$0xff] }
   0xe   :  { %368 = vmatpush.bf16.msra.mxu2 %v353_v6  ;;  %188 = vmatpush.bf16.msra.mxu0 %v353_v6 }
   0xf   :  { %376 = vmatpush.bf16.msra.mxu3 %v361_v7  ;;  %212 = vmatpush.bf16.msra.mxu1 %v361_v7 }
  0x12   :  { %369 = vmatpush.bf16.msra.mxu2 %v352_v8  ;;  %189 = vmatpush.bf16.msra.mxu0 %v352_v8 }
  0x13   :  { %377 = vmatpush.bf16.msra.mxu3 %v360_v9  ;;  %213 = vmatpush.bf16.msra.mxu1 %v360_v9 }
  0x16   :  { %370 = vmatpush.bf16.msra.mxu2 %v351_v10  ;;  %190 = vmatpush.bf16.msra.mxu0 %v351_v10 }
  0x17   :  { %378 = vmatpush.bf16.msra.mxu3 %v359_v11  ;;  %214 = vmatpush.bf16.msra.mxu1 %v359_v11 }
  0x1a   :  { %371 = vmatpush.bf16.msra.mxu2 %v350_v12  ;;  %191 = vmatpush.bf16.msra.mxu0 %v350_v12 }
  0x1b   :  { %379 = vmatpush.bf16.msra.mxu3 %v358_v13  ;;  %215 = vmatpush.bf16.msra.mxu1 %v358_v13 }
  0x1e   :  { %372 = vmatpush.bf16.msra.mxu2 %v349_v14  ;;  %192 = vmatpush.bf16.msra.mxu0 %v349_v14 }
  0x1f   :  { %380 = vmatpush.bf16.msra.mxu3 %v357_v15  ;;  %216 = vmatpush.bf16.msra.mxu1 %v357_v15 }
  0x21   :  { %198 = vmatmul.bf16.vlgmr.msra.gmra.mxu2 %v266_v24  ;;  %193 = vmatmul.bf16.vlgmr.msra.gmra.mxu0 %v258_v26 }
  0x22   :  { %222 = vmatmul.bf16.vlgmr.msra.gmra.mxu3 %v270_v25  ;;  %217 = vmatmul.bf16.vlgmr.msra.gmra.mxu1 %v262_v27 }
  0x31   :  { %203 = vmatmul.bf16.gmra.mxu2 %v274_v32 }
  0x32   :  { %227 = vmatmul.bf16.gmra.mxu3 %v278_v33 }
  0x9e   :  { %v194_v35 = vpop.f32.mrf.mxu0 }
  0x9f   :  { %v218_v36 = vpop.f32.mrf.mxu1  ;;  %v195_v37 = vadd.f32 %v381_v34, %v194_v35 }
  0xa1   :  { %v219_v39 = vadd.f32 %v218_v36, %v195_v37 }
  0xa3   :  { %v239_v42 = vadd.f32 %v233_v38, %v219_v39 }
  0xa4   :  { %v199_v40 = vpop.f32.mrf.mxu2 }
  0xa5   :  { %v223_v41 = vpop.f32.mrf.mxu3  ;;  %v200_v43 = vadd.f32 %v381_v34, %v199_v40  ;;  %245 = vst [vmem:[%s534_s4] sm:$0xff] %v239_v42 }
  0xa6   :  { %v196_v46 = vpop.f32.mrf.mxu0 }
  0xa7   :  { %v224_v45 = vadd.f32 %v223_v41, %v200_v43  ;;  %v220_v47 = vpop.f32.mrf.mxu1  ;;  %v197_v48 = vadd.f32 %v381_v34, %v196_v46 }
  0xa9   :  { %v241_v49 = vadd.f32 %v235_v44, %v224_v45  ;;  %v221_v51 = vadd.f32 %v220_v47, %v197_v48 }
  0xac   :  { %v234_v50 = vld [vmem:[%s533_s3 + $0x8] sm:$0xff]  ;;  %v201_v52 = vpop.f32.mrf.mxu2 }
  0xad   :  { %247 = vst [vmem:[%s534_s4 + $0x10] sm:$0xff] %v241_v49  ;;  %v225_v53 = vpop.f32.mrf.mxu3  ;;  %v240_v54 = vadd.f32 %v234_v50, %v221_v51  ;;  %v202_v55 = vadd.f32 %v381_v34, %v201_v52 }
  0xaf   :  { %v226_v57 = vadd.f32 %v225_v53, %v202_v55 }
  0xb4   :  { %v236_v56 = vld [vmem:[%s533_s3 + $0x18] sm:$0xff]  ;;  %v204_v59 = vpop.f32.mrf.mxu2 }
  0xb5   :  { %246 = vst [vmem:[%s534_s4 + $0x8] sm:$0xff] %v240_v54  ;;  %v242_v58 = vadd.f32 %v236_v56, %v226_v57  ;;  %v228_v60 = vpop.f32.mrf.mxu3  ;;  %v205_v61 = vadd.f32 %v381_v34, %v204_v59 }
  0xb7   :  { %248 = vst [vmem:[%s534_s4 + $0x18] sm:$0xff] %v242_v58  ;;  %v229_v63 = vadd.f32 %v228_v60, %v205_v61 }
  0xbc   :  { %v206_v1 = vpop.f32.mrf.mxu2 }
  0xbd   :  { %v207_v2 = vadd.f32 %v381_v34, %v206_v1  ;;  %v230_v3 = vpop.f32.mrf.mxu3 }
  0xbe   :  { %v237_v62 = vld [vmem:[%s533_s3 + $0x20] sm:$0xff] }
  0xbf   :  { %v243_v0 = vadd.f32 %v237_v62, %v229_v63  ;;  %v231_v5 = vadd.f32 %v230_v3, %v207_v2 }
  0xc1   :  { %249 = vst [vmem:[%s534_s4 + $0x20] sm:$0xff] %v243_v0 }
  0xc8   :  { %v238_v4 = vld [vmem:[%s533_s3 + $0x28] sm:$0xff] }
  0xc9   :  { %v244_v6 = vadd.f32 %v238_v4, %v231_v5 }
  0xcb   :  { %250 = vst [vmem:[%s534_s4 + $0x28] sm:$0xff] %v244_v6 }

// kernel: transformer_decoder_block.12
= control target key start
LH: loop header
LB: loop body
LE: loop exit
PB: predicated region body
PF: predicated region fallthrough
CT: control target
= control target key end

     0   :  { %v1019_v6 = vmov 128.0   ;;  %s1662_s0 = inlined_call_operand.vmem [shape: f32[48,128], index: 0, kind: input, shape index: {}]   ;;  %s1663_s1 = inlined_call_operand.vmem [shape: f32[1,128], index: 1, kind: input, shape index: {}]   ;;  %s1664_s2 = inlined_call_operand.vmem [shape: f32[1,128], index: 2, kind: input, shape index: {}]   ;;  %s1665_s3 = inlined_call_operand.vmem [shape: bf16[128,256], index: 3, kind: input, shape index: {}]   ;;  %s1666_s4 = inlined_call_operand.vmem [shape: f32[1,256], index: 4, kind: input, shape index: {}]   ;;  %s1667_s5 = inlined_call_operand.vmem [shape: bf16[48,256], index: 5, kind: output, shape index: {}]  }
   0x1   :  { %v24_v0 = vld [vmem:[%s1662_s0 + $0x20] sm:$0xff]  ;;  %v22_v1 = vld [vmem:[%s1662_s0 + $0x10] sm:$0xff]  ;;  %v25_v3 = vld [vmem:[%s1662_s0 + $0x28] sm:$0xff]  ;;  %981 = vrcp.f32 %v1019_v6 }
   0x2   :  { %v20_v2 = vld [vmem:[%s1662_s0] sm:$0xff]  ;;  %36 = vadd.xlane.f32.xlu1 %v24_v0  ;;  %32 = vadd.xlane.f32.xlu0 %v22_v1  ;;  %v23_v4 = vld [vmem:[%s1662_s0 + $0x18] sm:$0xff]  ;;  %v21_v5 = vld [vmem:[%s1662_s0 + $0x8] sm:$0xff] }
   0x3   :  { %28 = vadd.xlane.f32.xlu2 %v20_v2  ;;  %v928_v37 = vld [vmem:[%s1665_s3 + $0x70] sm:$0xf]  ;;  %v961_v38 = vld [vmem:[%s1665_s3 + $0x74] sm:$0xf0]  ;;  %v960_v39 = vld [vmem:[%s1665_s3 + $0x74] sm:$0xf] }
   0x4   :  { %v929_v40 = vor.u32 %v961_v38, %v928_v37  ;;  %v930_v41 = vld [vmem:[%s1665_s3 + $0x78] sm:$0xf0]  ;;  %v920_v43 = vld [vmem:[%s1665_s3 + $0x60] sm:$0xf]  ;;  %v959_v44 = vld [vmem:[%s1665_s3 + $0x64] sm:$0xf0] }
   0x5   :  { %v933_v42 = vor.u32 %v960_v39, %v930_v41  ;;  %v958_v45 = vld [vmem:[%s1665_s3 + $0x64] sm:$0xf]  ;;  %v921_v46 = vor.u32 %v959_v44, %v920_v43  ;;  %v922_v47 = vld [vmem:[%s1665_s3 + $0x68] sm:$0xf0]  ;;  %v912_v49 = vld [vmem:[%s1665_s3 + $0x50] sm:$0xf] }
   0x6   :  { %962 = vmatpush.bf16.msra.mxu2 %v929_v40  ;;  %278 = vmatpush.bf16.msra.mxu0 %v929_v40  ;;  %v925_v48 = vor.u32 %v958_v45, %v922_v47  ;;  %v957_v50 = vld [vmem:[%s1665_s3 + $0x54] sm:$0xf0]  ;;  %v956_v51 = vld [vmem:[%s1665_s3 + $0x54] sm:$0xf]  ;;  %v914_v53 = vld [vmem:[%s1665_s3 + $0x58] sm:$0xf0] }
   0x7   :  { %v982_v7 = vpop.eup %981  ;;  %970 = vmatpush.bf16.msra.mxu3 %v933_v42  ;;  %302 = vmatpush.bf16.msra.mxu1 %v933_v42  ;;  %v913_v52 = vor.u32 %v957_v50, %v912_v49  ;;  %v917_v54 = vor.u32 %v956_v51, %v914_v53  ;;  %v904_v55 = vld [vmem:[%s1665_s3 + $0x40] sm:$0xf]  ;;  %v955_v56 = vld [vmem:[%s1665_s3 + $0x44] sm:$0xf0]  ;;  %v954_v57 = vld [vmem:[%s1665_s3 + $0x44] sm:$0xf] }
   0x8   :  { %v41_v8 = vmul.f32 128.0, %v982_v7  ;;  %vm45_vm0 = vweird.f32 %v982_v7  ;;  %v905_v58 = vor.u32 %v955_v56, %v904_v55  ;;  %v906_v59 = vld [vmem:[%s1665_s3 + $0x48] sm:$0xf0]  ;;  %v896_v61 = vld [vmem:[%s1665_s3 + $0x30] sm:$0xf] }
   0x9   :  { %v909_v60 = vor.u32 %v954_v57, %v906_v59  ;;  %v953_v62 = vld [vmem:[%s1665_s3 + $0x34] sm:$0xf0]  ;;  %v952_v63 = vld [vmem:[%s1665_s3 + $0x34] sm:$0xf] }
   0xa   :  { %38 = vadd.xlane.f32.xlu1 %v25_v3  ;;  %34 = vadd.xlane.f32.xlu0 %v23_v4  ;;  %v42_v9 = vsub.f32 1.0, %v41_v8 }
   0xb   :  { %30 = vadd.xlane.f32.xlu2 %v21_v5  ;;  %963 = vmatpush.bf16.msra.mxu2 %v921_v46 }
   0xc   :  { %v43_v10 = vmul.f32 %v982_v7, %v42_v9  ;;  %279 = vmatpush.bf16.msra.mxu0 %v921_v46  ;;  %971 = vmatpush.bf16.msra.mxu3 %v925_v48  ;;  %v880_v9 = vld [vmem:[%s1665_s3 + $0x10] sm:$0xf] }
   0xd   :  { %303 = vmatpush.bf16.msra.mxu1 %v925_v48 }
   0xe   :  { %v44_v11 = vadd.f32 %v982_v7, %v43_v10  ;;  %v949_v10 = vld [vmem:[%s1665_s3 + $0x14] sm:$0xf0] }
   0xf   :  { %964 = vmatpush.bf16.msra.mxu2 %v913_v52 }
  0x10   :  { %v1068_v12 = vsel %vm45_vm0, %v982_v7, %v44_v11  ;;  %280 = vmatpush.bf16.msra.mxu0 %v913_v52  ;;  %972 = vmatpush.bf16.msra.mxu3 %v917_v54  ;;  %v890_v7 = vld [vmem:[%s1665_s3 + $0x28] sm:$0xf0]  ;;  %v948_v11 = vld [vmem:[%s1665_s3 + $0x14] sm:$0xf] }
  0x11   :  { %304 = vmatpush.bf16.msra.mxu1 %v917_v54 }
  0x13   :  { %965 = vmatpush.bf16.msra.mxu2 %v905_v58 }
  0x14   :  { %281 = vmatpush.bf16.msra.mxu0 %v905_v58  ;;  %973 = vmatpush.bf16.msra.mxu3 %v909_v60 }
  0x15   :  { %305 = vmatpush.bf16.msra.mxu1 %v909_v60 }
  0x75   :  { %v37_v13 = vpop.xlane.xlu1 %36  ;;  %v33_v14 = vpop.xlane.xlu0 %32 }
  0x76   :  { %v51_v15 = vmul.f32 %v1068_v12, %v37_v13  ;;  %v49_v16 = vmul.f32 %v1068_v12, %v33_v14  ;;  %v29_v17 = vpop.xlane.xlu2 %28 }
  0x77   :  { %v47_v28 = vmul.f32 %v1068_v12, %v29_v17 }
  0x78   :  { %v1072_v18 = vsub.f32 %v24_v0, %v51_v15  ;;  %v1074_v19 = vsub.f32 %v22_v1, %v49_v16  ;;  %v897_v0 = vor.u32 %v953_v62, %v896_v61  ;;  %v898_v1 = vld [vmem:[%s1665_s3 + $0x38] sm:$0xf0]  ;;  %v881_v15 = vor.u32 %v949_v10, %v880_v9 }
  0x79   :  { %v1096_v35 = vsub.f32 %v20_v2, %v47_v28  ;;  %v901_v2 = vor.u32 %v952_v63, %v898_v1  ;;  %v882_v16 = vld [vmem:[%s1665_s3 + $0x18] sm:$0xf0] }
  0x7a   :  { %v61_v20 = vmul.f32 %v1074_v19, %v1074_v19  ;;  %v63_v21 = vmul.f32 %v1072_v18, %v1072_v18  ;;  %966 = vmatpush.bf16.msra.mxu2 %v897_v0  ;;  %282 = vmatpush.bf16.msra.mxu0 %v897_v0 }
  0x7b   :  { %v59_v36 = vmul.f32 %v1096_v35, %v1096_v35  ;;  %974 = vmatpush.bf16.msra.mxu3 %v901_v2  ;;  %306 = vmatpush.bf16.msra.mxu1 %v901_v2 }
  0x7c   :  { %69 = vadd.xlane.f32.xlu0 %v61_v20  ;;  %73 = vadd.xlane.f32.xlu2 %v63_v21  ;;  %v885_v20 = vor.u32 %v948_v11, %v882_v16 }
  0x7d   :  { %v39_v22 = vpop.xlane.xlu1 %38  ;;  %v35_v23 = vpop.xlane.xlu0 %34 }
  0x7e   :  { %v52_v24 = vmul.f32 %v1068_v12, %v39_v22  ;;  %v50_v25 = vmul.f32 %v1068_v12, %v35_v23  ;;  %v31_v26 = vpop.xlane.xlu2 %30  ;;  %v872_v23 = vld [vmem:[%s1665_s3] sm:$0xf] }
  0x7f   :  { %v48_v27 = vmul.f32 %v1068_v12, %v31_v26  ;;  %v874_v26 = vld [vmem:[%s1665_s3 + $0x8] sm:$0xf0] }
  0x80   :  { %v1084_v29 = vsub.f32 %v25_v3, %v52_v24  ;;  %v1086_v30 = vsub.f32 %v23_v4, %v50_v25  ;;  %v888_v3 = vld [vmem:[%s1665_s3 + $0x20] sm:$0xf]  ;;  %v951_v4 = vld [vmem:[%s1665_s3 + $0x24] sm:$0xf0]  ;;  %v946_v25 = vld [vmem:[%s1665_s3 + $0x4] sm:$0xf] }
  0x81   :  { %v1088_v31 = vsub.f32 %v21_v5, %v48_v27  ;;  %v950_v5 = vld [vmem:[%s1665_s3 + $0x24] sm:$0xf]  ;;  %v889_v6 = vor.u32 %v951_v4, %v888_v3  ;;  %v947_v24 = vld [vmem:[%s1665_s3 + $0x4] sm:$0xf0]  ;;  %v877_v28 = vor.u32 %v946_v25, %v874_v26 }
  0x82   :  { %v64_v32 = vmul.f32 %v1084_v29, %v1084_v29  ;;  %v62_v33 = vmul.f32 %v1086_v30, %v1086_v30  ;;  %v893_v8 = vor.u32 %v950_v5, %v890_v7  ;;  %v873_v27 = vor.u32 %v947_v24, %v872_v23 }
  0x83   :  { %v60_v34 = vmul.f32 %v1088_v31, %v1088_v31  ;;  %967 = vmatpush.bf16.msra.mxu2 %v889_v6  ;;  %283 = vmatpush.bf16.msra.mxu0 %v889_v6  ;;  %v979_v6 = vld [vmem:[%s1663_s1] ss:$0 sm:$0xff] }
  0x84   :  { %75 = vadd.xlane.f32.xlu0 %v64_v32  ;;  %71 = vadd.xlane.f32.xlu1 %v62_v33 }
  0x85   :  { %67 = vadd.xlane.f32.xlu2 %v60_v34  ;;  %975 = vmatpush.bf16.msra.mxu3 %v893_v8 }
  0x86   :  { %307 = vmatpush.bf16.msra.mxu1 %v893_v8 }
  0x87   :  { %968 = vmatpush.bf16.msra.mxu2 %v881_v15  ;;  %284 = vmatpush.bf16.msra.mxu0 %v881_v15 }
  0x89   :  { %976 = vmatpush.bf16.msra.mxu3 %v885_v20 }
  0x8a   :  { %308 = vmatpush.bf16.msra.mxu1 %v885_v20  ;;  %v980_v20 = vld [vmem:[%s1664_s2] ss:$0 sm:$0xff] }
  0x8b   :  { %969 = vmatpush.bf16.msra.mxu2 %v873_v27  ;;  %285 = vmatpush.bf16.msra.mxu0 %v873_v27 }
  0x8c   :  { %65 = vadd.xlane.f32.xlu1 %v59_v36 }
  0x8d   :  { %977 = vmatpush.bf16.msra.mxu3 %v877_v28 }
  0x8e   :  { %309 = vmatpush.bf16.msra.mxu1 %v877_v28 }
  0xef   :  { %v70_v13 = vpop.xlane.xlu0 %69  ;;  %v74_v14 = vpop.xlane.xlu2 %73 }
  0xf0   :  { %v79_v17 = vmul.f32 %v70_v13, %v1068_v12  ;;  %v81_v22 = vmul.f32 %v74_v14, %v1068_v12 }
  0xf2   :  { %v85_v21 = vadd.f32 1e-05, %v79_v17  ;;  %v1198_v32 = vadd.f32 1e-05, %v81_v22 }
  0xf4   :  { %983 = vrsqrt.f32 %v85_v21  ;;  %vm115_vm2 = vweird.f32 %v85_v21  ;;  %vm135_vm12 = vweird.f32 %v1198_v32 }
  0xf5   :  { %985 = vrsqrt.f32 %v1198_v32 }
  0xf7   :  { %v72_v33 = vpop.xlane.xlu1 %71  ;;  %v76_v34 = vpop.xlane.xlu0 %75 }
  0xf8   :  { %v80_v36 = vmul.f32 %v72_v33, %v1068_v12  ;;  %v82_v37 = vmul.f32 %v76_v34, %v1068_v12  ;;  %v68_v38 = vpop.xlane.xlu2 %67 }
  0xf9   :  { %v78_v39 = vmul.f32 %v68_v38, %v1068_v12 }
  0xfa   :  { %v984_v40 = vpop.eup %983  ;;  %v86_v41 = vadd.f32 1e-05, %v80_v36  ;;  %v1204_v42 = vadd.f32 1e-05, %v82_v37 }
  0xfb   :  { %v110_v43 = vmul.f32 %v984_v40, %v85_v21  ;;  %v84_v44 = vadd.f32 1e-05, %v78_v39  ;;  %v1207_v48 = vpop.eup %985  ;;  %vm116_vm1 = vweird.f32 %v984_v40 }
  0xfc   :  { %987 = vrsqrt.f32 %v86_v41  ;;  %v130_v55 = vmul.f32 %v1207_v48, %v1198_v32  ;;  %vm117_vm3 = vmor %vm115_vm2, %vm116_vm1  ;;  %vm125_vm7 = vweird.f32 %v86_v41  ;;  %vm145_vm10 = vweird.f32 %v1204_v42 }
  0xfd   :  { %v111_v45 = vmul.f32 %v984_v40, %v110_v43  ;;  %989 = vrsqrt.f32 %v1204_v42  ;;  %vm105_vm5 = vweird.f32 %v84_v44  ;;  %vm136_vm13 = vweird.f32 %v1207_v48 }
  0xfe   :  { %991 = vrsqrt.f32 %v84_v44  ;;  %v131_v61 = vmul.f32 %v1207_v48, %v130_v55  ;;  %vm137_vm1 = vmor %vm135_vm12, %vm136_vm13 }
  0xff   :  { %v112_v46 = vmul.f32 0.5, %v111_v45  ;;  %v66_v47 = vpop.xlane.xlu1 %65 }
 0x100   :  { %v77_v49 = vmul.f32 %v66_v47, %v1068_v12  ;;  %v132_v7 = vmul.f32 0.5, %v131_v61 }
 0x101   :  { %v113_v50 = vsub.f32 1.5, %v112_v46 }
 0x102   :  { %v988_v51 = vpop.eup %987  ;;  %v83_v52 = vadd.f32 1e-05, %v77_v49  ;;  %v133_v21 = vsub.f32 1.5, %v132_v7 }
 0x103   :  { %v1210_v53 = vpop.eup %989  ;;  %v114_v54 = vmul.f32 %v984_v40, %v113_v50  ;;  %v120_v56 = vmul.f32 %v988_v51, %v86_v41  ;;  %vm126_vm4 = vweird.f32 %v988_v51 }
 0x104   :  { %v992_v57 = vpop.eup %991  ;;  %v140_v58 = vmul.f32 %v1210_v53, %v1204_v42  ;;  %993 = vrsqrt.f32 %v83_v52  ;;  %vm127_vm8 = vmor %vm125_vm7, %vm126_vm4  ;;  %vm146_vm11 = vweird.f32 %v1210_v53  ;;  %vm95_vm14 = vweird.f32 %v83_v52 }
 0x105   :  { %v121_v59 = vmul.f32 %v988_v51, %v120_v56  ;;  %v100_v60 = vmul.f32 %v992_v57, %v84_v44  ;;  %v118_v0 = vsel %vm117_vm3, %v984_v40, %v114_v54  ;;  %vm106_vm6 = vweird.f32 %v992_v57  ;;  %vm1239_vm0 = vmor %vm145_vm10, %vm146_vm11 }
 0x106   :  { %v141_v12 = vmul.f32 %v1210_v53, %v140_v58  ;;  %v151_v5 = vmul.f32 %v118_v0, %v1074_v19  ;;  %vm1222_vm9 = vmor %vm105_vm5, %vm106_vm6  ;;  %v134_v32 = vmul.f32 %v1207_v48, %v133_v21 }
 0x107   :  { %v122_v62 = vmul.f32 0.5, %v121_v59  ;;  %v101_v63 = vmul.f32 %v992_v57, %v100_v60 }
 0x108   :  { %v142_v2 = vmul.f32 0.5, %v141_v12  ;;  %v160_v17 = vmul.f32 %v979_v6, %v151_v5  ;;  %v138_v41 = vsel %vm137_vm1, %v1207_v48, %v134_v32 }
 0x109   :  { %v123_v1 = vsub.f32 1.5, %v122_v62  ;;  %v102_v3 = vmul.f32 0.5, %v101_v63  ;;  %v153_v45 = vmul.f32 %v138_v41, %v1072_v18 }
 0x10a   :  { %v994_v4 = vpop.eup %993  ;;  %v143_v13 = vsub.f32 1.5, %v142_v2  ;;  %v169_v27 = vadd.f32 %v980_v20, %v160_v17 }
 0x10b   :  { %v124_v8 = vmul.f32 %v988_v51, %v123_v1  ;;  %v103_v9 = vsub.f32 1.5, %v102_v3  ;;  %v90_v10 = vmul.f32 %v994_v4, %v83_v52  ;;  %vm96_vm15 = vweird.f32 %v994_v4 }
 0x10c   :  { %v144_v25 = vmul.f32 %v1210_v53, %v143_v13  ;;  %vm97_vm2 = vmor %vm95_vm14, %vm96_vm15  ;;  %v162_v49 = vmul.f32 %v979_v6, %v153_v45 }
 0x10d   :  { %v104_v14 = vmul.f32 %v992_v57, %v103_v9  ;;  %v91_v15 = vmul.f32 %v994_v4, %v90_v10  ;;  %v128_v16 = vsel %vm127_vm8, %v988_v51, %v124_v8 }
 0x10e   :  { %v152_v19 = vmul.f32 %v128_v16, %v1086_v30  ;;  %v148_v38 = vsel %vm1239_vm0, %v1210_v53, %v144_v25  ;;  %v171_v51 = vadd.f32 %v980_v20, %v162_v49 }
 0x10f   :  { %v92_v22 = vmul.f32 0.5, %v91_v15  ;;  %v108_v23 = vsel %vm1222_vm9, %v992_v57, %v104_v14 }
 0x110   :  { %v161_v24 = vmul.f32 %v979_v6, %v152_v19  ;;  %v150_v33 = vmul.f32 %v108_v23, %v1088_v31  ;;  %v154_v31 = vmul.f32 %v148_v38, %v1084_v29 }
 0x111   :  { %v93_v30 = vsub.f32 1.5, %v92_v22 }
 0x112   :  { %v170_v28 = vadd.f32 %v980_v20, %v161_v24  ;;  %v159_v40 = vmul.f32 %v979_v6, %v150_v33  ;;  %v163_v47 = vmul.f32 %v979_v6, %v154_v31 }
 0x113   :  { %v94_v34 = vmul.f32 %v994_v4, %v93_v30 }
 0x114   :  { %v174_v36 = vpack.c.bf16 %v170_v28, %v169_v27  ;;  %v168_v44 = vadd.f32 %v980_v20, %v159_v40  ;;  %v172_v50 = vadd.f32 %v980_v20, %v163_v47 }
 0x115   :  { %v98_v37 = vsel %vm97_vm2, %v994_v4, %v94_v34 }
 0x116   :  { %291 = vmatmul.bf16.vlgmr.msra.gmra.mxu2 %v174_v36  ;;  %315 = vmatmul.bf16.vlgmr.msra.gmra.mxu3 %v174_v36  ;;  %v149_v39 = vmul.f32 %v98_v37, %v1096_v35  ;;  %v175_v52 = vpack.c.bf16 %v172_v50, %v171_v51  ;;  %v192_v35 = vld [vmem:[%s1666_s4] sm:$0x3] }
 0x117   :  { %v1255_v48 = vperm.slane %v192_v35, 0  ;;  %v1257_v29 = vperm.slane %v192_v35, 1 }
 0x118   :  { %v158_v42 = vmul.f32 %v979_v6, %v149_v39 }
 0x11a   :  { %v167_v43 = vadd.f32 %v980_v20, %v158_v42 }
 0x11c   :  { %v173_v46 = vpack.c.bf16 %v168_v44, %v167_v43 }
 0x11e   :  { %286 = vmatmul.bf16.vlgmr.msra.gmra.mxu0 %v173_v46  ;;  %310 = vmatmul.bf16.vlgmr.msra.gmra.mxu1 %v173_v46 }
 0x126   :  { %296 = vmatmul.bf16.gmra.mxu2 %v175_v52  ;;  %320 = vmatmul.bf16.gmra.mxu3 %v175_v52 }
 0x199   :  { %v292_v53 = vpop.f32.mrf.mxu2  ;;  %v316_v18 = vpop.f32.mrf.mxu3 }
 0x19a   :  { %v1260_v54 = vadd.f32 %v292_v53, %v1255_v48  ;;  %v1263_v55 = vadd.f32 %v316_v18, %v1257_v29 }
 0x19b   :  { %v287_v56 = vpop.f32.mrf.mxu0  ;;  %v311_v57 = vpop.f32.mrf.mxu1 }
 0x19c   :  { %v1266_v58 = vmul.f32 0.70710677, %v1260_v54  ;;  %v1269_v59 = vmul.f32 0.70710677, %v1263_v55  ;;  %v1272_v60 = vadd.f32 %v287_v56, %v1255_v48  ;;  %v1275_v12 = vadd.f32 %v311_v57, %v1257_v29 }
 0x19e   :  { %v510_v61 = vmul.f32 %v1266_v58, %v1266_v58  ;;  %v550_v62 = vmul.f32 %v1269_v59, %v1269_v59  ;;  %v1282_v63 = vmul.f32 0.70710677, %v1272_v60  ;;  %v1285_v0 = vmul.f32 0.70710677, %v1275_v12 }
 0x1a0   :  { %v1287_v1 = vmin.f32 %v510_v61, 16.0  ;;  %v1289_v2 = vmin.f32 %v550_v62, 16.0  ;;  %v350_v3 = vmul.f32 %v1282_v63, %v1282_v63  ;;  %v390_v4 = vmul.f32 %v1285_v0, %v1285_v0 }
 0x1a2   :  { %v512_v5 = vmul.f32 2.1237322e-06, %v1287_v1  ;;  %v523_v6 = vmul.f32 3.8918573e-05, %v1287_v1  ;;  %v552_v7 = vmul.f32 2.1237322e-06, %v1289_v2 }
 0x1a3   :  { %v563_v8 = vmul.f32 3.8918573e-05, %v1289_v2  ;;  %v1299_v9 = vmin.f32 %v350_v3, 16.0  ;;  %v1301_v10 = vmin.f32 %v390_v4, 16.0 }
 0x1a4   :  { %v513_v11 = vadd.f32 0.00028619796, %v512_v5  ;;  %v524_v13 = vadd.f32 0.001143296, %v523_v6  ;;  %v553_v14 = vadd.f32 0.00028619796, %v552_v7 }
 0x1a5   :  { %v564_v15 = vadd.f32 0.001143296, %v563_v8  ;;  %v352_v16 = vmul.f32 2.1237322e-06, %v1299_v9  ;;  %v363_v19 = vmul.f32 3.8918573e-05, %v1299_v9 }
 0x1a6   :  { %v514_v17 = vmul.f32 %v513_v11, %v1287_v1  ;;  %v525_v20 = vmul.f32 %v524_v13, %v1287_v1  ;;  %v554_v21 = vmul.f32 %v553_v14, %v1289_v2  ;;  %v392_v22 = vmul.f32 2.1237322e-06, %v1301_v10 }
 0x1a7   :  { %v565_v23 = vmul.f32 %v564_v15, %v1289_v2  ;;  %v353_v24 = vadd.f32 0.00028619796, %v352_v16  ;;  %v364_v25 = vadd.f32 0.001143296, %v363_v19  ;;  %v403_v30 = vmul.f32 3.8918573e-05, %v1301_v10 }
 0x1a8   :  { %v515_v26 = vadd.f32 0.0036580483, %v514_v17  ;;  %v526_v27 = vadd.f32 0.014752088, %v525_v20  ;;  %v555_v28 = vadd.f32 0.0036580483, %v554_v21 }
 0x1a9   :  { %v566_v33 = vadd.f32 0.014752088, %v565_v23  ;;  %v354_v32 = vmul.f32 %v353_v24, %v1299_v9  ;;  %v365_v34 = vmul.f32 %v364_v25, %v1299_v9  ;;  %v393_v36 = vadd.f32 0.00028619796, %v392_v22 }
 0x1aa   :  { %v516_v37 = vmul.f32 %v515_v26, %v1287_v1  ;;  %v527_v38 = vmul.f32 %v526_v27, %v1287_v1  ;;  %v556_v39 = vmul.f32 %v555_v28, %v1289_v2  ;;  %v404_v40 = vadd.f32 0.001143296, %v403_v30 }
 0x1ab   :  { %v567_v41 = vmul.f32 %v566_v33, %v1289_v2  ;;  %v355_v42 = vadd.f32 0.0036580483, %v354_v32  ;;  %v366_v31 = vadd.f32 0.014752088, %v365_v34  ;;  %v394_v43 = vmul.f32 %v393_v36, %v1301_v10  ;;  %v318_v34 = vpop.f32.mrf.mxu3  ;;  %v289_v36 = vpop.f32.mrf.mxu0 }
 0x1ac   :  { %v517_v44 = vadd.f32 0.05243302, %v516_v37  ;;  %v528_v45 = vadd.f32 0.112945676, %v527_v38  ;;  %v557_v46 = vadd.f32 0.05243302, %v556_v39  ;;  %v405_v47 = vmul.f32 %v404_v40, %v1301_v10 }
 0x1ad   :  { %v568_v49 = vadd.f32 0.112945676, %v567_v41  ;;  %v356_v50 = vmul.f32 %v355_v42, %v1299_v9  ;;  %v367_v51 = vmul.f32 %v366_v31, %v1299_v9  ;;  %v395_v52 = vadd.f32 0.0036580483, %v394_v43 }
 0x1ae   :  { %v518_v35 = vmul.f32 %v517_v44, %v1287_v1  ;;  %v529_v53 = vmul.f32 %v528_v45, %v1287_v1  ;;  %v558_v18 = vmul.f32 %v557_v46, %v1289_v2  ;;  %v406_v56 = vadd.f32 0.014752088, %v405_v47 }
 0x1af   :  { %v569_v57 = vmul.f32 %v568_v49, %v1289_v2  ;;  %v357_v61 = vadd.f32 0.05243302, %v356_v50  ;;  %v368_v62 = vadd.f32 0.112945676, %v367_v51  ;;  %v396_v3 = vmul.f32 %v395_v52, %v1301_v10 }
 0x1b0   :  { %v519_v4 = vadd.f32 0.18741608, %v518_v35  ;;  %v530_v5 = vadd.f32 0.4994258, %v529_v53  ;;  %v559_v6 = vadd.f32 0.18741608, %v558_v18  ;;  %v407_v7 = vmul.f32 %v406_v56, %v1301_v10 }
 0x1b1   :  { %v570_v8 = vadd.f32 0.4994258, %v569_v57  ;;  %v358_v11 = vmul.f32 %v357_v61, %v1299_v9  ;;  %v369_v13 = vmul.f32 %v368_v62, %v1299_v9  ;;  %v397_v14 = vadd.f32 0.05243302, %v396_v3 }
 0x1b2   :  { %v520_v15 = vmul.f32 %v519_v4, %v1287_v1  ;;  %v531_v16 = vmul.f32 %v530_v5, %v1287_v1  ;;  %v560_v19 = vmul.f32 %v559_v6, %v1289_v2  ;;  %v408_v17 = vadd.f32 0.112945676, %v407_v7  ;;  %v294_v1 = vpop.f32.mrf.mxu2 }
 0x1b3   :  { %v571_v20 = vmul.f32 %v570_v8, %v1289_v2  ;;  %v359_v21 = vadd.f32 0.18741608, %v358_v11  ;;  %v370_v22 = vadd.f32 0.4994258, %v369_v13  ;;  %v398_v23 = vmul.f32 %v397_v14, %v1301_v10 }
 0x1b4   :  { %v1334_v24 = vadd.f32 1.0, %v531_v16  ;;  %v409_v27 = vmul.f32 %v408_v17, %v1301_v10  ;;  %v1343_v2 = vmul.f32 0.5, %v1260_v54  ;;  %v521_v33 = vadd.f32 1.1283791, %v520_v15 }
 0x1b5   :  { %v1336_v25 = vadd.f32 1.0, %v571_v20  ;;  %v360_v30 = vmul.f32 %v359_v21, %v1299_v9  ;;  %v371_v26 = vmul.f32 %v370_v22, %v1299_v9  ;;  %v399_v28 = vadd.f32 0.18741608, %v398_v23 }
 0x1b6   :  { %995 = vrcp.f32 %v1334_v24  ;;  %v561_v32 = vadd.f32 1.1283791, %v560_v19  ;;  %v542_v37 = vand.u32 2147483647, %v1334_v24  ;;  %v544_v38 = vand.u32 2147483648, %v1334_v24 }
 0x1b7   :  { %997 = vrcp.f32 %v1336_v25  ;;  %v1349_v9 = vmul.f32 0.5, %v1263_v55  ;;  %v1352_v39 = vadd.f32 %v294_v1, %v1255_v48  ;;  %v584_v40 = vand.u32 2147483648, %v1336_v25 }
 0x1b8   :  { %v361_v54 = vadd.f32 1.1283791, %v360_v30  ;;  %v1355_v41 = vadd.f32 1.0, %v371_v26  ;;  %v410_v42 = vadd.f32 0.4994258, %v409_v27  ;;  %v400_v43 = vmul.f32 %v399_v28, %v1301_v10 }
 0x1b9   :  { %v582_v31 = vand.u32 2147483647, %v1336_v25  ;;  %v1360_v44 = vadd.f32 %v318_v34, %v1257_v29  ;;  %v1363_v45 = vadd.f32 %v289_v36, %v1255_v48  ;;  %v522_v55 = vmul.f32 %v521_v33, %v1266_v58 }
 0x1ba   :  { %vm538_vm3 = vweird.f32 %v1334_v24  ;;  %v562_v46 = vmul.f32 %v561_v32, %v1269_v59  ;;  %999 = vrcp.f32 %v1355_v41  ;;  %vm578_vm4 = vweird.f32 %v1336_v25 }
 0x1bb   :  { %v384_v49 = vand.u32 2147483648, %v1355_v41  ;;  %v411_v50 = vmul.f32 %v410_v42, %v1301_v10  ;;  %v1373_v51 = vmul.f32 0.70710677, %v1352_v39  ;;  %vm1376_vm5 = vcmp.eq.f32.partialorder %v542_v37, 8.507059e+37 }
 0x1bc   :  { %v996_v47 = vpop.eup %995  ;;  %v545_v59 = vor.u32 1.1754944e-38, %v544_v38  ;;  %v585_v53 = vor.u32 1.1754944e-38, %v584_v40  ;;  %v1381_v18 = vmul.f32 %v361_v54, %v1282_v63  ;;  %vm1384_vm6 = vcmp.eq.f32.partialorder %v582_v31, 8.507059e+37 }
 0x1bd   :  { %v998_v52 = vpop.eup %997  ;;  %v534_v35 = vmul.f32 %v996_v47, %v1334_v24  ;;  %v382_v10 = vand.u32 2147483647, %v1355_v41  ;;  %v401_v61 = vadd.f32 1.1283791, %v400_v43  ;;  %v1389_v62 = vadd.f32 1.0, %v411_v50 }
 0x1be   :  { %v574_v56 = vmul.f32 %v998_v52, %v1336_v25  ;;  %vm539_vm7 = vweird.f32 %v996_v47  ;;  %v590_v4 = vmul.f32 %v1373_v51, %v1373_v51  ;;  %v1394_v5 = vmul.f32 0.70710677, %v1360_v44 }
 0x1bf   :  { %v535_v3 = vsub.f32 1.0, %v534_v35  ;;  %vm579_vm8 = vweird.f32 %v998_v52  ;;  %vm378_vm9 = vweird.f32 %v1355_v41  ;;  %v385_v6 = vor.u32 1.1754944e-38, %v384_v49  ;;  %vm540_vm12 = vmor %vm538_vm3, %vm539_vm7 }
 0x1c0   :  { %v575_v63 = vsub.f32 1.0, %v574_v56  ;;  %1001 = vrcp.f32 %v1389_v62  ;;  %v1000_v7 = vpop.eup %999  ;;  %v424_v11 = vand.u32 2147483648, %v1389_v62  ;;  %v1399_v13 = vmin.f32 %v590_v4, 16.0  ;;  %vm580_vm13 = vmor %vm578_vm4, %vm579_vm8 }
 0x1c1   :  { %v536_v8 = vmul.f32 %v996_v47, %v535_v3  ;;  %v630_v14 = vmul.f32 %v1394_v5, %v1394_v5  ;;  %v374_v16 = vmul.f32 %v1000_v7, %v1355_v41  ;;  %vm1404_vm10 = vcmp.eq.f32.partialorder %v382_v10, 8.507059e+37 }
 0x1c2   :  { %v576_v15 = vmul.f32 %v998_v52, %v575_v63  ;;  %v1409_v17 = vmul.f32 %v401_v61, %v1285_v0  ;;  %v422_v20 = vand.u32 2147483647, %v1389_v62  ;;  %vm379_vm11 = vweird.f32 %v1000_v7 }
 0x1c3   :  { %v537_v21 = vadd.f32 %v996_v47, %v536_v8  ;;  %v592_v22 = vmul.f32 2.1237322e-06, %v1399_v13  ;;  %v603_v23 = vmul.f32 3.8918573e-05, %v1399_v13  ;;  %v375_v26 = vsub.f32 1.0, %v374_v16  ;;  %vm380_vm1 = vmor %vm378_vm9, %vm379_vm11 }
 0x1c4   :  { %v577_v30 = vadd.f32 %v998_v52, %v576_v15  ;;  %v425_v27 = vor.u32 1.1754944e-38, %v424_v11  ;;  %v1417_v1 = vmin.f32 %v630_v14, 16.0  ;;  %vm418_vm14 = vweird.f32 %v1389_v62  ;;  %v313_v15 = vpop.f32.mrf.mxu1 }
 0x1c5   :  { %v541_v28 = vsel %vm540_vm12, %v996_v47, %v537_v21  ;;  %v593_v0 = vadd.f32 0.00028619796, %v592_v22  ;;  %v604_v33 = vadd.f32 0.001143296, %v603_v23  ;;  %v1424_v32 = vmul.f32 0.70710677, %v1363_v45 }
 0x1c6   :  { %v1002_v34 = vpop.eup %1001  ;;  %v546_v24 = vsel %vm1376_vm5, %v545_v59, %v541_v28  ;;  %v581_v36 = vsel %vm580_vm13, %v998_v52, %v577_v30  ;;  %v376_v37 = vmul.f32 %v1000_v7, %v375_v26  ;;  %v632_v38 = vmul.f32 2.1237322e-06, %v1417_v1 }
 0x1c7   :  { %v547_v40 = vmul.f32 %v546_v24, %v522_v55  ;;  %v586_v25 = vsel %vm1384_vm6, %v585_v53, %v581_v36  ;;  %v414_v54 = vmul.f32 %v1002_v34, %v1389_v62  ;;  %vm419_vm15 = vweird.f32 %v1002_v34 }
 0x1c8   :  { %vm1432_vm0 = vcmp.eq.f32.partialorder %v422_v20, 8.507059e+37  ;;  %v587_v31 = vmul.f32 %v586_v25, %v562_v46  ;;  %v377_v43 = vadd.f32 %v1000_v7, %v376_v37  ;;  %v594_v47 = vmul.f32 %v593_v0, %v1399_v13  ;;  %vm420_vm2 = vmor %vm418_vm14, %vm419_vm15 }
 0x1c9   :  { %v605_v49 = vmul.f32 %v604_v33, %v1399_v13  ;;  %v938_v50 = vclamps-f32 %v547_v40, 1.0  ;;  %v415_v55 = vsub.f32 1.0, %v414_v54  ;;  %v633_v52 = vadd.f32 0.00028619796, %v632_v38 }
 0x1ca   :  { %v643_v35 = vmul.f32 3.8918573e-05, %v1417_v1  ;;  %v939_v58 = vclamps-f32 %v587_v31, 1.0  ;;  %v381_v59 = vsel %vm380_vm1, %v1000_v7, %v377_v43  ;;  %v595_v53 = vadd.f32 0.0036580483, %v594_v47 }
 0x1cb   :  { %v606_v56 = vadd.f32 0.014752088, %v605_v49  ;;  %v834_v57 = vadd.f32 1.0, %v938_v50  ;;  %v386_v46 = vsel %vm1404_vm10, %v385_v6, %v381_v59  ;;  %v416_v10 = vmul.f32 %v1002_v34, %v415_v55  ;;  %v297_v59 = vpop.f32.mrf.mxu2 }
 0x1cc   :  { %v634_v61 = vmul.f32 %v633_v52, %v1417_v1  ;;  %v835_v3 = vadd.f32 1.0, %v939_v58  ;;  %v387_v4 = vmul.f32 %v386_v46, %v1381_v18  ;;  %v596_v41 = vmul.f32 %v595_v53, %v1399_v13 }
 0x1cd   :  { %v607_v63 = vmul.f32 %v606_v56, %v1399_v13  ;;  %v846_v8 = vmul.f32 %v834_v57, %v1343_v2  ;;  %v417_v11 = vadd.f32 %v1002_v34, %v416_v10  ;;  %v644_v14 = vadd.f32 0.001143296, %v643_v35 }
 0x1ce   :  { %v635_v7 = vadd.f32 0.0036580483, %v634_v61  ;;  %v847_v16 = vmul.f32 %v835_v3, %v1349_v9  ;;  %v934_v19 = vclamps-f32 %v387_v4, 1.0  ;;  %v597_v6 = vadd.f32 0.05243302, %v596_v41 }
 0x1cf   :  { %v608_v20 = vadd.f32 0.112945676, %v607_v63  ;;  %v421_v18 = vsel %vm420_vm2, %v1002_v34, %v417_v11  ;;  %v645_v22 = vmul.f32 %v644_v14, %v1417_v1  ;;  %v430_v2 = vmul.f32 %v1424_v32, %v1424_v32 }
 0x1d0   :  { %v636_v21 = vmul.f32 %v635_v7, %v1417_v1  ;;  %v856_v23 = vpack.c.bf16 %v847_v16, %v846_v8  ;;  %v426_v30 = vsel %vm1432_vm0, %v425_v27, %v421_v18  ;;  %v598_v9 = vmul.f32 %v597_v6, %v1399_v13 }
 0x1d1   :  { %v1461_v26 = vadd.f32 %v313_v15, %v1257_v29  ;;  %v830_v62 = vadd.f32 1.0, %v934_v19  ;;  %v427_v28 = vmul.f32 %v426_v30, %v1409_v17  ;;  %v609_v0 = vmul.f32 %v608_v20, %v1399_v13 }
 0x1d2   :  { %v646_v33 = vadd.f32 0.014752088, %v645_v22  ;;  %862 = vst [vmem:[%s1667_s5 + $0x10] sm:$0xff] %v856_v23  ;;  %v326_v34 = vmul.f32 0.5, %v1272_v60  ;;  %v327_v24 = vmul.f32 0.5, %v1275_v12  ;;  %v1470_v36 = vmin.f32 %v430_v2, 16.0 }
 0x1d3   :  { %v637_v27 = vadd.f32 0.05243302, %v636_v21  ;;  %v935_v37 = vclamps-f32 %v427_v28, 1.0  ;;  %v599_v38 = vadd.f32 0.18741608, %v598_v9  ;;  %v1489_v3 = vadd.f32 %v297_v59, %v1255_v48 }
 0x1d4   :  { %v610_v40 = vadd.f32 0.4994258, %v609_v0  ;;  %v647_v25 = vmul.f32 %v646_v33, %v1417_v1  ;;  %v432_v17 = vmul.f32 2.1237322e-06, %v1470_v36  ;;  %v443_v54 = vmul.f32 3.8918573e-05, %v1470_v36 }
 0x1d5   :  { %v1476_v42 = vmul.f32 0.70710677, %v1461_v26  ;;  %v842_v31 = vmul.f32 %v830_v62, %v326_v34  ;;  %v831_v43 = vadd.f32 1.0, %v935_v37  ;;  %v638_v35 = vmul.f32 %v637_v27, %v1417_v1 }
 0x1d6   :  { %v611_v60 = vmul.f32 %v610_v40, %v1399_v13  ;;  %v648_v12 = vadd.f32 0.112945676, %v647_v25  ;;  %v433_v47 = vadd.f32 0.00028619796, %v432_v17  ;;  %v444_v49 = vadd.f32 0.001143296, %v443_v54  ;;  %v299_v17 = vpop.f32.mrf.mxu2 }
 0x1d7   :  { %v470_v50 = vmul.f32 %v1476_v42, %v1476_v42  ;;  %v843_v55 = vmul.f32 %v831_v43, %v327_v24  ;;  %v600_v53 = vmul.f32 %v599_v38, %v1399_v13  ;;  %v639_v4 = vadd.f32 0.18741608, %v638_v35 }
 0x1d8   :  { %v612_v52 = vadd.f32 1.0, %v611_v60  ;;  %v649_v58 = vmul.f32 %v648_v12, %v1417_v1  ;;  %v434_v56 = vmul.f32 %v433_v47, %v1470_v36  ;;  %v445_v57 = vmul.f32 %v444_v49, %v1470_v36 }
 0x1d9   :  { %v1486_v46 = vmin.f32 %v470_v50, 16.0  ;;  %v854_v10 = vpack.c.bf16 %v843_v55, %v842_v31  ;;  %v601_v13 = vadd.f32 1.1283791, %v600_v53  ;;  %v1502_v6 = vmul.f32 0.70710677, %v1489_v3 }
 0x1da   :  { %1003 = vrcp.f32 %v612_v52  ;;  %v650_v61 = vadd.f32 0.4994258, %v649_v58  ;;  %v435_v41 = vadd.f32 0.0036580483, %v434_v56  ;;  %v446_v63 = vadd.f32 0.014752088, %v445_v57 }
 0x1db   :  { %860 = vst [vmem:[%s1667_s5] sm:$0xff] %v854_v10  ;;  %v472_v11 = vmul.f32 2.1237322e-06, %v1486_v46  ;;  %v483_v15 = vmul.f32 3.8918573e-05, %v1486_v46  ;;  %v640_v18 = vmul.f32 %v639_v4, %v1417_v1  ;;  %v1506_v2 = vmul.f32 0.5, %v1352_v39  ;;  %v321_v39 = vpop.f32.mrf.mxu3 }
 0x1dc   :  { %v651_v8 = vmul.f32 %v650_v61, %v1417_v1  ;;  %v436_v7 = vmul.f32 %v435_v41, %v1470_v36  ;;  %v447_v14 = vmul.f32 %v446_v63, %v1470_v36  ;;  %v602_v23 = vmul.f32 %v601_v13, %v1373_v51 }
 0x1dd   :  { %v473_v19 = vadd.f32 0.00028619796, %v472_v11  ;;  %v484_v22 = vadd.f32 0.001143296, %v483_v15  ;;  %vm618_vm3 = vweird.f32 %v612_v52  ;;  %v622_v9 = vand.u32 2147483647, %v612_v52 }
 0x1de   :  { %v1499_v16 = vadd.f32 1.0, %v651_v8  ;;  %v448_v21 = vadd.f32 0.112945676, %v447_v14  ;;  %v437_v62 = vadd.f32 0.05243302, %v436_v7  ;;  %v670_v34 = vmul.f32 %v1502_v6, %v1502_v6 }
 0x1df   :  { %v474_v33 = vmul.f32 %v473_v19, %v1486_v46  ;;  %v485_v1 = vmul.f32 %v484_v22, %v1486_v46  ;;  %v624_v24 = vand.u32 2147483648, %v612_v52  ;;  %v641_v51 = vadd.f32 1.1283791, %v640_v18 }
 0x1e0   :  { %v1004_v20 = vpop.eup %1003  ;;  %1005 = vrcp.f32 %v1499_v16  ;;  %v449_v28 = vmul.f32 %v448_v21, %v1470_v36  ;;  %v1515_v25 = vmin.f32 %v670_v34, 16.0  ;;  %vm1517_vm5 = vcmp.eq.f32.partialorder %v622_v9, 8.507059e+37 }
 0x1e1   :  { %v614_v30 = vmul.f32 %v1004_v20, %v612_v52  ;;  %vm619_vm4 = vweird.f32 %v1004_v20  ;;  %v475_v38 = vadd.f32 0.0036580483, %v474_v33  ;;  %v486_v40 = vadd.f32 0.014752088, %v485_v1 }
 0x1e2   :  { %v450_v27 = vadd.f32 0.4994258, %v449_v28  ;;  %v438_v31 = vmul.f32 %v437_v62, %v1470_v36  ;;  %v1524_v60 = vadd.f32 %v321_v39, %v1257_v29  ;;  %v672_v55 = vmul.f32 2.1237322e-06, %v1515_v25  ;;  %vm620_vm6 = vmor %vm618_vm3, %vm619_vm4 }
 0x1e3   :  { %v615_v0 = vsub.f32 1.0, %v614_v30  ;;  %v476_v49 = vmul.f32 %v475_v38, %v1486_v46  ;;  %v487_v50 = vmul.f32 %v486_v40, %v1486_v46  ;;  %v625_v35 = vor.u32 1.1754944e-38, %v624_v24 }
 0x1e4   :  { %v451_v43 = vmul.f32 %v450_v27, %v1470_v36  ;;  %v1535_v53 = vadd.f32 %v299_v17, %v1255_v48  ;;  %v662_v57 = vand.u32 2147483647, %v1499_v16  ;;  %v673_v52 = vadd.f32 0.00028619796, %v672_v55 }
 0x1e5   :  { %v616_v37 = vmul.f32 %v1004_v20, %v615_v0  ;;  %v477_v10 = vadd.f32 0.05243302, %v476_v49  ;;  %v488_v61 = vadd.f32 0.112945676, %v487_v50  ;;  %v664_v13 = vand.u32 2147483648, %v1499_v16 }
 0x1e6   :  { %v1006_v12 = vpop.eup %1005  ;;  %v1532_v59 = vadd.f32 1.0, %v451_v43  ;;  %v439_v8 = vadd.f32 0.18741608, %v438_v31  ;;  %v1543_v11 = vmul.f32 0.70710677, %v1524_v60  ;;  %v642_v15 = vmul.f32 %v641_v51, %v1394_v5 }
 0x1e7   :  { %v617_v47 = vadd.f32 %v1004_v20, %v616_v37  ;;  %v654_v58 = vmul.f32 %v1006_v12, %v1499_v16  ;;  %vm659_vm7 = vweird.f32 %v1006_v12  ;;  %v478_v7 = vmul.f32 %v477_v10, %v1486_v46 }
 0x1e8   :  { %1007 = vrcp.f32 %v1532_v59  ;;  %v489_v14 = vmul.f32 %v488_v61, %v1486_v46  ;;  %vm658_vm8 = vweird.f32 %v1499_v16  ;;  %vm1549_vm9 = vcmp.eq.f32.partialorder %v662_v57, 8.507059e+37 }
 0x1e9   :  { %v621_v56 = vsel %vm620_vm6, %v1004_v20, %v617_v47  ;;  %v655_v41 = vsub.f32 1.0, %v654_v58  ;;  %v683_v20 = vmul.f32 3.8918573e-05, %v1515_v25  ;;  %vm660_vm10 = vmor %vm658_vm8, %vm659_vm7  ;;  %v665_v30 = vor.u32 1.1754944e-38, %v664_v13 }
 0x1ea   :  { %v626_v4 = vsel %vm1517_vm5, %v625_v35, %v621_v56  ;;  %v490_v22 = vadd.f32 0.4994258, %v489_v14  ;;  %v710_v62 = vmul.f32 %v1543_v11, %v1543_v11  ;;  %v1558_v5 = vmul.f32 0.70710677, %v1535_v53 }
 0x1eb   :  { %v627_v63 = vmul.f32 %v626_v4, %v602_v23  ;;  %v656_v48 = vmul.f32 %v1006_v12, %v655_v41  ;;  %v674_v23 = vmul.f32 %v673_v52, %v1515_v25  ;;  %v684_v9 = vadd.f32 0.001143296, %v683_v20 }
 0x1ec   :  { %v440_v0 = vmul.f32 %v439_v8, %v1470_v36  ;;  %v479_v33 = vadd.f32 0.18741608, %v478_v7  ;;  %v491_v1 = vmul.f32 %v490_v22, %v1486_v46  ;;  %v333_v34 = vmul.f32 0.5, %v1360_v44  ;;  %v323_v7 = vpop.f32.mrf.mxu3 }
 0x1ed   :  { %v940_v18 = vclamps-f32 %v627_v63, 1.0  ;;  %v657_v21 = vadd.f32 %v1006_v12, %v656_v48  ;;  %v464_v51 = vand.u32 2147483648, %v1532_v59  ;;  %v675_v40 = vadd.f32 0.0036580483, %v674_v23 }
 0x1ee   :  { %v1008_v16 = vpop.eup %1007  ;;  %v1567_v38 = vadd.f32 1.0, %v491_v1  ;;  %v685_v36 = vmul.f32 %v684_v9, %v1515_v25  ;;  %v1570_v54 = vmin.f32 %v710_v62, 16.0  ;;  %v750_v44 = vmul.f32 %v1558_v5, %v1558_v5 }
 0x1ef   :  { %v661_v28 = vsel %vm660_vm10, %v1006_v12, %v657_v21  ;;  %v454_v24 = vmul.f32 %v1008_v16, %v1532_v59  ;;  %v836_v27 = vadd.f32 1.0, %v940_v18  ;;  %v441_v43 = vadd.f32 1.1283791, %v440_v0 }
 0x1f0   :  { %v666_v39 = vsel %vm1549_vm9, %v665_v30, %v661_v28  ;;  %v480_v12 = vmul.f32 %v479_v33, %v1486_v46  ;;  %1009 = vrcp.f32 %v1567_v38  ;;  %vm458_vm11 = vweird.f32 %v1532_v59 }
 0x1f1   :  { %v667_v37 = vmul.f32 %v666_v39, %v642_v15  ;;  %v455_v17 = vsub.f32 1.0, %v454_v24  ;;  %vm459_vm12 = vweird.f32 %v1008_v16  ;;  %v462_v49 = vand.u32 2147483647, %v1532_v59 }
 0x1f2   :  { %v848_v50 = vmul.f32 %v836_v27, %v1506_v2  ;;  %v686_v35 = vadd.f32 0.014752088, %v685_v36  ;;  %v1579_v58 = vmin.f32 %v750_v44, 16.0  ;;  %v465_v57 = vor.u32 1.1754944e-38, %v464_v51  ;;  %vm460_vm13 = vmor %vm458_vm11, %vm459_vm12 }
 0x1f3   :  { %v941_v31 = vclamps-f32 %v667_v37, 1.0  ;;  %v456_v47 = vmul.f32 %v1008_v16, %v455_v17  ;;  %v676_v10 = vmul.f32 %v675_v40, %v1515_v25  ;;  %v712_v46 = vmul.f32 2.1237322e-06, %v1570_v54 }
 0x1f4   :  { %v481_v4 = vadd.f32 1.1283791, %v480_v12  ;;  %v687_v41 = vmul.f32 %v686_v35, %v1515_v25  ;;  %v723_v52 = vmul.f32 3.8918573e-05, %v1570_v54  ;;  %vm463_vm14 = vcmp.eq.f32.partialorder %v462_v49, 8.507059e+37 }
 0x1f5   :  { %v837_v55 = vadd.f32 1.0, %v941_v31  ;;  %v457_v56 = vadd.f32 %v1008_v16, %v456_v47  ;;  %v763_v48 = vmul.f32 3.8918573e-05, %v1579_v58  ;;  %v442_v14 = vmul.f32 %v441_v43, %v1424_v32 }
 0x1f6   :  { %v1010_v2 = vpop.eup %1009  ;;  %v688_v8 = vadd.f32 0.112945676, %v687_v41  ;;  %v713_v19 = vadd.f32 0.00028619796, %v712_v46  ;;  %v752_v20 = vmul.f32 2.1237322e-06, %v1579_v58  ;;  %v482_v18 = vmul.f32 %v481_v4, %v1476_v42 }
 0x1f7   :  { %v849_v61 = vmul.f32 %v837_v55, %v333_v34  ;;  %v461_v59 = vsel %vm460_vm13, %v1008_v16, %v457_v56  ;;  %v494_v15 = vmul.f32 %v1010_v2, %v1567_v38  ;;  %v677_v21 = vadd.f32 0.05243302, %v676_v10 }
 0x1f8   :  { %v466_v13 = vsel %vm463_vm14, %v465_v57, %v461_v59  ;;  %v689_v22 = vmul.f32 %v688_v8, %v1515_v25  ;;  %v724_v23 = vadd.f32 0.001143296, %v723_v52  ;;  %v502_v62 = vand.u32 2147483647, %v1567_v38 }
 0x1f9   :  { %v857_v63 = vpack.c.bf16 %v849_v61, %v848_v50  ;;  %v467_v30 = vmul.f32 %v466_v13, %v442_v14  ;;  %v495_v9 = vsub.f32 1.0, %v494_v15  ;;  %v1596_v32 = vadd.f32 %v323_v7, %v1257_v29 }
 0x1fa   :  { %v504_v16 = vand.u32 2147483648, %v1567_v38  ;;  %v690_v28 = vadd.f32 0.4994258, %v689_v22  ;;  %v725_v0 = vmul.f32 %v724_v23, %v1570_v54  ;;  %v764_v33 = vadd.f32 0.001143296, %v763_v48 }
 0x1fb   :  { %863 = vst [vmem:[%s1667_s5 + $0x18] sm:$0xff] %v857_v63  ;;  %v496_v1 = vmul.f32 %v1010_v2, %v495_v9  ;;  %vm499_vm15 = vweird.f32 %v1010_v2  ;;  %v714_v42 = vmul.f32 %v713_v19, %v1570_v54  ;;  %v753_v34 = vadd.f32 0.00028619796, %v752_v20 }
 0x1fc   :  { %vm498_vm0 = vweird.f32 %v1567_v38  ;;  %v691_v39 = vmul.f32 %v690_v28, %v1515_v25  ;;  %v726_v24 = vadd.f32 0.014752088, %v725_v0  ;;  %v765_v51 = vmul.f32 %v764_v33, %v1579_v58 }
 0x1fd   :  { %v936_v29 = vclamps-f32 %v467_v30, 1.0  ;;  %v497_v27 = vadd.f32 %v1010_v2, %v496_v1  ;;  %vm503_vm1 = vcmp.eq.f32.partialorder %v502_v62, 8.507059e+37  ;;  %v1605_v37 = vmul.f32 0.70710677, %v1596_v32  ;;  %vm500_vm2 = vmor %vm498_vm0, %vm499_vm15 }
 0x1fe   :  { %v505_v40 = vor.u32 1.1754944e-38, %v504_v16  ;;  %v1607_v17 = vadd.f32 1.0, %v691_v39  ;;  %v727_v36 = vmul.f32 %v726_v24, %v1570_v54  ;;  %v766_v44 = vadd.f32 0.014752088, %v765_v51 }
 0x1ff   :  { %v501_v31 = vsel %vm500_vm2, %v1010_v2, %v497_v27  ;;  %v715_v38 = vadd.f32 0.0036580483, %v714_v42  ;;  %v754_v43 = vmul.f32 %v753_v34, %v1579_v58  ;;  %v790_v12 = vmul.f32 %v1605_v37, %v1605_v37 }
 0x200   :  { %v506_v47 = vsel %vm503_vm1, %v505_v40, %v501_v31  ;;  %1011 = vrcp.f32 %v1607_v17  ;;  %v832_v49 = vadd.f32 1.0, %v936_v29  ;;  %v728_v55 = vadd.f32 0.112945676, %v727_v36 }
 0x201   :  { %v507_v50 = vmul.f32 %v506_v47, %v482_v18  ;;  %v328_v35 = vmul.f32 0.5, %v1363_v45  ;;  %v678_v56 = vmul.f32 %v677_v21, %v1515_v25  ;;  %v767_v57 = vmul.f32 %v766_v44, %v1579_v58 }
 0x202   :  { %v1617_v10 = vmin.f32 %v790_v12, 16.0  ;;  %v716_v61 = vmul.f32 %v715_v38, %v1570_v54  ;;  %v729_v4 = vmul.f32 %v728_v55, %v1570_v54  ;;  %v755_v41 = vadd.f32 0.0036580483, %v754_v43 }
 0x203   :  { %v937_v46 = vclamps-f32 %v507_v50, 1.0  ;;  %v768_v52 = vadd.f32 0.112945676, %v767_v57  ;;  %v844_v63 = vmul.f32 %v832_v49, %v328_v35  ;;  %v329_v45 = vmul.f32 0.5, %v1461_v26 }
 0x204   :  { %v792_v59 = vmul.f32 2.1237322e-06, %v1617_v10  ;;  %v803_v2 = vmul.f32 3.8918573e-05, %v1617_v10  ;;  %v730_v8 = vadd.f32 0.4994258, %v729_v4  ;;  %v756_v23 = vmul.f32 %v755_v41, %v1579_v58 }
 0x205   :  { %v833_v13 = vadd.f32 1.0, %v937_v46  ;;  %v679_v7 = vadd.f32 0.18741608, %v678_v56  ;;  %v769_v14 = vmul.f32 %v768_v52, %v1579_v58  ;;  %v717_v21 = vadd.f32 0.05243302, %v716_v61 }
 0x206   :  { %v1012_v48 = vpop.eup %1011  ;;  %v793_v15 = vadd.f32 0.00028619796, %v792_v59  ;;  %v804_v19 = vadd.f32 0.001143296, %v803_v2  ;;  %v731_v22 = vmul.f32 %v730_v8, %v1570_v54  ;;  %v704_v39 = vand.u32 2147483648, %v1607_v17 }
 0x207   :  { %v845_v20 = vmul.f32 %v833_v13, %v329_v45  ;;  %v694_v18 = vmul.f32 %v1012_v48, %v1607_v17  ;;  %v770_v30 = vadd.f32 0.4994258, %v769_v14  ;;  %v680_v28 = vmul.f32 %v679_v7, %v1515_v25 }
 0x208   :  { %v794_v9 = vmul.f32 %v793_v15, %v1617_v10  ;;  %v805_v16 = vmul.f32 %v804_v19, %v1617_v10  ;;  %v732_v0 = vadd.f32 1.0, %v731_v22  ;;  %vm699_vm3 = vweird.f32 %v1012_v48 }
 0x209   :  { %v855_v26 = vpack.c.bf16 %v845_v20, %v844_v63  ;;  %v695_v62 = vsub.f32 1.0, %v694_v18  ;;  %v771_v33 = vmul.f32 %v770_v30, %v1579_v58  ;;  %v718_v42 = vmul.f32 %v717_v21, %v1570_v54 }
 0x20a   :  { %v806_v34 = vadd.f32 0.014752088, %v805_v16  ;;  %1013 = vrcp.f32 %v732_v0  ;;  %v757_v24 = vadd.f32 0.05243302, %v756_v23  ;;  %v795_v51 = vadd.f32 0.0036580483, %v794_v9 }
 0x20b   :  { %861 = vst [vmem:[%s1667_s5 + $0x8] sm:$0xff] %v855_v26  ;;  %v696_v1 = vmul.f32 %v1012_v48, %v695_v62  ;;  %vm698_vm4 = vweird.f32 %v1607_v17  ;;  %v702_v25 = vand.u32 2147483647, %v1607_v17  ;;  %v772_v27 = vadd.f32 1.0, %v771_v33 }
 0x20c   :  { %vm700_vm5 = vmor %vm698_vm4, %vm699_vm3  ;;  %v807_v40 = vmul.f32 %v806_v34, %v1617_v10  ;;  %v681_v36 = vadd.f32 1.1283791, %v680_v28  ;;  %v719_v31 = vadd.f32 0.18741608, %v718_v42  ;;  %v705_v38 = vor.u32 1.1754944e-38, %v704_v39 }
 0x20d   :  { %v697_v29 = vadd.f32 %v1012_v48, %v696_v1  ;;  %1015 = vrcp.f32 %v772_v27  ;;  %v758_v43 = vmul.f32 %v757_v24, %v1579_v58  ;;  %v796_v12 = vmul.f32 %v795_v51, %v1617_v10 }
 0x20e   :  { %v808_v47 = vadd.f32 0.112945676, %v807_v40  ;;  %vm703_vm6 = vcmp.eq.f32.partialorder %v702_v25, 8.507059e+37  ;;  %v682_v17 = vmul.f32 %v681_v36, %v1502_v6  ;;  %v720_v35 = vmul.f32 %v719_v31, %v1570_v54 }
 0x20f   :  { %v701_v44 = vsel %vm700_vm5, %v1012_v48, %v697_v29  ;;  %v759_v57 = vadd.f32 0.18741608, %v758_v43  ;;  %v797_v46 = vadd.f32 0.05243302, %v796_v12  ;;  %v744_v59 = vand.u32 2147483648, %v732_v0 }
 0x210   :  { %v1014_v49 = vpop.eup %1013  ;;  %v706_v50 = vsel %vm703_vm6, %v705_v38, %v701_v44  ;;  %v809_v55 = vmul.f32 %v808_v47, %v1617_v10  ;;  %v721_v45 = vadd.f32 1.1283791, %v720_v35  ;;  %v742_v8 = vand.u32 2147483647, %v732_v0 }
 0x211   :  { %v734_v56 = vmul.f32 %v1014_v49, %v732_v0  ;;  %v707_v41 = vmul.f32 %v706_v50, %v682_v17  ;;  %vm739_vm7 = vweird.f32 %v1014_v49  ;;  %v760_v48 = vmul.f32 %v759_v57, %v1579_v58 }
 0x212   :  { %v810_v61 = vadd.f32 0.4994258, %v809_v55  ;;  %v798_v54 = vmul.f32 %v797_v46, %v1617_v10  ;;  %vm738_vm8 = vweird.f32 %v732_v0  ;;  %v745_v19 = vor.u32 1.1754944e-38, %v744_v59 }
 0x213   :  { %v1016_v4 = vpop.eup %1015  ;;  %v735_v52 = vsub.f32 1.0, %v734_v56  ;;  %v942_v14 = vclamps-f32 %v707_v41, 1.0  ;;  %vm740_vm9 = vmor %vm738_vm8, %vm739_vm7  ;;  %v784_v18 = vand.u32 2147483648, %v772_v27  ;;  %v722_v21 = vmul.f32 %v721_v45, %v1543_v11 }
 0x214   :  { %v774_v2 = vmul.f32 %v1016_v4, %v772_v27  ;;  %v811_v63 = vmul.f32 %v810_v61, %v1617_v10  ;;  %vm779_vm10 = vweird.f32 %v1016_v4  ;;  %vm743_vm11 = vcmp.eq.f32.partialorder %v742_v8, 8.507059e+37 }
 0x215   :  { %v736_v13 = vmul.f32 %v1014_v49, %v735_v52  ;;  %v782_v23 = vand.u32 2147483647, %v772_v27  ;;  %vm778_vm12 = vweird.f32 %v772_v27  ;;  %v799_v9 = vadd.f32 0.18741608, %v798_v54 }
 0x216   :  { %v775_v6 = vsub.f32 1.0, %v774_v2  ;;  %v812_v7 = vadd.f32 1.0, %v811_v63  ;;  %v838_v26 = vadd.f32 1.0, %v942_v14  ;;  %v761_v16 = vadd.f32 1.1283791, %v760_v48  ;;  %vm780_vm13 = vmor %vm778_vm12, %vm779_vm10 }
 0x217   :  { %v737_v15 = vadd.f32 %v1014_v49, %v736_v13  ;;  %v785_v0 = vor.u32 1.1754944e-38, %v784_v18  ;;  %v334_v33 = vmul.f32 0.5, %v1489_v3  ;;  %vm783_vm14 = vcmp.eq.f32.partialorder %v782_v23, 8.507059e+37 }
 0x218   :  { %v776_v20 = vmul.f32 %v1016_v4, %v775_v6  ;;  %1017 = vrcp.f32 %v812_v7  ;;  %v335_v11 = vmul.f32 0.5, %v1524_v60  ;;  %v800_v39 = vmul.f32 %v799_v9, %v1617_v10 }
 0x219   :  { %v741_v22 = vsel %vm740_vm9, %v1014_v49, %v737_v15  ;;  %v850_v24 = vmul.f32 %v838_v26, %v334_v33  ;;  %v762_v29 = vmul.f32 %v761_v16, %v1558_v5  ;;  %v824_v31 = vand.u32 2147483648, %v812_v7 }
 0x21a   :  { %v746_v30 = vsel %vm743_vm11, %v745_v19, %v741_v22  ;;  %v777_v58 = vadd.f32 %v1016_v4, %v776_v20  ;;  %v801_v44 = vadd.f32 1.1283791, %v800_v39  ;;  %v822_v43 = vand.u32 2147483647, %v812_v7 }
 0x21b   :  { %v747_v62 = vmul.f32 %v746_v30, %v722_v21  ;;  %vm818_vm0 = vweird.f32 %v812_v7  ;;  %v825_v12 = vor.u32 1.1754944e-38, %v824_v31  ;;  %v336_v17 = vmul.f32 0.5, %v1535_v53 }
 0x21c   :  { %v781_v28 = vsel %vm780_vm13, %v1016_v4, %v777_v58  ;;  %v802_v5 = vmul.f32 %v801_v44, %v1605_v37  ;;  %vm823_vm2 = vcmp.eq.f32.partialorder %v822_v43, 8.507059e+37  ;;  %v337_v57 = vmul.f32 0.5, %v1596_v32 }
 0x21d   :  { %v943_v1 = vclamps-f32 %v747_v62, 1.0  ;;  %v786_v34 = vsel %vm783_vm14, %v785_v0, %v781_v28 }
 0x21e   :  { %v1018_v42 = vpop.eup %1017  ;;  %v787_v40 = vmul.f32 %v786_v34, %v762_v29 }
 0x21f   :  { %v839_v51 = vadd.f32 1.0, %v943_v1  ;;  %v814_v25 = vmul.f32 %v1018_v42, %v812_v7  ;;  %vm819_vm15 = vweird.f32 %v1018_v42 }
 0x220   :  { %v944_v60 = vclamps-f32 %v787_v40, 1.0  ;;  %vm820_vm1 = vmor %vm818_vm0, %vm819_vm15 }
 0x221   :  { %v851_v27 = vmul.f32 %v839_v51, %v335_v11  ;;  %v815_v36 = vsub.f32 1.0, %v814_v25 }
 0x222   :  { %v840_v50 = vadd.f32 1.0, %v944_v60 }
 0x223   :  { %v858_v38 = vpack.c.bf16 %v851_v27, %v850_v24  ;;  %v816_v3 = vmul.f32 %v1018_v42, %v815_v36 }
 0x224   :  { %v852_v56 = vmul.f32 %v840_v50, %v336_v17 }
 0x225   :  { %864 = vst [vmem:[%s1667_s5 + $0x20] sm:$0xff] %v858_v38  ;;  %v817_v10 = vadd.f32 %v1018_v42, %v816_v3 }
 0x227   :  { %v821_v47 = vsel %vm820_vm1, %v1018_v42, %v817_v10 }
 0x228   :  { %v826_v49 = vsel %vm823_vm2, %v825_v12, %v821_v47 }
 0x229   :  { %v827_v55 = vmul.f32 %v826_v49, %v802_v5 }
 0x22b   :  { %v945_v35 = vclamps-f32 %v827_v55, 1.0 }
 0x22d   :  { %v841_v46 = vadd.f32 1.0, %v945_v35 }
 0x22f   :  { %v853_v61 = vmul.f32 %v841_v46, %v337_v57 }
 0x231   :  { %v859_v4 = vpack.c.bf16 %v853_v61, %v852_v56 }
 0x233   :  { %865 = vst [vmem:[%s1667_s5 + $0x28] sm:$0xff] %v859_v4 }

// kernel: transformer_decoder_block.11
= control target key start
LH: loop header
LB: loop body
LE: loop exit
PB: predicated region body
PF: predicated region fallthrough
CT: control target
= control target key end

     0   :  { %s1660_s0 = inlined_call_operand.vmem [shape: bf16[2,24,128], index: 0, kind: input, shape index: {}]   ;;  %s1661_s1 = inlined_call_operand.vmem [shape: bf16[2,48,256], index: 1, kind: input, shape index: {}, may-alias: {1,2}]   ;;  %s1662_s2 = inlined_call_operand.vmem [shape: bf16[2,48,256], index: 2, kind: input, shape index: {}, may-alias: {1,2}]   ;;  %s1663_s3 = inlined_call_operand.vmem [shape: f32[2,24,128], index: 3, kind: input, shape index: {}]   ;;  %s1664_s4 = inlined_call_operand.vmem [shape: bf16[128,128], index: 4, kind: input, shape index: {}]   ;;  %s1665_s5 = inlined_call_operand.vmem [shape: f32[1,128], index: 5, kind: input, shape index: {}]   ;;  %s1666_s6 = inlined_call_operand.vmem [shape: f32[2,24,128], index: 6, kind: output, shape index: {}]  }
   0x1   :  { %1668 = sst [smem:[#allocation9_spill]] %s1661_s1 }
   0x2   :  { %1669 = sst [smem:[#allocation10_spill]] %s1662_s2 }
   0x3   :  { %s1406_s21 = smov 0   ;;  %s1408_s22 = smov 0  }
   0x4   :  { %s1410_s23 = smov 0   ;;  %s1412_s24 = smov 0  }
   0x5   :  { %s1414_s25 = smov 0   ;;  %s1416_s26 = smov 0  }
   0x6   :  { %s1418_s27 = smov 0   ;;  %s1420_s28 = smov 0  }
   0x7   :  { %s1422_s29 = smov 0  }
   0x8 LB: > { %s28_s30 = sadd.s32 1, %s1344_s26  ;;  %s31_s7 = sadd.s32 1, %s1348_s27  ;;  %s1356_s29 = sphi %s1422_s29, %s16_s29   ;;  %s1352_s28 = sphi %s1420_s28, %s1684_s28   ;;  %s1348_s27 = sphi %s1418_s27, %s1683_s27   ;;  %s1344_s26 = sphi %s1416_s26, %s1682_s26   ;;  %s1340_s25 = sphi %s1414_s25, %s1681_s25   ;;  %s1336_s24 = sphi %s1412_s24, %s1680_s24   ;;  %s1332_s23 = sphi %s1410_s23, %s1679_s23   ;;  %s1328_s22 = sphi %s1408_s22, %s1678_s22   ;;  %s1324_s21 = sphi %s1406_s21, %s1677_s21  }
   0x9   : > { %p29_p0 = scmp.ge.s32.totalorder %s28_s30, 3  ;;  %p79_p1 = scmp.ne.s32.totalorder %s1328_s22, %s1324_s21 }
   0xa   : > { %p80_p2 = scmp.eq.s32.totalorder %s1356_s29, 0  ;;  %s35_s8 = sadd.s32 1, %s1352_s28 }
   0xb   : > { %s1686_s30 = smov (%p29_p0, %s28_s30), 0  ;;  %s1688_s7 = smov (!%p29_p0, %s31_s7), %s1348_s27 }
   0xc   : > { %p33_p3 = scmp.ge.s32.totalorder %s1688_s7, 3  ;;  %p1460_p4 = por %p80_p2, %p79_p1 }
   0xd   : > { %s68_s10 = ssub.s32 %s1344_s26, %s1686_s30  ;;  %s72_s13 = sadd.s32 1, %s1328_s22 }
   0xe   : > { %s1690_s7 = smov (%p33_p3, %s1688_s7), 0  ;;  %s1692_s8 = smov (!%p33_p3, %s35_s8), %s1352_s28 }
   0xf   : > { %1671 = sst [smem:[#allocation7_spill]] %s1690_s7  ;;  %p37_p5 = scmp.ge.s32.totalorder %s1692_s8, 2 }
  0x10   : > { %p1087_p7 = scmp.ge.s32.totalorder %s1356_s29, 18 }
  0x11   : > { %s1694_s8 = smov (%p37_p5, %s1692_s8), 0 }
  0x12   : > { %1672 = sst [smem:[#allocation8_spill]] %s1694_s8  ;;  %s67_s11 = ssub.s32 %s1352_s28, %s1694_s8 }
  0x13   : > { %s69_s12 = sor.u32 %s68_s10, %s67_s11  ;;  %237 = sbr.rel (%p1087_p7) target bundleno = 48 (0x30), region = 24 }
  0x14   : > { %p70_p6 = scmp.eq.s32.totalorder %s69_s12, 0 }
  0x16   : > { %s1475_s14 = scalar_select %p70_p6, %s1328_s22, %s72_s13  }
  0x18   : > { %251 = sbr.rel (!%p1460_p4) target bundleno = 36 (0x24), region = 32  ;;  %s253_s15 = sand.u32 (%p1460_p4), 1, %s1328_s22  }
  0x19   : > { %s1155_s16 = sshll.u32 (%p1460_p4), %s1344_s26, 2  ;;  %s1088_s17 = sshll.u32 (%p1460_p4), %s253_s15, 3 }
  0x1a   : > { %s1166_s18 = smul.u32 (%p1460_p4), 12, %s1352_s28  ;;  %s1673_s1 = sld [smem:[#allocation9_spill]] (%p1460_p4) }
  0x1b   : > { %s255_s13 = scalar_lea.vmem (%p1460_p4), [#allocation5], %s1088_s17 }
  0x1c   : > { %s259_s19 = sadd.s32 (%p1460_p4), %s1166_s18, %s1155_s16 }
  0x1d   : > { %s1091_s20 = sshll.u32 %s259_s19, 2 }
  0x20   : > { %s261_s12 = scalar_lea.vmem %s1673_s1, %s1091_s20 }
  0x21   : > { %v278_v0 = vld [vmem:[%s261_s12] sm:$0xf]  ;;  %v280_v1 = vld [vmem:[%s261_s12 + $0x8] sm:$0xf] }
  0x22   : > { %279 = vst [vmem:[%s255_s13] sm:$0xf] %v278_v0 }
  0x23   : > { %281 = vst [vmem:[%s255_s13 + $0x4] sm:$0xf] %v280_v1 }
  0x24 PF: > { %309 = sbr.rel (!%p1460_p4) target bundleno = 48 (0x30), region = 73  ;;  %s311_s15 = sand.u32 (%p1460_p4), 1, %s1328_s22  }
  0x25   : > { %s1093_s8 = sshll.u32 (%p1460_p4), %s1344_s26, 2  ;;  %s1092_s16 = sshll.u32 (%p1460_p4), %s311_s15, 3 }
  0x26   : > { %s972_s18 = smul.u32 (%p1460_p4), 12, %s1352_s28  ;;  %s1674_s2 = sld [smem:[#allocation10_spill]] (%p1460_p4) }
  0x27   : > { %s313_s17 = scalar_lea.vmem (%p1460_p4), [#allocation6], %s1092_s16 }
  0x28   : > { %s973_s19 = sadd.s32 (%p1460_p4), %s1093_s8, %s972_s18 }
  0x29   : > { %s1094_s7 = sshll.u32 %s973_s19, 2 }
  0x2c   : > { %s975_s11 = scalar_lea.vmem %s1674_s2, %s1094_s7 }
  0x2d   : > { %v1095_v2 = vld [vmem:[%s975_s11 + $0x4] sm:$0xf]  ;;  %v1096_v3 = vld [vmem:[%s975_s11 + $0xc] sm:$0xf] }
  0x2e   : > { %338 = vst [vmem:[%s313_s17] sm:$0xf] %v1095_v2 }
  0x2f   : > { %340 = vst [vmem:[%s313_s17 + $0x4] sm:$0xf] %v1096_v3 }
  0x30 PF: > { %p1097_p8 = scmp.ge.s32.totalorder %s1356_s29, 1  ;;  %p378_p9 = scmp.lt.s32.totalorder %s1356_s29, 19 }
  0x32   : > { %p379_p10 = pnand %p1097_p8, %p378_p9 }
  0x33   : > { %s385_s8 = sand.u32 (!%p379_p10), 1, %s1324_s21   ;;  %p444_p11 = scmp.lt.s32.totalorder (!%p379_p10), %s1340_s25, 1 }
  0x34   : > { %382 = sbr.rel (%p379_p10) target bundleno = 1383 (0x567), region = 118  ;;  %s1498_s7 = sshll.u32 (!%p379_p10), %s385_s8, 3 }
  0x35   : > { %p446_p12 = scmp.lt.s32.totalorder (!%p379_p10), %s1336_s24, 2  ;;  %s387_s1 = scalar_lea.vmem (!%p379_p10), [#allocation5], %s1498_s7 }
  0x36   : > { %s394_s2 = scalar_lea.vmem (!%p379_p10), [#allocation6], %s1498_s7  ;;  %p1103_p13 = scmp.ne.s32.totalorder (!%p379_p10), %s1332_s23, 0 }
  0x39   : > { %s1696_s25 = smov (!%p444_p11, %s1340_s25), 1  ;;  %s1698_s24 = smov (!%p446_p12, %s1336_s24), 2 }
  0x3a   : > { %s1167_s9 = smul.u32 3, %s1696_s25 }
  0x3b   : > { %474 = sbr.rel (%p1103_p13) target bundleno = 68 (0x44), region = 130 }
  0x3c   : > { %s449_s12 = sadd.s32 %s1167_s9, %s1698_s24 }
  0x3d   : > { %s1100_s13 = sshll.u32 %s449_s12, 2  ;;  %s1101_s15 = sshll.u32 %s449_s12, 3 }
  0x3e   : > { %s451_s19 = scalar_lea.vmem %s1660_s0, %s1100_s13  ;;  %s1509_s21 = scalar_lea.vmem %s1663_s3, %s1101_s15 }
  0x3f   : > { %s1514_s8 = scalar_lea.vmem %s1666_s6, %s1101_s15 }
  0x40   : > { %vm475_vm0 = vcmask 31744   ;;  %v1358_v4 = vmov -inf   ;;  %v1359_v5 = vmov 0.0  }
  0x41   : > { %476 = vst.msk [vmem:[#allocation2] sm:$0xff] %vm475_vm0, %v1358_v4 }
  0x42   : > { %477 = vst.msk [vmem:[#allocation3] sm:$0xff] %vm475_vm0, %v1359_v5 }
  0x43   : > { %478 = vst [vmem:[#allocation4] sm:$0xff] %v1359_v5 }
  0x44 PF: > { %v1156_v6 = vld [vmem:[%s387_s1] sm:$0xff]  ;;  %vm489_vm1 = vcmask 261120   ;;  %vm510_vm2 = vcmask 130048   ;;  %s1360_s24 = smov 64   ;;  %s1361_s1 = smov 96   ;;  %v1363_v14 = vmov 0  }
  0x45   : > { %v494_v7 = vsel %vm489_vm1, %v1156_v6, 0  ;;  %v479_v8 = vld [vmem:[%s451_s19] sm:$0xf]  ;;  %654 = vrot.lane.b32.xlu2 %v1156_v6, %s1360_s24  ;;  %s1362_s25 = smov 32   ;;  %1253 = vset.pattern.permute.xlu1 %v1363_v14  ;;  %vm532_vm3 = vcmask 7168   ;;  %v1157_v21 = vld [vmem:[%s394_s2] sm:$0xff] }
  0x46   : > { %503 = vmatpush.bf16.xpose.msra.mxu0 %v494_v7  ;;  %v568_v12 = vunpack.c.l.b16 %v479_v8  ;;  %558 = vmatpush.bf16.msra.mxu1 %v1157_v21  ;;  %v1364_v45 = vmov 1   ;;  %v1365_v46 = vmov 2   ;;  %v1366_v47 = vmov 3   ;;  %p1120_p0 = scmp.ne.s32.totalorder %s1332_s23, 2 }
  0x47   : > { %1254 = vset.pattern.permute.xlu2 %v1364_v45  ;;  %1255 = vset.pattern.permute.xlu0 %v1365_v46  ;;  %vm615_vm4 = vcmask 15368   ;;  %vm697_vm5 = vcmask 23568   ;;  %vm779_vm6 = vcmask 31768   ;;  %vm649_vm7 = vcmask 523520  }
  0x48   : > { %v569_v13 = vpack.c.b16 %v568_v12, %v568_v12  ;;  %v1526_v15 = vld [vmem:[#allocation2] sm:$0xff]  ;;  %vm731_vm8 = vcmask 785920   ;;  %vm813_vm9 = vcmask 1048320  }
  0x4a   : > { %v534_v12 = vld [vmem:[#allocation4] sm:$0xff] }
  0x4d   : > { %1108 = vmatmul.msk.bf16.vlgmr.msra.gmra.mxu0 %vm489_vm1, %v479_v8  ;;  %652 = vrot.lane.b32.xlu2 %v569_v13, %s1360_s24 }
  0x55   : > { %734 = vrot.lane.b32.xlu2 %v569_v13, %s1362_s25 }
  0x9f   : > { %v655_v22 = vpop.permute.xlu2 %654 }
  0xa0   : > { %v660_v23 = vsel %vm489_vm1, %v655_v22, 0 }
  0xa1   : > { %669 = vmatpush.bf16.xpose.msrb.mxu1 %v660_v23 }
  0xa7   : > { %v653_v30 = vpop.permute.xlu2 %652 }
  0xaf   : > { %v735_v33 = vpop.permute.xlu2 %734 }
  0xca   : > { %v505_v9 = vpop.f32.mrf.mxu0 }
  0xcb   : > { %v511_v10 = vsel %vm510_vm2, %v505_v9, -inf }
  0xcc   : > { %512 = vmax.xlane.f32.xlu0 %v511_v10 }
  0xd2   : > { %v507_v11 = vpop.f32.mrf.mxu0 }
  0xe0   : > { %572 = vrot.lane.b32.xlu0 %v1156_v6, %s1361_s1 }
 0x13f   : > { %v513_v16 = vpop.xlane.xlu0 %512 }
 0x140   : > { %v514_v17 = vmax.f32 %v1526_v15, %v513_v16 }
 0x142   : > { %v515_v18 = vsub.f32 %v1526_v15, %v514_v17  ;;  %566 = vst.msk [vmem:[#allocation2] sm:$0xff] %vm532_vm3, %v514_v17  ;;  %520 = vperm.xlu1 %1253, %v514_v17  }
 0x144   : > { %v516_v53 = vmul.f32 1.442695, %v515_v18 }
 0x149   : > { %v593_v48 = vld [vmem:[#allocation2] sm:$0xff] }
 0x14a   : > { %570 = vrot.lane.b32.xlu1 %v569_v13, %s1361_s1 }
 0x14b   : > { %1256 = vset.pattern.permute.xlu1 %v1366_v47 }
 0x152   : > { %736 = vrot.lane.b32.xlu1 %v1156_v6, %s1362_s25  ;;  %v573_v19 = vpop.permute.xlu0 %572 }
 0x153   : > { %v578_v20 = vsel %vm489_vm1, %v573_v19, 0 }
 0x154   : > { %587 = vmatpush.bf16.xpose.msra.mxu2 %v578_v20 }
 0x1b4   : > { %v521_v24 = vpop.permute.xlu1 %520 }
 0x1b5   : > { %v523_v25 = vsub.f32 %v505_v9, %v521_v24 }
 0x1b7   : > { %v524_v26 = vmul.f32 1.442695, %v523_v25 }
 0x1b9   : > { %1262 = vpow2.f32 %v524_v26 }
 0x1ba   : > { %1264 = vpow2.f32 %v516_v53 }
 0x1bc   : > { %v571_v27 = vpop.permute.xlu1 %570 }
 0x1bd   : > { %1114 = vmatmul.msk.bf16.vlgmr.msra.gmra.mxu2 %vm489_vm1, %v571_v27  ;;  %v526_v27 = vld [vmem:[#allocation3] sm:$0xff] }
 0x1bf   : > { %v1538_v28 = vpop.eup %1262 }
 0x1c0   : > { %v541_v29 = vpack.c.bf16 %v1538_v28, %v1538_v28  ;;  %v1265_v60 = vpop.eup %1264  ;;  %v528_v0 = vsel %vm510_vm2, %v1538_v28, 0.0 }
 0x1c1   : > { %v527_v28 = vmul.f32 %v1265_v60, %v526_v27 }
 0x1c2   : > { %1113 = vmatmul.msk.bf16.vlgmr.msra.gmra.mxu1 %vm510_vm2, %v541_v29 }
 0x1c4   : > { %v737_v31 = vpop.permute.xlu1 %736 }
 0x1c5   : > { %v742_v32 = vsel %vm489_vm1, %v737_v31, 0 }
 0x1c6   : > { %751 = vmatpush.bf16.xpose.msrb.mxu0 %v742_v32 }
 0x1cd   : > { %1118 = vmatmul.msk.bf16.vlgmr.msrb.gmra.mxu0 %vm489_vm1, %v735_v33 }
 0x1d2   : > { %1116 = vmatmul.msk.bf16.vlgmr.msrb.gmra.mxu1 %vm489_vm1, %v653_v30 }
 0x23f   : > { %v1546_v34 = vpop.f32.mrf.mxu1 }
 0x240   : > { %v1548_v35 = vpop.f32.mrf.mxu2 }
 0x241   : > { %v594_v36 = vsel %vm510_vm2, %v1548_v35, -inf }
 0x242   : > { %595 = vmax.xlane.f32.xlu1 %v594_v36 }
 0x247   : > { %v562_v37 = vpop.f32.mrf.mxu1 }
 0x248   : > { %v591_v38 = vpop.f32.mrf.mxu2 }
 0x24a   : > { %v1552_v39 = vpop.f32.mrf.mxu0 }
 0x24b   : > { %v758_v40 = vsel %vm510_vm2, %v1552_v39, -inf }
 0x24c   : > { %759 = vmax.xlane.f32.xlu0 %v758_v40 }
 0x24f   : > { %v1556_v41 = vpop.f32.mrf.mxu1 }
 0x250   : > { %v676_v42 = vsel %vm510_vm2, %v1556_v41, -inf }
 0x251   : > { %677 = vmax.xlane.f32.xlu2 %v676_v42 }
 0x252   : > { %v755_v43 = vpop.f32.mrf.mxu0 }
 0x257   : > { %v673_v44 = vpop.f32.mrf.mxu1 }
 0x25b   : > { %625 = vrot.lane.b32.xlu1 %v1157_v21, %s1361_s1 }
 0x2b5   : > { %v596_v49 = vpop.xlane.xlu1 %595 }
 0x2b6   : > { %v597_v50 = vmax.f32 %v593_v48, %v596_v49 }
 0x2b8   : > { %651 = vst.msk [vmem:[#allocation2] sm:$0xff] %vm615_vm4, %v597_v50  ;;  %603 = vperm.xlu2 %1254, %v597_v50   ;;  %v598_v56 = vsub.f32 %v593_v48, %v597_v50 }
 0x2ba   : > { %v599_v58 = vmul.f32 1.442695, %v598_v56 }
 0x2bc   : > { %1266 = vpow2.f32 %v599_v58 }
 0x2bf   : > { %v675_v52 = vld [vmem:[#allocation2] sm:$0xff]  ;;  %v760_v57 = vpop.xlane.xlu0 %759 }
 0x2c0   : > { %707 = vrot.lane.b32.xlu2 %v1157_v21, %s1360_s24 }
 0x2c1   : > { %1257 = vset.pattern.permute.xlu2 %v1363_v14 }
 0x2c2   : > { %v1267_v63 = vpop.eup %1266 }
 0x2c4   : > { %v678_v51 = vpop.xlane.xlu2 %677 }
 0x2c5   : > { %v679_v54 = vmax.f32 %v675_v52, %v678_v51 }
 0x2c7   : > { %v680_v55 = vsub.f32 %v675_v52, %v679_v54  ;;  %733 = vst.msk [vmem:[#allocation2] sm:$0xff] %vm697_vm5, %v679_v54  ;;  %685 = vperm.xlu0 %1255, %v679_v54  }
 0x2c8   : > { %789 = vrot.lane.b32.xlu2 %v1157_v21, %s1362_s25 }
 0x2c9   : > { %v681_v2 = vmul.f32 1.442695, %v680_v55 }
 0x2cb   : > { %1268 = vpow2.f32 %v681_v2 }
 0x2cd   : > { %v626_v1 = vpop.permute.xlu1 %625 }
 0x2ce   : > { %v1565_v59 = vld [vmem:[#allocation2] sm:$0xff]  ;;  %638 = vmatpush.bf16.msra.mxu3 %v626_v1 }
 0x2cf   : > { %v1568_v61 = vmax.f32 %v1565_v59, %v760_v57  ;;  %1261 = vset.pattern.permute.xlu0 %v1366_v47 }
 0x2d0   : > { %537 = vperm.xlu2 %1257, %v1265_v60  }
 0x2d1   : > { %v762_v62 = vsub.f32 %v1565_v59, %v1568_v61  ;;  %815 = vst.msk [vmem:[#allocation2] sm:$0xff] %vm779_vm6, %v1568_v61  ;;  %767 = vperm.xlu1 %1256, %v1568_v61   ;;  %v1577_v4 = vpop.eup %1268 }
 0x2d8   : > { %1258 = vset.pattern.permute.xlu2 %v1364_v45 }
 0x2d9   : > { %620 = vperm.xlu2 %1258, %v1267_v63   ;;  %1259 = vset.pattern.permute.xlu1 %v1365_v46 }
 0x2e1   : > { %1260 = vset.pattern.permute.xlu2 %v1366_v47 }
 0x2fb   : > { %529 = vadd.xlane.f32.xlu1 %v528_v0 }
 0x312   : > { %v604_v3 = vpop.permute.xlu2 %603 }
 0x313   : > { %v606_v5 = vsub.f32 %v1548_v35, %v604_v3 }
 0x314   : > { %702 = vperm.xlu1 %1259, %v1577_v4  }
 0x315   : > { %v607_v6 = vmul.f32 1.442695, %v606_v5 }
 0x317   : > { %1270 = vpow2.f32 %v607_v6 }
 0x31a   : > { %v708_v7 = vpop.permute.xlu2 %707 }
 0x31b   : > { %720 = vmatpush.bf16.msrb.mxu3 %v708_v7 }
 0x31d   : > { %v1271_v8 = vpop.eup %1270 }
 0x31e   : > { %v611_v9 = vsel %vm510_vm2, %v1271_v8, 0.0  ;;  %v624_v10 = vpack.c.bf16 %v1271_v8, %v1271_v8 }
 0x31f   : > { %612 = vadd.xlane.f32.xlu0 %v611_v9 }
 0x320   : > { %1115 = vmatmul.msk.bf16.vlgmr.msra.gmra.mxu3 %vm510_vm2, %v624_v10 }
 0x322   : > { %v790_v11 = vpop.permute.xlu2 %789 }
 0x323   : > { %802 = vmatpush.bf16.msrb.mxu2 %v790_v11 }
 0x32a   : > { %v538_v13 = vpop.permute.xlu2 %537 }
 0x32b   : > { %v540_v14 = vmul.f32 %v538_v13, %v534_v12 }
 0x32d   : > { %v564_v15 = vadd.f32 %v1546_v34, %v540_v14 }
 0x32f   : > { %565 = vst.msk [vmem:[#allocation4] sm:$0xff] %vm489_vm1, %v564_v15 }
 0x333   : > { %v621_v44 = vpop.permute.xlu2 %620 }
 0x336   : > { %v617_v45 = vld [vmem:[#allocation4] sm:$0xff] }
 0x337   : > { %v623_v46 = vmul.f32 %v621_v44, %v617_v45 }
 0x339   : > { %v686_v16 = vpop.permute.xlu0 %685 }
 0x33a   : > { %v688_v17 = vsub.f32 %v1556_v41, %v686_v16  ;;  %v763_v41 = vmul.f32 1.442695, %v762_v62 }
 0x33c   : > { %v689_v18 = vmul.f32 1.442695, %v688_v17 }
 0x33e   : > { %1272 = vpow2.f32 %v689_v18 }
 0x343   : > { %v768_v19 = vpop.permute.xlu1 %767 }
 0x344   : > { %v1273_v20 = vpop.eup %1272  ;;  %v770_v21 = vsub.f32 %v1552_v39, %v768_v19 }
 0x345   : > { %v706_v22 = vpack.c.bf16 %v1273_v20, %v1273_v20  ;;  %v693_v38 = vsel %vm510_vm2, %v1273_v20, 0.0 }
 0x346   : > { %v771_v23 = vmul.f32 1.442695, %v770_v21 }
 0x347   : > { %1117 = vmatmul.msk.bf16.vlgmr.msrb.gmra.mxu3 %vm510_vm2, %v706_v22 }
 0x348   : > { %1274 = vpow2.f32 %v771_v23 }
 0x349   : > { %1276 = vpow2.f32 %v763_v41 }
 0x34e   : > { %v1275_v24 = vpop.eup %1274 }
 0x34f   : > { %v775_v25 = vsel %vm510_vm2, %v1275_v24, 0.0  ;;  %v788_v26 = vpack.c.bf16 %v1275_v24, %v1275_v24  ;;  %v1277_v43 = vpop.eup %1276 }
 0x350   : > { %776 = vadd.xlane.f32.xlu1 %v775_v25 }
 0x351   : > { %1119 = vmatmul.msk.bf16.vlgmr.msrb.gmra.mxu2 %vm510_vm2, %v788_v26 }
 0x36e   : > { %v530_v29 = vpop.xlane.xlu1 %529 }
 0x36f   : > { %v531_v30 = vadd.f32 %v530_v29, %v527_v28 }
 0x371   : > { %533 = vst.msk [vmem:[#allocation3] sm:$0xff] %vm532_vm3, %v531_v30 }
 0x378   : > { %v609_v31 = vld [vmem:[#allocation3] sm:$0xff] }
 0x379   : > { %v610_v32 = vmul.f32 %v1267_v63, %v609_v31 }
 0x386   : > { %v703_v50 = vpop.permute.xlu1 %702 }
 0x392   : > { %v613_v33 = vpop.xlane.xlu0 %612 }
 0x393   : > { %v614_v34 = vadd.f32 %v613_v33, %v610_v32 }
 0x395   : > { %616 = vst.msk [vmem:[#allocation3] sm:$0xff] %vm615_vm4, %v614_v34 }
 0x39c   : > { %v691_v52 = vld [vmem:[#allocation3] sm:$0xff] }
 0x39d   : > { %v692_v55 = vmul.f32 %v1577_v4, %v691_v52 }
 0x3a3   : > { %v640_v35 = vpop.f32.mrf.mxu3 }
 0x3a4   : > { %645 = vrot.lane.b32.xlu2 %v640_v35, %s1362_s25 }
 0x3ab   : > { %v642_v36 = vpop.f32.mrf.mxu3 }
 0x3c3   : > { %v777_v1 = vpop.xlane.xlu1 %776 }
 0x3ca   : > { %v722_v37 = vpop.f32.mrf.mxu3 }
 0x3cb   : > { %727 = vrot.lane.b32.xlu0 %v722_v37, %s1360_s24 }
 0x3cd   : > { %694 = vadd.xlane.f32.xlu2 %v693_v38 }
 0x3d2   : > { %v724_v39 = vpop.f32.mrf.mxu3 }
 0x3d4   : > { %v804_v40 = vpop.f32.mrf.mxu2 }
 0x3d5   : > { %809 = vrot.lane.b32.xlu0 %v804_v40, %s1361_s1 }
 0x3dc   : > { %v806_v42 = vpop.f32.mrf.mxu2 }
 0x3e5   : > { %784 = vperm.xlu2 %1260, %v1277_v43  }
 0x3fe   : > { %v646_v47 = vpop.permute.xlu2 %645 }
 0x3ff   : > { %v648_v48 = vadd.f32 %v646_v47, %v623_v46 }
 0x401   : > { %650 = vst.msk [vmem:[#allocation4] sm:$0xff] %vm649_vm7, %v648_v48 }
 0x408   : > { %v699_v49 = vld [vmem:[#allocation4] sm:$0xff] }
 0x409   : > { %v705_v51 = vmul.f32 %v703_v50, %v699_v49 }
 0x43d   : > { %v728_v53 = vpop.permute.xlu0 %727 }
 0x43e   : > { %v730_v54 = vadd.f32 %v728_v53, %v705_v51 }
 0x440   : > { %732 = vst.msk [vmem:[#allocation4] sm:$0xff] %vm731_vm8, %v730_v54  ;;  %v695_v56 = vpop.xlane.xlu2 %694 }
 0x441   : > { %v696_v57 = vadd.f32 %v695_v56, %v692_v55 }
 0x443   : > { %698 = vst.msk [vmem:[#allocation3] sm:$0xff] %vm697_vm5, %v696_v57 }
 0x447   : > { %v781_v58 = vld [vmem:[#allocation4] sm:$0xff]  ;;  %v810_v62 = vpop.permute.xlu0 %809 }
 0x448   : > { %v785_v59 = vpop.permute.xlu2 %784 }
 0x449   : > { %v787_v60 = vmul.f32 %v785_v59, %v781_v58 }
 0x44a   : > { %v773_v61 = vld [vmem:[#allocation3] sm:$0xff] }
 0x44b   : > { %v774_v63 = vmul.f32 %v1277_v43, %v773_v61  ;;  %v812_v0 = vadd.f32 %v810_v62, %v787_v60  ;;  %819 = sbr.rel (%p1120_p0) target bundleno = 1383 (0x567), region = 134 }
 0x44d   : > { %v778_v2 = vadd.f32 %v777_v1, %v774_v63  ;;  %814 = vst.msk [vmem:[#allocation4] sm:$0xff] %vm813_vm9, %v812_v0 }
 0x44f   : > { %780 = vst.msk [vmem:[#allocation3] sm:$0xff] %vm779_vm6, %v778_v2 }
 0x450   : > { %v1165_v4 = vld [vmem:[%s1664_s4 + $0x38] sm:$0xff]  ;;  %v1367_v5 = vmov 0   ;;  %v1368_v6 = vmov 2   ;;  %v1164_v7 = vld [vmem:[%s1664_s4 + $0x30] sm:$0xff]  ;;  %v1163_v8 = vld [vmem:[%s1664_s4 + $0x28] sm:$0xff]  ;;  %v1369_v11 = vmov 1  }
 0x451   : > { %1278 = vset.pattern.permute.xlu0 %v1367_v5  ;;  %1280 = vset.pattern.permute.xlu1 %v1368_v6  ;;  %v1162_v10 = vld [vmem:[%s1664_s4 + $0x20] sm:$0xff]  ;;  %v1370_v12 = vmov 3   ;;  %v1161_v13 = vld [vmem:[%s1664_s4 + $0x18] sm:$0xff]  ;;  %v1160_v14 = vld [vmem:[%s1664_s4 + $0x10] sm:$0xff]  ;;  %vm840_vm10 = vcmask 523264   ;;  %vm842_vm11 = vcmask 785408  }
 0x452   : > { %915 = vmatpush.bf16.msra.mxu0 %v1165_v4  ;;  %v1159_v15 = vld [vmem:[%s1664_s4 + $0x8] sm:$0xff]  ;;  %v1158_v16 = vld [vmem:[%s1664_s4] sm:$0xff] }
 0x453   : > { %v1283_v27 = vld [vmem:[%s1665_s5] ss:$0 sm:$0xff] }
 0x454   : > { %v844_v22 = vld [vmem:[#allocation4] sm:$0xff]  ;;  %v928_v29 = vld [vmem:[%s1509_s21] sm:$0xff] }
 0x456   : > { %v820_v3 = vld [vmem:[#allocation3] sm:$0xff]  ;;  %916 = vmatpush.bf16.msra.mxu0 %v1164_v7 }
 0x457   : > { %1284 = vrcp.f32 %v820_v3 }
 0x45a   : > { %917 = vmatpush.bf16.msra.mxu0 %v1163_v8 }
 0x45d   : > { %v1285_v9 = vpop.eup %1284 }
 0x45e   : > { %824 = vperm.xlu0 %1278, %v1285_v9   ;;  %832 = vperm.xlu1 %1280, %v1285_v9  }
 0x45f   : > { %918 = vmatpush.bf16.msra.mxu0 %v1162_v10 }
 0x463   : > { %919 = vmatpush.bf16.msra.mxu0 %v1161_v13 }
 0x466   : > { %1279 = vset.pattern.permute.xlu0 %v1369_v11  ;;  %1281 = vset.pattern.permute.xlu1 %v1370_v12 }
 0x467   : > { %828 = vperm.xlu0 %1279, %v1285_v9   ;;  %836 = vperm.xlu1 %1281, %v1285_v9  }
 0x468   : > { %920 = vmatpush.bf16.msra.mxu0 %v1160_v14 }
 0x46c   : > { %921 = vmatpush.bf16.msra.mxu0 %v1159_v15 }
 0x46f   : > { %1282 = vset.pattern.permute.xlu0 %v1370_v12 }
 0x470   : > { %922 = vmatpush.bf16.msra.mxu0 %v1158_v16 }
 0x4d0   : > { %v825_v17 = vpop.permute.xlu0 %824  ;;  %v833_v18 = vpop.permute.xlu1 %832 }
 0x4d9   : > { %v829_v19 = vpop.permute.xlu0 %828  ;;  %v837_v20 = vpop.permute.xlu1 %836 }
 0x4da   : > { %v839_v21 = vsel %vm489_vm1, %v825_v17, %v829_v19 }
 0x4db   : > { %v841_v23 = vsel %vm840_vm10, %v839_v21, %v833_v18 }
 0x4dc   : > { %v843_v24 = vsel %vm842_vm11, %v841_v23, %v837_v20 }
 0x4dd   : > { %v845_v25 = vmul.f32 %v844_v22, %v843_v24 }
 0x4df   : > { %v846_v26 = vpack.c.bf16 %v845_v25, %v845_v25 }
 0x4e1   : > { %923 = vmatmul.bf16.vlgmr.msra.gmra.mxu0 %v846_v26 }
 0x55e   : > { %v924_v28 = vpop.f32.mrf.mxu0 }
 0x55f   : > { %v925_v30 = vadd.f32 %v1283_v27, %v924_v28 }
 0x561   : > { %v929_v31 = vadd.f32 %v928_v29, %v925_v30 }
 0x563   : > { %930 = vst [vmem:[%s1514_s8] sm:$0xff] %v929_v31 }
 0x566   : > { %v926_v32 = vpop.f32.mrf.mxu0 }
 0x567 PF: > { %s16_s29 = sadd.s32 1, %s1356_s29   ;;  %s1675_s7 = sld [smem:[#allocation7_spill]] }
 0x568   : > { %p13_p1 = scmp.ge.s32.totalorder %s16_s29, 20   ;;  %s1676_s9 = sld [smem:[#allocation8_spill]] }
 0x569   : > { %s1677_s21 = smov %s1328_s22  ;;  %s1678_s22 = smov %s1475_s14 }
 0x56a   : > { %s1679_s23 = smov %s1344_s26  ;;  %s1680_s24 = smov %s1348_s27 }
 0x56b   : > { %s1681_s25 = smov %s1352_s28  ;;  %s1682_s26 = smov %s1686_s30 }
 0x56c   :  { %15 = sbr.rel (!%p13_p1) target bundleno = 8 (0x8), region = 183 }
 0x56d   : > { %s1683_s27 = smov %s1675_s7 }
 0x56e   : > { %s1684_s28 = smov %s1676_s9 }

</bundles_post_ra>
